<compile_context>
chip_gen: v5e
topology: v5e:2x2
jax: 0.10.0
libtpu: 0.0.40
codegen_flags: <defaults>
</compile_context>

<pallas_src>
from functools import partial

import jax
import jax.numpy as jnp
from jax.experimental import pallas as pl
from jax.experimental.pallas import tpu as pltpu


def _round_up(x, m):
    return ((x + m - 1) // m) * m


# ----------------------------------------------------------------------------
# Kernel (all tensors: features in sublanes, batch in lanes)
# ----------------------------------------------------------------------------
def pcr_kernel(x4_ref, fb_ref,
               w1_ref, b1_ref, w2_ref, b2_ref,
               wih_ref, whh_ref, bg_ref,
               w3a_ref, w3b_ref, b3_ref, w4_ref, b4_ref,
               out_ref):
    f32 = jnp.float32
    T = fb_ref.shape[0]
    B = fb_ref.shape[2]
    G, HP = whh_ref.shape            # gate slab (4*HP=128), padded hidden (32)
    H3 = 3 * HP

    # ---- fc1: Linear(4,10)+ReLU, Linear(10,10)+ReLU ----
    x = x4_ref[...]                                              # (4, B)
    h = jnp.maximum(
        jnp.dot(w1_ref[...], x, preferred_element_type=f32) + b1_ref[...], 0.0)
    h = jnp.maximum(
        jnp.dot(w2_ref[...], h, preferred_element_type=f32) + b2_ref[...], 0.0)

    # ---- LSTM recurrence; fused gate order in sublanes: [i | f | o | g] ----
    wih = wih_ref[...]                                           # (G, F)
    whh = whh_ref[...]                                           # (G, HP)
    bgb = jnp.broadcast_to(bg_ref[...], (G, B))                  # hoisted bcast

    def step(x_t, h_t, c_t):
        gates = (jnp.dot(wih, x_t, preferred_element_type=f32)
                 + jnp.dot(whh, h_t, preferred_element_type=f32)
                 + bgb)                                          # (G, B)
        # sigmoid over the contiguous [i|f|o] slab via EUP exp + approx recip
        ifo = pl.reciprocal(1.0 + jnp.exp(-gates[:H3, :]), approx=True)
        g_t = jnp.tanh(gates[H3:, :])
        i_t = ifo[:HP]
        f_t = ifo[HP:2 * HP]
        o_t = ifo[2 * HP:]
        c_n = f_t * c_t + i_t * g_t
        h_n = o_t * jnp.tanh(c_n)
        return h_n, c_n

    h_t = jnp.zeros((HP, B), f32)
    c_t = jnp.zeros((HP, B), f32)
    if T <= 8:
        # small static T: full unroll (single basic block, best LLO scheduling)
        for t in range(T):
            h_t, c_t = step(fb_ref[t], h_t, c_t)
    else:
        # larger T: bounded live ranges, partial unroll
        def body(t, carry):
            h_c, c_c = carry
            return step(fb_ref[t], h_c, c_c)
        h_t, c_t = jax.lax.fori_loop(0, T, body, (h_t, c_t), unroll=4)

    # ---- fc2: Linear(40,100)+ReLU, Linear(100, 2*P) ----
    # concat([fc1_out, lstm_out]) @ W3  ==  W3a @ fc1_out + W3b @ lstm_out
    z = jnp.maximum(
        jnp.dot(w3a_ref[...], h, preferred_element_type=f32)
        + jnp.dot(w3b_ref[...], h_t, preferred_element_type=f32)
        + b3_ref[...], 0.0)                                      # (D2, B)
    out_ref[...] = (
        jnp.dot(w4_ref[...], z, preferred_element_type=f32) + b4_ref[...])


# ----------------------------------------------------------------------------
# Parameters: logical (PyTorch-equivalent) init + packing into kernel layout
# ----------------------------------------------------------------------------
def init_params(key, prediction_horizon, fc1_sizes=(10, 10), fc2_hidden=100,
                lstm_hidden=30, lstm_input=6):
    """Deterministic synthetic parameters (PyTorch-like uniform fan-in init)."""
    ks = jax.random.split(key, 8)

    def linear(k, fan_in, fan_out):
        bound = 1.0 / float(fan_in) ** 0.5
        kw, kb = jax.random.split(k)
        w = jax.random.uniform(kw, (fan_in, fan_out), jnp.float32, -bound, bound)
        b = jax.random.uniform(kb, (1, fan_out), jnp.float32, -bound, bound)
        return w, b

    w1, b1 = linear(ks[0], 4, fc1_sizes[0])
    w2, b2 = linear(ks[1], fc1_sizes[0], fc1_sizes[1])

    bound = 1.0 / float(lstm_hidden) ** 0.5
    # PyTorch gate order [i, f, g, o]; weights stored (gate, in, H)
    wih = jax.random.uniform(ks[2], (4, lstm_input, lstm_hidden), jnp.float32, -bound, bound)
    whh = jax.random.uniform(ks[3], (4, lstm_hidden, lstm_hidden), jnp.float32, -bound, bound)
    bih = jax.random.uniform(ks[4], (4, 1, lstm_hidden), jnp.float32, -bound, bound)
    bhh = jax.random.uniform(ks[5], (4, 1, lstm_hidden), jnp.float32, -bound, bound)

    w3, b3 = linear(ks[6], fc1_sizes[1] + lstm_hidden, fc2_hidden)
    w4, b4 = linear(ks[7], fc2_hidden, 2 * prediction_horizon)

    return dict(w1=w1, b1=b1, w2=w2, b2=b2,
                wih=wih, whh=whh, bih=bih, bhh=bhh,
                w3=w3, b3=b3, w4=w4, b4=b4)


def pack_params(p, prediction_horizon):
    """Transpose for batch-in-lanes, fuse LSTM gates ([i,f,o,g]) with per-gate
    hidden padded 30->32 (gate slab = 128 sublanes), pad fc dims to 8."""
    f32 = jnp.float32
    Fin = p["wih"].shape[1]          # lstm input size (6)
    H = p["whh"].shape[-1]           # lstm hidden (30)
    F1 = p["w1"].shape[1]            # fc1 layer-1 width (10)
    F2 = p["w2"].shape[1]            # fc1 output width (10)
    O = p["w4"].shape[1]             # 2 * prediction_horizon

    HP = _round_up(H, 8)             # 32 -> gate slab 4*32 = 128
    G = 4 * HP
    D1 = _round_up(max(F1, F2), 8)   # 16
    D2 = _round_up(p["w3"].shape[1], 8)   # 104
    DO = _round_up(O, 8)             # 16 for P=5

    def padT(w, rows, cols):         # (in, out) weight -> transposed, zero-padded
        out = jnp.zeros((rows, cols), f32)
        return out.at[:w.shape[1], :w.shape[0]].set(w.T.astype(f32))

    def pad_bias(b, rows):           # (1, out) bias -> (rows, 1)
        out = jnp.zeros((rows, 1), f32)
        return out.at[:b.shape[1], 0].set(b[0].astype(f32))

    w1 = padT(p["w1"], D1, 4);   b1 = pad_bias(p["b1"], D1)
    w2 = padT(p["w2"], D1, D1);  b2 = pad_bias(p["b2"], D1)

    # Repack gates: PyTorch order [i, f, g, o] -> kernel order [i, f, o, g]
    order = (0, 1, 3, 2)
    wih = jnp.zeros((G, Fin), f32)
    whh = jnp.zeros((G, HP), f32)
    bg = jnp.zeros((G, 1), f32)
    for slot, g in enumerate(order):
        r0 = slot * HP
        wih = wih.at[r0:r0 + H, :].set(p["wih"][g].T.astype(f32))
        whh = whh.at[r0:r0 + H, :H].set(p["whh"][g].T.astype(f32))
        bg = bg.at[r0:r0 + H, 0].set((p["bih"][g][0] + p["bhh"][g][0]).astype(f32))

    w3a = padT(p["w3"][:F2], D2, D1)   # rows that multiply fc1 output
    w3b = padT(p["w3"][F2:], D2, HP)   # rows that multiply lstm output
    b3 = pad_bias(p["b3"], D2)
    w4 = padT(p["w4"], DO, D2)
    b4 = pad_bias(p["b4"], DO)

    return dict(w1=w1, b1=b1, w2=w2, b2=b2, wih=wih, whh=whh, bg=bg,
                w3a=w3a, w3b=w3b, b3=b3, w4=w4, b4=b4)


# ----------------------------------------------------------------------------
# Wrapper
# ----------------------------------------------------------------------------
@partial(jax.jit, static_argnames=("prediction_horizon", "b_blk"))
def pcr_forward(position_data, feedback_data, packed, *, prediction_horizon,
                b_blk=128):
    # TODO(synk): configuration_state>0 embedding-lookup branch not implemented
    # (default module config has configuration_state=0, so it is inactive).
    B = position_data.shape[0]
    T, F = feedback_data.shape[1], feedback_data.shape[2]
    O = 2 * prediction_horizon
    DO = packed["w4"].shape[0]

    B_blk = b_blk                     # sweep knob: 128 (v5e) / 256 (v6e, v7x)
    Bp = _round_up(max(B, B_blk), B_blk)

    # Batch-in-lanes layout: features/time in sublanes, batch in the lane dim.
    x4 = jnp.zeros((4, Bp), jnp.float32).at[:, :B].set(
        position_data[:, :4].astype(jnp.float32).T)
    fb = jnp.zeros((T, F, Bp), jnp.float32).at[:, :, :B].set(
        jnp.transpose(feedback_data.astype(jnp.float32), (1, 2, 0)))

    weights = (packed["w1"], packed["b1"], packed["w2"], packed["b2"],
               packed["wih"], packed["whh"], packed["bg"],
               packed["w3a"], packed["w3b"], packed["b3"],
               packed["w4"], packed["b4"])

    in_specs = ([pl.BlockSpec((4, B_blk), lambda i: (0, i)),
                 pl.BlockSpec((T, F, B_blk), lambda i: (0, 0, i))]
                + [pl.BlockSpec(w.shape, lambda i: (0, 0)) for w in weights])

    out_t = pl.pallas_call(
        pcr_kernel,
        out_shape=jax.ShapeDtypeStruct((DO, Bp), jnp.float32),
        grid=(Bp // B_blk,),
        in_specs=in_specs,
        out_specs=pl.BlockSpec((DO, B_blk), lambda i: (0, i)),
        compiler_params=pltpu.CompilerParams(
            dimension_semantics=("parallel",)),
    )(x4, fb, *weights)

    # Strip padding, back to batch-major; row-major reshape matches
    # torch.reshape((-1, P, 2)).
    return out_t[:O, :B].T.reshape(B, prediction_horizon, 2)


# ----------------------------------------------------------------------------
# Pure-JAX reference (mirrors the PyTorch module) for a numerical smoke test
# ----------------------------------------------------------------------------
def pcr_reference(position_data, feedback_data, p, prediction_horizon):
    x = position_data[:, :4].astype(jnp.float32)
    h = jax.nn.relu(x @ p["w1"] + p["b1"])
    h = jax.nn.relu(h @ p["w2"] + p["b2"])
    B, T, _ = feedback_data.shape
    H = p["whh"].shape[-1]
    ht = jnp.zeros((B, H), jnp.float32)
    ct = jnp.zeros((B, H), jnp.float32)
    for t in range(T):
        xt = feedback_data[:, t].astype(jnp.float32)
        pre = [xt @ p["wih"][g] + ht @ p["whh"][g] + p["bih"][g] + p["bhh"][g]
               for g in range(4)]                       # PyTorch order [i,f,g,o]
        i_g = jax.nn.sigmoid(pre[0])
        f_g = jax.nn.sigmoid(pre[1])
        g_g = jnp.tanh(pre[2])
        o_g = jax.nn.sigmoid(pre[3])
        ct = f_g * ct + i_g * g_g
        ht = o_g * jnp.tanh(ct)
    z = jax.nn.relu(jnp.concatenate([h, ht], axis=1) @ p["w3"] + p["b3"])
    y = z @ p["w4"] + p["b4"]
    return y.reshape(B, prediction_horizon, 2)


if __name__ == "__main__":
    B, T, P = 2, 8, 5
    key = jax.random.PRNGKey(0)
    k_pos, k_fb, k_par = jax.random.split(key, 3)

    # position_data: (B, 5); only the first 4 columns are used (configuration_state=0)
    position_data = jax.random.normal(k_pos, (B, 5), jnp.float32)
    # feedback_data: (B, T, 6) — LSTM input, batch_first
    feedback_data = jax.random.normal(k_fb, (B, T, 6), jnp.float32)

    params = init_params(k_par, prediction_horizon=P)
    packed = pack_params(params, prediction_horizon=P)

    out = pcr_forward(position_data, feedback_data, packed, prediction_horizon=P)
    out = jax.block_until_ready(out)
    assert out.shape == (B, P, 2), out.shape
    assert bool(jnp.all(jnp.isfinite(out)))

    ref = jax.block_until_ready(pcr_reference(position_data, feedback_data, params, P))
    max_err = float(jnp.max(jnp.abs(out - ref)))
    # Loose tolerance: default MXU precision + fused/padded computation order.
    assert max_err < 5e-2, f"max abs err vs reference: {max_err}"

    print("KERNEL_OK")
</pallas_src>

<mosaic_0001>
module attributes {stable_mosaic.version = 11 : i64} {
  func.func @pcr_kernel(%arg0: i32, %arg1: memref<4x128xf32, #tpu.memory_space<vmem>>, %arg2: memref<8x6x128xf32, #tpu.memory_space<vmem>>, %arg3: memref<16x4xf32, #tpu.memory_space<vmem>>, %arg4: memref<16x1xf32, #tpu.memory_space<vmem>>, %arg5: memref<16x16xf32, #tpu.memory_space<vmem>>, %arg6: memref<16x1xf32, #tpu.memory_space<vmem>>, %arg7: memref<128x6xf32, #tpu.memory_space<vmem>>, %arg8: memref<128x32xf32, #tpu.memory_space<vmem>>, %arg9: memref<128x1xf32, #tpu.memory_space<vmem>>, %arg10: memref<104x16xf32, #tpu.memory_space<vmem>>, %arg11: memref<104x32xf32, #tpu.memory_space<vmem>>, %arg12: memref<104x1xf32, #tpu.memory_space<vmem>>, %arg13: memref<16x104xf32, #tpu.memory_space<vmem>>, %arg14: memref<16x1xf32, #tpu.memory_space<vmem>>, %arg15: memref<16x128xf32, #tpu.memory_space<vmem>>) attributes {dimension_semantics = [#tpu.dimension_semantics<parallel>], iteration_bounds = array<i64: 1>, scalar_prefetch = 0 : i64, scratch_operands = 0 : i64, tpu.core_type = #tpu.core_type<tc>, window_params = [{transform_indices = @transform_0, window_bounds = array<i64: 4, 128>}, {transform_indices = @transform_1, window_bounds = array<i64: 8, 6, 128>}, {pipeline_mode = #tpu.pipeline_mode<synchronous>, transform_indices = @transform_2, window_bounds = array<i64: 16, 4>}, {pipeline_mode = #tpu.pipeline_mode<synchronous>, transform_indices = @transform_3, window_bounds = array<i64: 16, 1>}, {pipeline_mode = #tpu.pipeline_mode<synchronous>, transform_indices = @transform_4, window_bounds = array<i64: 16, 16>}, {pipeline_mode = #tpu.pipeline_mode<synchronous>, transform_indices = @transform_5, window_bounds = array<i64: 16, 1>}, {pipeline_mode = #tpu.pipeline_mode<synchronous>, transform_indices = @transform_6, window_bounds = array<i64: 128, 6>}, {pipeline_mode = #tpu.pipeline_mode<synchronous>, transform_indices = @transform_7, window_bounds = array<i64: 128, 32>}, {pipeline_mode = #tpu.pipeline_mode<synchronous>, transform_indices = @transform_8, window_bounds = array<i64: 128, 1>}, {pipeline_mode = #tpu.pipeline_mode<synchronous>, transform_indices = @transform_9, window_bounds = array<i64: 104, 16>}, {pipeline_mode = #tpu.pipeline_mode<synchronous>, transform_indices = @transform_10, window_bounds = array<i64: 104, 32>}, {pipeline_mode = #tpu.pipeline_mode<synchronous>, transform_indices = @transform_11, window_bounds = array<i64: 104, 1>}, {pipeline_mode = #tpu.pipeline_mode<synchronous>, transform_indices = @transform_12, window_bounds = array<i64: 16, 104>}, {pipeline_mode = #tpu.pipeline_mode<synchronous>, transform_indices = @transform_13, window_bounds = array<i64: 16, 1>}, {transform_indices = @transform_14, window_bounds = array<i64: 16, 128>}]} {
    %c0 = arith.constant 0 : index
    %c0_0 = arith.constant 0 : index
    %0 = vector.load %arg1[%c0, %c0_0] : memref<4x128xf32, #tpu.memory_space<vmem>>, vector<4x128xf32>
    %c0_1 = arith.constant 0 : index
    %c0_2 = arith.constant 0 : index
    %1 = vector.load %arg3[%c0_1, %c0_2] : memref<16x4xf32, #tpu.memory_space<vmem>>, vector<16x4xf32>
    %cst = arith.constant dense<0.000000e+00> : vector<16x128xf32>
    %2 = tpu.matmul %1, %0, %cst {dimension_numbers = #tpu.dot_dimension_numbers<[1], [0], [0], [1], [0, 0, 1, 1], [], []>} : vector<16x4xf32>, vector<4x128xf32>, vector<16x128xf32> -> vector<16x128xf32>
    %c0_3 = arith.constant 0 : index
    %c0_4 = arith.constant 0 : index
    %3 = vector.load %arg4[%c0_3, %c0_4] : memref<16x1xf32, #tpu.memory_space<vmem>>, vector<16x1xf32>
    %4 = vector.broadcast %3 : vector<16x1xf32> to vector<16x128xf32>
    %5 = arith.addf %2, %4 : vector<16x128xf32>
    %cst_5 = arith.constant 0.000000e+00 : f32
    %6 = vector.broadcast %cst_5 : f32 to vector<16x128xf32>
    %7 = arith.maximumf %5, %6 : vector<16x128xf32>
    %c0_6 = arith.constant 0 : index
    %c0_7 = arith.constant 0 : index
    %8 = vector.load %arg5[%c0_6, %c0_7] : memref<16x16xf32, #tpu.memory_space<vmem>>, vector<16x16xf32>
    %cst_8 = arith.constant dense<0.000000e+00> : vector<16x128xf32>
    %9 = tpu.matmul %8, %7, %cst_8 {dimension_numbers = #tpu.dot_dimension_numbers<[1], [0], [0], [1], [0, 0, 1, 1], [], []>} : vector<16x16xf32>, vector<16x128xf32>, vector<16x128xf32> -> vector<16x128xf32>
    %c0_9 = arith.constant 0 : index
    %c0_10 = arith.constant 0 : index
    %10 = vector.load %arg6[%c0_9, %c0_10] : memref<16x1xf32, #tpu.memory_space<vmem>>, vector<16x1xf32>
    %11 = vector.broadcast %10 : vector<16x1xf32> to vector<16x128xf32>
    %12 = arith.addf %9, %11 : vector<16x128xf32>
    %cst_11 = arith.constant 0.000000e+00 : f32
    %13 = vector.broadcast %cst_11 : f32 to vector<16x128xf32>
    %14 = arith.maximumf %12, %13 : vector<16x128xf32>
    %c0_12 = arith.constant 0 : index
    %c0_13 = arith.constant 0 : index
    %15 = vector.load %arg7[%c0_12, %c0_13] : memref<128x6xf32, #tpu.memory_space<vmem>>, vector<128x6xf32>
    %c0_14 = arith.constant 0 : index
    %c0_15 = arith.constant 0 : index
    %16 = vector.load %arg8[%c0_14, %c0_15] : memref<128x32xf32, #tpu.memory_space<vmem>>, vector<128x32xf32>
    %c0_16 = arith.constant 0 : index
    %c0_17 = arith.constant 0 : index
    %17 = vector.load %arg9[%c0_16, %c0_17] : memref<128x1xf32, #tpu.memory_space<vmem>>, vector<128x1xf32>
    %18 = vector.shape_cast %17 : vector<128x1xf32> to vector<128x1xf32>
    %19 = vector.broadcast %18 : vector<128x1xf32> to vector<128x128xf32>
    %cst_18 = arith.constant 0.000000e+00 : f32
    %20 = vector.broadcast %cst_18 : f32 to vector<32x128xf32>
    %cst_19 = arith.constant 0.000000e+00 : f32
    %21 = vector.broadcast %cst_19 : f32 to vector<32x128xf32>
    %c0_20 = arith.constant 0 : index
    %c0_21 = arith.constant 0 : index
    %c0_22 = arith.constant 0 : index
    %22 = vector.load %arg2[%c0_20, %c0_21, %c0_22] : memref<8x6x128xf32, #tpu.memory_space<vmem>>, vector<1x6x128xf32>
    %23 = vector.shape_cast %22 : vector<1x6x128xf32> to vector<6x128xf32>
    %cst_23 = arith.constant dense<0.000000e+00> : vector<128x128xf32>
    %24 = tpu.matmul %15, %23, %cst_23 {dimension_numbers = #tpu.dot_dimension_numbers<[1], [0], [0], [1], [0, 0, 1, 1], [], []>} : vector<128x6xf32>, vector<6x128xf32>, vector<128x128xf32> -> vector<128x128xf32>
    %cst_24 = arith.constant dense<0.000000e+00> : vector<128x128xf32>
    %25 = tpu.matmul %16, %20, %cst_24 {dimension_numbers = #tpu.dot_dimension_numbers<[1], [0], [0], [1], [0, 0, 1, 1], [], []>} : vector<128x32xf32>, vector<32x128xf32>, vector<128x128xf32> -> vector<128x128xf32>
    %26 = arith.addf %24, %25 : vector<128x128xf32>
    %27 = arith.addf %26, %19 : vector<128x128xf32>
    %28 = vector.extract_strided_slice %27 {offsets = [0, 0], sizes = [96, 128], strides = [1, 1]} : vector<128x128xf32> to vector<96x128xf32>
    %cst_25 = arith.constant 0.000000e+00 : f32
    %29 = vector.broadcast %cst_25 : f32 to vector<96x128xf32>
    %30 = arith.subf %29, %28 : vector<96x128xf32>
    %31 = math.exp %30 : vector<96x128xf32>
    %cst_26 = arith.constant 1.000000e+00 : f32
    %32 = vector.broadcast %cst_26 : f32 to vector<96x128xf32>
    %33 = arith.addf %32, %31 : vector<96x128xf32>
    %34 = tpu.reciprocal %33 {approx = true} : vector<96x128xf32> -> vector<96x128xf32>
    %35 = vector.extract_strided_slice %27 {offsets = [96, 0], sizes = [32, 128], strides = [1, 1]} : vector<128x128xf32> to vector<32x128xf32>
    %36 = math.tanh %35 : vector<32x128xf32>
    %37 = vector.extract_strided_slice %34 {offsets = [0, 0], sizes = [32, 128], strides = [1, 1]} : vector<96x128xf32> to vector<32x128xf32>
    %38 = vector.extract_strided_slice %34 {offsets = [32, 0], sizes = [32, 128], strides = [1, 1]} : vector<96x128xf32> to vector<32x128xf32>
    %39 = vector.extract_strided_slice %34 {offsets = [64, 0], sizes = [32, 128], strides = [1, 1]} : vector<96x128xf32> to vector<32x128xf32>
    %40 = arith.mulf %38, %21 : vector<32x128xf32>
    %41 = arith.mulf %37, %36 : vector<32x128xf32>
    %42 = arith.addf %40, %41 : vector<32x128xf32>
    %43 = math.tanh %42 : vector<32x128xf32>
    %44 = arith.mulf %39, %43 : vector<32x128xf32>
    %c1 = arith.constant 1 : index
    %c0_27 = arith.constant 0 : index
    %c0_28 = arith.constant 0 : index
    %45 = vector.load %arg2[%c1, %c0_27, %c0_28] : memref<8x6x128xf32, #tpu.memory_space<vmem>>, vector<1x6x128xf32>
    %46 = vector.shape_cast %45 : vector<1x6x128xf32> to vector<6x128xf32>
    %cst_29 = arith.constant dense<0.000000e+00> : vector<128x128xf32>
    %47 = tpu.matmul %15, %46, %cst_29 {dimension_numbers = #tpu.dot_dimension_numbers<[1], [0], [0], [1], [0, 0, 1, 1], [], []>} : vector<128x6xf32>, vector<6x128xf32>, vector<128x128xf32> -> vector<128x128xf32>
    %cst_30 = arith.constant dense<0.000000e+00> : vector<128x128xf32>
    %48 = tpu.matmul %16, %44, %cst_30 {dimension_numbers = #tpu.dot_dimension_numbers<[1], [0], [0], [1], [0, 0, 1, 1], [], []>} : vector<128x32xf32>, vector<32x128xf32>, vector<128x128xf32> -> vector<128x128xf32>
    %49 = arith.addf %47, %48 : vector<128x128xf32>
    %50 = arith.addf %49, %19 : vector<128x128xf32>
    %51 = vector.extract_strided_slice %50 {offsets = [0, 0], sizes = [96, 128], strides = [1, 1]} : vector<128x128xf32> to vector<96x128xf32>
    %cst_31 = arith.constant 0.000000e+00 : f32
    %52 = vector.broadcast %cst_31 : f32 to vector<96x128xf32>
    %53 = arith.subf %52, %51 : vector<96x128xf32>
    %54 = math.exp %53 : vector<96x128xf32>
    %cst_32 = arith.constant 1.000000e+00 : f32
    %55 = vector.broadcast %cst_32 : f32 to vector<96x128xf32>
    %56 = arith.addf %55, %54 : vector<96x128xf32>
    %57 = tpu.reciprocal %56 {approx = true} : vector<96x128xf32> -> vector<96x128xf32>
    %58 = vector.extract_strided_slice %50 {offsets = [96, 0], sizes = [32, 128], strides = [1, 1]} : vector<128x128xf32> to vector<32x128xf32>
    %59 = math.tanh %58 : vector<32x128xf32>
    %60 = vector.extract_strided_slice %57 {offsets = [0, 0], sizes = [32, 128], strides = [1, 1]} : vector<96x128xf32> to vector<32x128xf32>
    %61 = vector.extract_strided_slice %57 {offsets = [32, 0], sizes = [32, 128], strides = [1, 1]} : vector<96x128xf32> to vector<32x128xf32>
    %62 = vector.extract_strided_slice %57 {offsets = [64, 0], sizes = [32, 128], strides = [1, 1]} : vector<96x128xf32> to vector<32x128xf32>
    %63 = arith.mulf %61, %42 : vector<32x128xf32>
    %64 = arith.mulf %60, %59 : vector<32x128xf32>
    %65 = arith.addf %63, %64 : vector<32x128xf32>
    %66 = math.tanh %65 : vector<32x128xf32>
    %67 = arith.mulf %62, %66 : vector<32x128xf32>
    %c2 = arith.constant 2 : index
    %c0_33 = arith.constant 0 : index
    %c0_34 = arith.constant 0 : index
    %68 = vector.load %arg2[%c2, %c0_33, %c0_34] : memref<8x6x128xf32, #tpu.memory_space<vmem>>, vector<1x6x128xf32>
    %69 = vector.shape_cast %68 : vector<1x6x128xf32> to vector<6x128xf32>
    %cst_35 = arith.constant dense<0.000000e+00> : vector<128x128xf32>
    %70 = tpu.matmul %15, %69, %cst_35 {dimension_numbers = #tpu.dot_dimension_numbers<[1], [0], [0], [1], [0, 0, 1, 1], [], []>} : vector<128x6xf32>, vector<6x128xf32>, vector<128x128xf32> -> vector<128x128xf32>
    %cst_36 = arith.constant dense<0.000000e+00> : vector<128x128xf32>
    %71 = tpu.matmul %16, %67, %cst_36 {dimension_numbers = #tpu.dot_dimension_numbers<[1], [0], [0], [1], [0, 0, 1, 1], [], []>} : vector<128x32xf32>, vector<32x128xf32>, vector<128x128xf32> -> vector<128x128xf32>
    %72 = arith.addf %70, %71 : vector<128x128xf32>
    %73 = arith.addf %72, %19 : vector<128x128xf32>
    %74 = vector.extract_strided_slice %73 {offsets = [0, 0], sizes = [96, 128], strides = [1, 1]} : vector<128x128xf32> to vector<96x128xf32>
    %cst_37 = arith.constant 0.000000e+00 : f32
    %75 = vector.broadcast %cst_37 : f32 to vector<96x128xf32>
    %76 = arith.subf %75, %74 : vector<96x128xf32>
    %77 = math.exp %76 : vector<96x128xf32>
    %cst_38 = arith.constant 1.000000e+00 : f32
    %78 = vector.broadcast %cst_38 : f32 to vector<96x128xf32>
    %79 = arith.addf %78, %77 : vector<96x128xf32>
    %80 = tpu.reciprocal %79 {approx = true} : vector<96x128xf32> -> vector<96x128xf32>
    %81 = vector.extract_strided_slice %73 {offsets = [96, 0], sizes = [32, 128], strides = [1, 1]} : vector<128x128xf32> to vector<32x128xf32>
    %82 = math.tanh %81 : vector<32x128xf32>
    %83 = vector.extract_strided_slice %80 {offsets = [0, 0], sizes = [32, 128], strides = [1, 1]} : vector<96x128xf32> to vector<32x128xf32>
    %84 = vector.extract_strided_slice %80 {offsets = [32, 0], sizes = [32, 128], strides = [1, 1]} : vector<96x128xf32> to vector<32x128xf32>
    %85 = vector.extract_strided_slice %80 {offsets = [64, 0], sizes = [32, 128], strides = [1, 1]} : vector<96x128xf32> to vector<32x128xf32>
    %86 = arith.mulf %84, %65 : vector<32x128xf32>
    %87 = arith.mulf %83, %82 : vector<32x128xf32>
    %88 = arith.addf %86, %87 : vector<32x128xf32>
    %89 = math.tanh %88 : vector<32x128xf32>
    %90 = arith.mulf %85, %89 : vector<32x128xf32>
    %c3 = arith.constant 3 : index
    %c0_39 = arith.constant 0 : index
    %c0_40 = arith.constant 0 : index
    %91 = vector.load %arg2[%c3, %c0_39, %c0_40] : memref<8x6x128xf32, #tpu.memory_space<vmem>>, vector<1x6x128xf32>
    %92 = vector.shape_cast %91 : vector<1x6x128xf32> to vector<6x128xf32>
    %cst_41 = arith.constant dense<0.000000e+00> : vector<128x128xf32>
    %93 = tpu.matmul %15, %92, %cst_41 {dimension_numbers = #tpu.dot_dimension_numbers<[1], [0], [0], [1], [0, 0, 1, 1], [], []>} : vector<128x6xf32>, vector<6x128xf32>, vector<128x128xf32> -> vector<128x128xf32>
    %cst_42 = arith.constant dense<0.000000e+00> : vector<128x128xf32>
    %94 = tpu.matmul %16, %90, %cst_42 {dimension_numbers = #tpu.dot_dimension_numbers<[1], [0], [0], [1], [0, 0, 1, 1], [], []>} : vector<128x32xf32>, vector<32x128xf32>, vector<128x128xf32> -> vector<128x128xf32>
    %95 = arith.addf %93, %94 : vector<128x128xf32>
    %96 = arith.addf %95, %19 : vector<128x128xf32>
    %97 = vector.extract_strided_slice %96 {offsets = [0, 0], sizes = [96, 128], strides = [1, 1]} : vector<128x128xf32> to vector<96x128xf32>
    %cst_43 = arith.constant 0.000000e+00 : f32
    %98 = vector.broadcast %cst_43 : f32 to vector<96x128xf32>
    %99 = arith.subf %98, %97 : vector<96x128xf32>
    %100 = math.exp %99 : vector<96x128xf32>
    %cst_44 = arith.constant 1.000000e+00 : f32
    %101 = vector.broadcast %cst_44 : f32 to vector<96x128xf32>
    %102 = arith.addf %101, %100 : vector<96x128xf32>
    %103 = tpu.reciprocal %102 {approx = true} : vector<96x128xf32> -> vector<96x128xf32>
    %104 = vector.extract_strided_slice %96 {offsets = [96, 0], sizes = [32, 128], strides = [1, 1]} : vector<128x128xf32> to vector<32x128xf32>
    %105 = math.tanh %104 : vector<32x128xf32>
    %106 = vector.extract_strided_slice %103 {offsets = [0, 0], sizes = [32, 128], strides = [1, 1]} : vector<96x128xf32> to vector<32x128xf32>
    %107 = vector.extract_strided_slice %103 {offsets = [32, 0], sizes = [32, 128], strides = [1, 1]} : vector<96x128xf32> to vector<32x128xf32>
    %108 = vector.extract_strided_slice %103 {offsets = [64, 0], sizes = [32, 128], strides = [1, 1]} : vector<96x128xf32> to vector<32x128xf32>
    %109 = arith.mulf %107, %88 : vector<32x128xf32>
    %110 = arith.mulf %106, %105 : vector<32x128xf32>
    %111 = arith.addf %109, %110 : vector<32x128xf32>
    %112 = math.tanh %111 : vector<32x128xf32>
    %113 = arith.mulf %108, %112 : vector<32x128xf32>
    %c4 = arith.constant 4 : index
    %c0_45 = arith.constant 0 : index
    %c0_46 = arith.constant 0 : index
    %114 = vector.load %arg2[%c4, %c0_45, %c0_46] : memref<8x6x128xf32, #tpu.memory_space<vmem>>, vector<1x6x128xf32>
    %115 = vector.shape_cast %114 : vector<1x6x128xf32> to vector<6x128xf32>
    %cst_47 = arith.constant dense<0.000000e+00> : vector<128x128xf32>
    %116 = tpu.matmul %15, %115, %cst_47 {dimension_numbers = #tpu.dot_dimension_numbers<[1], [0], [0], [1], [0, 0, 1, 1], [], []>} : vector<128x6xf32>, vector<6x128xf32>, vector<128x128xf32> -> vector<128x128xf32>
    %cst_48 = arith.constant dense<0.000000e+00> : vector<128x128xf32>
    %117 = tpu.matmul %16, %113, %cst_48 {dimension_numbers = #tpu.dot_dimension_numbers<[1], [0], [0], [1], [0, 0, 1, 1], [], []>} : vector<128x32xf32>, vector<32x128xf32>, vector<128x128xf32> -> vector<128x128xf32>
    %118 = arith.addf %116, %117 : vector<128x128xf32>
    %119 = arith.addf %118, %19 : vector<128x128xf32>
    %120 = vector.extract_strided_slice %119 {offsets = [0, 0], sizes = [96, 128], strides = [1, 1]} : vector<128x128xf32> to vector<96x128xf32>
    %cst_49 = arith.constant 0.000000e+00 : f32
    %121 = vector.broadcast %cst_49 : f32 to vector<96x128xf32>
    %122 = arith.subf %121, %120 : vector<96x128xf32>
    %123 = math.exp %122 : vector<96x128xf32>
    %cst_50 = arith.constant 1.000000e+00 : f32
    %124 = vector.broadcast %cst_50 : f32 to vector<96x128xf32>
    %125 = arith.addf %124, %123 : vector<96x128xf32>
    %126 = tpu.reciprocal %125 {approx = true} : vector<96x128xf32> -> vector<96x128xf32>
    %127 = vector.extract_strided_slice %119 {offsets = [96, 0], sizes = [32, 128], strides = [1, 1]} : vector<128x128xf32> to vector<32x128xf32>
    %128 = math.tanh %127 : vector<32x128xf32>
    %129 = vector.extract_strided_slice %126 {offsets = [0, 0], sizes = [32, 128], strides = [1, 1]} : vector<96x128xf32> to vector<32x128xf32>
    %130 = vector.extract_strided_slice %126 {offsets = [32, 0], sizes = [32, 128], strides = [1, 1]} : vector<96x128xf32> to vector<32x128xf32>
    %131 = vector.extract_strided_slice %126 {offsets = [64, 0], sizes = [32, 128], strides = [1, 1]} : vector<96x128xf32> to vector<32x128xf32>
    %132 = arith.mulf %130, %111 : vector<32x128xf32>
    %133 = arith.mulf %129, %128 : vector<32x128xf32>
    %134 = arith.addf %132, %133 : vector<32x128xf32>
    %135 = math.tanh %134 : vector<32x128xf32>
    %136 = arith.mulf %131, %135 : vector<32x128xf32>
    %c5 = arith.constant 5 : index
    %c0_51 = arith.constant 0 : index
    %c0_52 = arith.constant 0 : index
    %137 = vector.load %arg2[%c5, %c0_51, %c0_52] : memref<8x6x128xf32, #tpu.memory_space<vmem>>, vector<1x6x128xf32>
    %138 = vector.shape_cast %137 : vector<1x6x128xf32> to vector<6x128xf32>
    %cst_53 = arith.constant dense<0.000000e+00> : vector<128x128xf32>
    %139 = tpu.matmul %15, %138, %cst_53 {dimension_numbers = #tpu.dot_dimension_numbers<[1], [0], [0], [1], [0, 0, 1, 1], [], []>} : vector<128x6xf32>, vector<6x128xf32>, vector<128x128xf32> -> vector<128x128xf32>
    %cst_54 = arith.constant dense<0.000000e+00> : vector<128x128xf32>
    %140 = tpu.matmul %16, %136, %cst_54 {dimension_numbers = #tpu.dot_dimension_numbers<[1], [0], [0], [1], [0, 0, 1, 1], [], []>} : vector<128x32xf32>, vector<32x128xf32>, vector<128x128xf32> -> vector<128x128xf32>
    %141 = arith.addf %139, %140 : vector<128x128xf32>
    %142 = arith.addf %141, %19 : vector<128x128xf32>
    %143 = vector.extract_strided_slice %142 {offsets = [0, 0], sizes = [96, 128], strides = [1, 1]} : vector<128x128xf32> to vector<96x128xf32>
    %cst_55 = arith.constant 0.000000e+00 : f32
    %144 = vector.broadcast %cst_55 : f32 to vector<96x128xf32>
    %145 = arith.subf %144, %143 : vector<96x128xf32>
    %146 = math.exp %145 : vector<96x128xf32>
    %cst_56 = arith.constant 1.000000e+00 : f32
    %147 = vector.broadcast %cst_56 : f32 to vector<96x128xf32>
    %148 = arith.addf %147, %146 : vector<96x128xf32>
    %149 = tpu.reciprocal %148 {approx = true} : vector<96x128xf32> -> vector<96x128xf32>
    %150 = vector.extract_strided_slice %142 {offsets = [96, 0], sizes = [32, 128], strides = [1, 1]} : vector<128x128xf32> to vector<32x128xf32>
    %151 = math.tanh %150 : vector<32x128xf32>
    %152 = vector.extract_strided_slice %149 {offsets = [0, 0], sizes = [32, 128], strides = [1, 1]} : vector<96x128xf32> to vector<32x128xf32>
    %153 = vector.extract_strided_slice %149 {offsets = [32, 0], sizes = [32, 128], strides = [1, 1]} : vector<96x128xf32> to vector<32x128xf32>
    %154 = vector.extract_strided_slice %149 {offsets = [64, 0], sizes = [32, 128], strides = [1, 1]} : vector<96x128xf32> to vector<32x128xf32>
    %155 = arith.mulf %153, %134 : vector<32x128xf32>
    %156 = arith.mulf %152, %151 : vector<32x128xf32>
    %157 = arith.addf %155, %156 : vector<32x128xf32>
    %158 = math.tanh %157 : vector<32x128xf32>
    %159 = arith.mulf %154, %158 : vector<32x128xf32>
    %c6 = arith.constant 6 : index
    %c0_57 = arith.constant 0 : index
    %c0_58 = arith.constant 0 : index
    %160 = vector.load %arg2[%c6, %c0_57, %c0_58] : memref<8x6x128xf32, #tpu.memory_space<vmem>>, vector<1x6x128xf32>
    %161 = vector.shape_cast %160 : vector<1x6x128xf32> to vector<6x128xf32>
    %cst_59 = arith.constant dense<0.000000e+00> : vector<128x128xf32>
    %162 = tpu.matmul %15, %161, %cst_59 {dimension_numbers = #tpu.dot_dimension_numbers<[1], [0], [0], [1], [0, 0, 1, 1], [], []>} : vector<128x6xf32>, vector<6x128xf32>, vector<128x128xf32> -> vector<128x128xf32>
    %cst_60 = arith.constant dense<0.000000e+00> : vector<128x128xf32>
    %163 = tpu.matmul %16, %159, %cst_60 {dimension_numbers = #tpu.dot_dimension_numbers<[1], [0], [0], [1], [0, 0, 1, 1], [], []>} : vector<128x32xf32>, vector<32x128xf32>, vector<128x128xf32> -> vector<128x128xf32>
    %164 = arith.addf %162, %163 : vector<128x128xf32>
    %165 = arith.addf %164, %19 : vector<128x128xf32>
    %166 = vector.extract_strided_slice %165 {offsets = [0, 0], sizes = [96, 128], strides = [1, 1]} : vector<128x128xf32> to vector<96x128xf32>
    %cst_61 = arith.constant 0.000000e+00 : f32
    %167 = vector.broadcast %cst_61 : f32 to vector<96x128xf32>
    %168 = arith.subf %167, %166 : vector<96x128xf32>
    %169 = math.exp %168 : vector<96x128xf32>
    %cst_62 = arith.constant 1.000000e+00 : f32
    %170 = vector.broadcast %cst_62 : f32 to vector<96x128xf32>
    %171 = arith.addf %170, %169 : vector<96x128xf32>
    %172 = tpu.reciprocal %171 {approx = true} : vector<96x128xf32> -> vector<96x128xf32>
    %173 = vector.extract_strided_slice %165 {offsets = [96, 0], sizes = [32, 128], strides = [1, 1]} : vector<128x128xf32> to vector<32x128xf32>
    %174 = math.tanh %173 : vector<32x128xf32>
    %175 = vector.extract_strided_slice %172 {offsets = [0, 0], sizes = [32, 128], strides = [1, 1]} : vector<96x128xf32> to vector<32x128xf32>
    %176 = vector.extract_strided_slice %172 {offsets = [32, 0], sizes = [32, 128], strides = [1, 1]} : vector<96x128xf32> to vector<32x128xf32>
    %177 = vector.extract_strided_slice %172 {offsets = [64, 0], sizes = [32, 128], strides = [1, 1]} : vector<96x128xf32> to vector<32x128xf32>
    %178 = arith.mulf %176, %157 : vector<32x128xf32>
    %179 = arith.mulf %175, %174 : vector<32x128xf32>
    %180 = arith.addf %178, %179 : vector<32x128xf32>
    %181 = math.tanh %180 : vector<32x128xf32>
    %182 = arith.mulf %177, %181 : vector<32x128xf32>
    %c7 = arith.constant 7 : index
    %c0_63 = arith.constant 0 : index
    %c0_64 = arith.constant 0 : index
    %183 = vector.load %arg2[%c7, %c0_63, %c0_64] : memref<8x6x128xf32, #tpu.memory_space<vmem>>, vector<1x6x128xf32>
    %184 = vector.shape_cast %183 : vector<1x6x128xf32> to vector<6x128xf32>
    %cst_65 = arith.constant dense<0.000000e+00> : vector<128x128xf32>
    %185 = tpu.matmul %15, %184, %cst_65 {dimension_numbers = #tpu.dot_dimension_numbers<[1], [0], [0], [1], [0, 0, 1, 1], [], []>} : vector<128x6xf32>, vector<6x128xf32>, vector<128x128xf32> -> vector<128x128xf32>
    %cst_66 = arith.constant dense<0.000000e+00> : vector<128x128xf32>
    %186 = tpu.matmul %16, %182, %cst_66 {dimension_numbers = #tpu.dot_dimension_numbers<[1], [0], [0], [1], [0, 0, 1, 1], [], []>} : vector<128x32xf32>, vector<32x128xf32>, vector<128x128xf32> -> vector<128x128xf32>
    %187 = arith.addf %185, %186 : vector<128x128xf32>
    %188 = arith.addf %187, %19 : vector<128x128xf32>
    %189 = vector.extract_strided_slice %188 {offsets = [0, 0], sizes = [96, 128], strides = [1, 1]} : vector<128x128xf32> to vector<96x128xf32>
    %cst_67 = arith.constant 0.000000e+00 : f32
    %190 = vector.broadcast %cst_67 : f32 to vector<96x128xf32>
    %191 = arith.subf %190, %189 : vector<96x128xf32>
    %192 = math.exp %191 : vector<96x128xf32>
    %cst_68 = arith.constant 1.000000e+00 : f32
    %193 = vector.broadcast %cst_68 : f32 to vector<96x128xf32>
    %194 = arith.addf %193, %192 : vector<96x128xf32>
    %195 = tpu.reciprocal %194 {approx = true} : vector<96x128xf32> -> vector<96x128xf32>
    %196 = vector.extract_strided_slice %188 {offsets = [96, 0], sizes = [32, 128], strides = [1, 1]} : vector<128x128xf32> to vector<32x128xf32>
    %197 = math.tanh %196 : vector<32x128xf32>
    %198 = vector.extract_strided_slice %195 {offsets = [0, 0], sizes = [32, 128], strides = [1, 1]} : vector<96x128xf32> to vector<32x128xf32>
    %199 = vector.extract_strided_slice %195 {offsets = [32, 0], sizes = [32, 128], strides = [1, 1]} : vector<96x128xf32> to vector<32x128xf32>
    %200 = vector.extract_strided_slice %195 {offsets = [64, 0], sizes = [32, 128], strides = [1, 1]} : vector<96x128xf32> to vector<32x128xf32>
    %201 = arith.mulf %199, %180 : vector<32x128xf32>
    %202 = arith.mulf %198, %197 : vector<32x128xf32>
    %203 = arith.addf %201, %202 : vector<32x128xf32>
    %204 = math.tanh %203 : vector<32x128xf32>
    %205 = arith.mulf %200, %204 : vector<32x128xf32>
    %c0_69 = arith.constant 0 : index
    %c0_70 = arith.constant 0 : index
    %206 = vector.load %arg10[%c0_69, %c0_70] : memref<104x16xf32, #tpu.memory_space<vmem>>, vector<104x16xf32>
    %cst_71 = arith.constant dense<0.000000e+00> : vector<104x128xf32>
    %207 = tpu.matmul %206, %14, %cst_71 {dimension_numbers = #tpu.dot_dimension_numbers<[1], [0], [0], [1], [0, 0, 1, 1], [], []>} : vector<104x16xf32>, vector<16x128xf32>, vector<104x128xf32> -> vector<104x128xf32>
    %c0_72 = arith.constant 0 : index
    %c0_73 = arith.constant 0 : index
    %208 = vector.load %arg11[%c0_72, %c0_73] : memref<104x32xf32, #tpu.memory_space<vmem>>, vector<104x32xf32>
    %cst_74 = arith.constant dense<0.000000e+00> : vector<104x128xf32>
    %209 = tpu.matmul %208, %205, %cst_74 {dimension_numbers = #tpu.dot_dimension_numbers<[1], [0], [0], [1], [0, 0, 1, 1], [], []>} : vector<104x32xf32>, vector<32x128xf32>, vector<104x128xf32> -> vector<104x128xf32>
    %210 = arith.addf %207, %209 : vector<104x128xf32>
    %c0_75 = arith.constant 0 : index
    %c0_76 = arith.constant 0 : index
    %211 = vector.load %arg12[%c0_75, %c0_76] : memref<104x1xf32, #tpu.memory_space<vmem>>, vector<104x1xf32>
    %212 = vector.broadcast %211 : vector<104x1xf32> to vector<104x128xf32>
    %213 = arith.addf %210, %212 : vector<104x128xf32>
    %cst_77 = arith.constant 0.000000e+00 : f32
    %214 = vector.broadcast %cst_77 : f32 to vector<104x128xf32>
    %215 = arith.maximumf %213, %214 : vector<104x128xf32>
    %c0_78 = arith.constant 0 : index
    %c0_79 = arith.constant 0 : index
    %216 = vector.load %arg13[%c0_78, %c0_79] : memref<16x104xf32, #tpu.memory_space<vmem>>, vector<16x104xf32>
    %cst_80 = arith.constant dense<0.000000e+00> : vector<16x128xf32>
    %217 = tpu.matmul %216, %215, %cst_80 {dimension_numbers = #tpu.dot_dimension_numbers<[1], [0], [0], [1], [0, 0, 1, 1], [], []>} : vector<16x104xf32>, vector<104x128xf32>, vector<16x128xf32> -> vector<16x128xf32>
    %c0_81 = arith.constant 0 : index
    %c0_82 = arith.constant 0 : index
    %218 = vector.load %arg14[%c0_81, %c0_82] : memref<16x1xf32, #tpu.memory_space<vmem>>, vector<16x1xf32>
    %219 = vector.broadcast %218 : vector<16x1xf32> to vector<16x128xf32>
    %220 = arith.addf %217, %219 : vector<16x128xf32>
    %c0_83 = arith.constant 0 : index
    %c0_84 = arith.constant 0 : index
    %221 = vector.load %arg15[%c0_83, %c0_84] : memref<16x128xf32, #tpu.memory_space<vmem>>, vector<16x128xf32>
    tpu.vector_store %arg15[%c0_83, %c0_84], %220 {strides = array<i32>} : memref<16x128xf32, #tpu.memory_space<vmem>>, vector<16x128xf32>,
    return
  }
  func.func @transform_0(%arg0: i32) -> (i32, i32) {
    %c0_i32 = arith.constant 0 : i32
    %c0_i32_0 = arith.constant 0 : i32
    return %c0_i32, %arg0 : i32, i32
  }
  func.func @transform_1(%arg0: i32) -> (i32, i32, i32) {
    %c0_i32 = arith.constant 0 : i32
    %c0_i32_0 = arith.constant 0 : i32
    %c0_i32_1 = arith.constant 0 : i32
    return %c0_i32, %c0_i32_0, %arg0 : i32, i32, i32
  }
  func.func @transform_2(%arg0: i32) -> (i32, i32) {
    %c0_i32 = arith.constant 0 : i32
    %c0_i32_0 = arith.constant 0 : i32
    %c0_i32_1 = arith.constant 0 : i32
    return %c0_i32, %c0_i32_0 : i32, i32
  }
  func.func @transform_3(%arg0: i32) -> (i32, i32) {
    %c0_i32 = arith.constant 0 : i32
    %c0_i32_0 = arith.constant 0 : i32
    %c0_i32_1 = arith.constant 0 : i32
    return %c0_i32, %c0_i32_0 : i32, i32
  }
  func.func @transform_4(%arg0: i32) -> (i32, i32) {
    %c0_i32 = arith.constant 0 : i32
    %c0_i32_0 = arith.constant 0 : i32
    %c0_i32_1 = arith.constant 0 : i32
    return %c0_i32, %c0_i32_0 : i32, i32
  }
  func.func @transform_5(%arg0: i32) -> (i32, i32) {
    %c0_i32 = arith.constant 0 : i32
    %c0_i32_0 = arith.constant 0 : i32
    %c0_i32_1 = arith.constant 0 : i32
    return %c0_i32, %c0_i32_0 : i32, i32
  }
  func.func @transform_6(%arg0: i32) -> (i32, i32) {
    %c0_i32 = arith.constant 0 : i32
    %c0_i32_0 = arith.constant 0 : i32
    %c0_i32_1 = arith.constant 0 : i32
    return %c0_i32, %c0_i32_0 : i32, i32
  }
  func.func @transform_7(%arg0: i32) -> (i32, i32) {
    %c0_i32 = arith.constant 0 : i32
    %c0_i32_0 = arith.constant 0 : i32
    %c0_i32_1 = arith.constant 0 : i32
    return %c0_i32, %c0_i32_0 : i32, i32
  }
  func.func @transform_8(%arg0: i32) -> (i32, i32) {
    %c0_i32 = arith.constant 0 : i32
    %c0_i32_0 = arith.constant 0 : i32
    %c0_i32_1 = arith.constant 0 : i32
    return %c0_i32, %c0_i32_0 : i32, i32
  }
  func.func @transform_9(%arg0: i32) -> (i32, i32) {
    %c0_i32 = arith.constant 0 : i32
    %c0_i32_0 = arith.constant 0 : i32
    %c0_i32_1 = arith.constant 0 : i32
    return %c0_i32, %c0_i32_0 : i32, i32
  }
  func.func @transform_10(%arg0: i32) -> (i32, i32) {
    %c0_i32 = arith.constant 0 : i32
    %c0_i32_0 = arith.constant 0 : i32
    %c0_i32_1 = arith.constant 0 : i32
    return %c0_i32, %c0_i32_0 : i32, i32
  }
  func.func @transform_11(%arg0: i32) -> (i32, i32) {
    %c0_i32 = arith.constant 0 : i32
    %c0_i32_0 = arith.constant 0 : i32
    %c0_i32_1 = arith.constant 0 : i32
    return %c0_i32, %c0_i32_0 : i32, i32
  }
  func.func @transform_12(%arg0: i32) -> (i32, i32) {
    %c0_i32 = arith.constant 0 : i32
    %c0_i32_0 = arith.constant 0 : i32
    %c0_i32_1 = arith.constant 0 : i32
    return %c0_i32, %c0_i32_0 : i32, i32
  }
  func.func @transform_13(%arg0: i32) -> (i32, i32) {
    %c0_i32 = arith.constant 0 : i32
    %c0_i32_0 = arith.constant 0 : i32
    %c0_i32_1 = arith.constant 0 : i32
    return %c0_i32, %c0_i32_0 : i32, i32
  }
  func.func @transform_14(%arg0: i32) -> (i32, i32) {
    %c0_i32 = arith.constant 0 : i32
    %c0_i32_0 = arith.constant 0 : i32
    return %c0_i32, %arg0 : i32, i32
  }
}

</mosaic_0001>

<bundles_post_ra>
// kernel: pcr_forward.1
= control target key start
LH: loop header
LB: loop body
LE: loop exit
PB: predicated region body
PF: predicated region fallthrough
CT: control target
= control target key end

     0   :  { %vm69_vm0 = vcmask 1043456   ;;  %vm436_vm1 = vcmask 1045504   ;;  %v3508_v0 = vmov 0   ;;  %v3509_v1 = vmov 0.0   ;;  %s5277_s3 = inlined_call_operand.vmem [shape: f32[16,1], index: 3, kind: input, shape index: {}]   ;;  %s5278_s0 = inlined_call_operand.vmem [shape: f32[4,128], index: 0, kind: input, shape index: {}]   ;;  %s5279_s1 = inlined_call_operand.vmem [shape: f32[8,6,128], index: 1, kind: input, shape index: {}]   ;;  %s5280_s2 = inlined_call_operand.vmem [shape: f32[16,4], index: 2, kind: input, shape index: {}]   ;;  %s5281_s7 = inlined_call_operand.vmem [shape: f32[128,32], index: 7, kind: input, shape index: {}]   ;;  %s5282_s6 = inlined_call_operand.vmem [shape: f32[128,6], index: 6, kind: input, shape index: {}]   ;;  %s5283_s8 = inlined_call_operand.vmem [shape: f32[128,1], index: 8, kind: input, shape index: {}]   ;;  %s5284_s5 = inlined_call_operand.vmem [shape: f32[16,1], index: 5, kind: input, shape index: {}]   ;;  %s5285_s11 = inlined_call_operand.vmem [shape: f32[104,1], index: 11, kind: input, shape index: {}]   ;;  %s5286_s13 = inlined_call_operand.vmem [shape: f32[16,1], index: 13, kind: input, shape index: {}]   ;;  %s5287_s4 = inlined_call_operand.vmem [shape: f32[16,16], index: 4, kind: input, shape index: {}]   ;;  %s5288_s9 = inlined_call_operand.vmem [shape: f32[104,16], index: 9, kind: input, shape index: {}]   ;;  %s5289_s10 = inlined_call_operand.vmem [shape: f32[104,32], index: 10, kind: input, shape index: {}]   ;;  %s5290_s12 = inlined_call_operand.vmem [shape: f32[16,104], index: 12, kind: input, shape index: {}]   ;;  %s5291_s14 = inlined_call_operand.vmem [shape: f32[16,128], index: 14, kind: output, shape index: {}]  }
   0x1   :  { %2929 = vset.pattern.permute.xlu0 %v3508_v0  ;;  %2925 = vmatpush.msra.mxu2 %v3509_v1  ;;  %v51_v2 = vld [vmem:[%s5277_s3 + $0x8] sm:$0xff]  ;;  %v47_v3 = vld [vmem:[%s5278_s0] sm:$0xf]  ;;  %vm62_vm2 = vcmask 31744   ;;  %vm273_vm3 = vcmask 261120   ;;  %vm387_vm4 = vcmask 48128  }
   0x2   :  { %v272_v4 = vld [vmem:[%s5279_s1] sm:$0x3f]  ;;  %59 = vperm.xlu0 %2929, %v51_v2   ;;  %2620 = vmatpush.msk.msra.mxu0 %vm69_vm0, %v47_v3  ;;  %v49_v6 = vld [vmem:[%s5280_s2 + $0x8] sm:$0xff]  ;;  %v3625_v10 = vld [vmem:[%s5281_s7 + $0x30] sm:$0xff]  ;;  %vm112_vm5 = vcmask 130048   ;;  %vm2584_vm6 = vcmask 850944  }
   0x3   :  { %v48_v5 = vld [vmem:[%s5280_s2] sm:$0xff]  ;;  %v3605_v7 = vld [vmem:[%s5281_s7 + $0x28] sm:$0xff]  ;;  %2924 = vmatpush.msk.msra.mxu1 %vm69_vm0, %v47_v3  ;;  %2926 = vmatpush.msk.msra.mxu3 %vm436_vm1, %v272_v4  ;;  %5383 = vst [vmem:[#allocation2_spill] sm:$0xff] %v3625_v10  ;;  %v3630_v11 = vld [vmem:[%s5282_s6 + $0x30] sm:$0xff] }
   0x4   :  { %v3612_v8 = vld [vmem:[%s5282_s6 + $0x28] sm:$0xff]  ;;  %2621 = vmatmul.msk.f32.vlgmr.msra.gmra.mxu0 %vm62_vm2, %v48_v5  ;;  %2622 = vmatmul.msk.f32.vlgmr.msra.gmra.mxu1 %vm62_vm2, %v49_v6  ;;  %v50_v9 = vld [vmem:[%s5277_s3] sm:$0xff]  ;;  %v3642_v13 = vld [vmem:[%s5281_s7 + $0x38] sm:$0xff] }
   0x5   :  { %2630 = vmatmul.msk.f32.vlgmr.msra.gmra.mxu2 %vm273_vm3, %v3605_v7  ;;  %2647 = vmatmul.msk.f32.vlgmr.msra.gmra.mxu3 %vm387_vm4, %v3612_v8  ;;  %v177_v12 = vld [vmem:[%s5283_s8 + $0x8] sm:$0xff]  ;;  %5384 = vst [vmem:[#allocation3_spill] sm:$0xff] %v3642_v13  ;;  %v3647_v14 = vld [vmem:[%s5282_s6 + $0x38] sm:$0xff]  ;;  %v180_v15 = vld [vmem:[%s5283_s8 + $0x20] sm:$0xff] }
   0x6   :  { %2930 = vset.pattern.permute.xlu1 %v3508_v0  ;;  %2931 = vset.pattern.permute.xlu2 %v3508_v0  ;;  %v3659_v16 = vld [vmem:[%s5281_s7 + $0x40] sm:$0xff]  ;;  %v191_v18 = vld [vmem:[%s5283_s8 + $0x78] sm:$0xff]  ;;  %v3676_v19 = vld [vmem:[%s5281_s7 + $0x48] sm:$0xff] }
   0x7   :  { %2641 = vmatpush.msk.msrb.mxu0 %vm436_vm1, %v272_v4  ;;  %5385 = vst [vmem:[#allocation4_spill] sm:$0xff] %v3659_v16  ;;  %v3664_v17 = vld [vmem:[%s5282_s6 + $0x40] sm:$0xff]  ;;  %v3681_v20 = vld [vmem:[%s5282_s6 + $0x48] sm:$0xff]  ;;  %v3693_v22 = vld [vmem:[%s5281_s7 + $0x50] sm:$0xff] }
   0x8   :  { %5386 = vst [vmem:[#allocation5_spill] sm:$0xff] %v3676_v19  ;;  %v184_v21 = vld [vmem:[%s5283_s8 + $0x40] sm:$0xff]  ;;  %v3698_v23 = vld [vmem:[%s5282_s6 + $0x50] sm:$0xff]  ;;  %v179_v24 = vld [vmem:[%s5283_s8 + $0x18] sm:$0xff] }
   0x9   :  { %5387 = vst [vmem:[#allocation6_spill] sm:$0xff] %v3681_v20  ;;  %209 = vperm.xlu1 %2930, %v179_v24   ;;  %v101_v25 = vld [vmem:[%s5284_s5 + $0x8] sm:$0xff]  ;;  %v3713_v26 = vld [vmem:[%s5281_s7 + $0x58] sm:$0xff]  ;;  %v3733_v30 = vld [vmem:[%s5281_s7 + $0x60] sm:$0xff] }
   0xa   :  { %54 = vperm.xlu0 %2929, %v50_v9   ;;  %5388 = vst [vmem:[#allocation7_spill] sm:$0xff] %v3693_v22  ;;  %v3718_v27 = vld [vmem:[%s5282_s6 + $0x58] sm:$0xff]  ;;  %v3738_v31 = vld [vmem:[%s5282_s6 + $0x60] sm:$0xff]  ;;  %v181_v32 = vld [vmem:[%s5283_s8 + $0x28] sm:$0xff] }
   0xb   :  { %5389 = vst [vmem:[#allocation8_spill] sm:$0xff] %v3698_v23  ;;  %v183_v28 = vld [vmem:[%s5283_s8 + $0x38] sm:$0xff]  ;;  %v178_v33 = vld [vmem:[%s5283_s8 + $0x10] sm:$0xff]  ;;  %v2474_v34 = vld [vmem:[%s5285_s11 + $0x40] sm:$0xff] }
   0xc   :  { %5390 = vst [vmem:[#allocation9_spill] sm:$0xff] %v3713_v26  ;;  %v2477_v29 = vld [vmem:[%s5285_s11 + $0x58] sm:$0xff]  ;;  %204 = vperm.xlu2 %2931, %v178_v33   ;;  %v3756_v35 = vld [vmem:[%s5281_s7 + $0x68] sm:$0xff]  ;;  %v3776_v39 = vld [vmem:[%s5281_s7 + $0x70] sm:$0xff] }
   0xd   :  { %2631 = vmatmul.msk.f32.gmra.mxu2 %vm273_vm3, %v3625_v10  ;;  %2648 = vmatmul.msk.f32.gmra.mxu3 %vm387_vm4, %v3630_v11  ;;  %5391 = vst [vmem:[#allocation10_spill] sm:$0xff] %v3718_v27  ;;  %v3761_v36 = vld [vmem:[%s5282_s6 + $0x68] sm:$0xff]  ;;  %v187_v37 = vld [vmem:[%s5283_s8 + $0x58] sm:$0xff]  ;;  %v3781_v40 = vld [vmem:[%s5282_s6 + $0x70] sm:$0xff] }
   0xe   :  { %5392 = vst [vmem:[#allocation11_spill] sm:$0xff] %v3733_v30  ;;  %v2471_v38 = vld [vmem:[%s5285_s11 + $0x28] sm:$0xff]  ;;  %v2468_v42 = vld [vmem:[%s5285_s11 + $0x10] sm:$0xff]  ;;  %v3796_v43 = vld [vmem:[%s5281_s7 + $0x78] sm:$0xff] }
   0xf   :  { %5393 = vst [vmem:[#allocation12_spill] sm:$0xff] %v3738_v31  ;;  %v185_v41 = vld [vmem:[%s5283_s8 + $0x48] sm:$0xff]  ;;  %v3801_v44 = vld [vmem:[%s5282_s6 + $0x78] sm:$0xff]  ;;  %v182_v46 = vld [vmem:[%s5283_s8 + $0x30] sm:$0xff] }
  0x10   :  { %5394 = vst [vmem:[#allocation13_spill] sm:$0xff] %v3756_v35  ;;  %v189_v45 = vld [vmem:[%s5283_s8 + $0x68] sm:$0xff]  ;;  %v2572_v47 = vld [vmem:[%s5286_s13] sm:$0xff]  ;;  %v2476_v50 = vld [vmem:[%s5285_s11 + $0x50] sm:$0xff] }
  0x11   :  { %229 = vperm.xlu1 %2930, %v183_v28   ;;  %5395 = vst [vmem:[#allocation14_spill] sm:$0xff] %v3761_v36  ;;  %v100_v48 = vld [vmem:[%s5284_s5] sm:$0xff]  ;;  %v186_v51 = vld [vmem:[%s5283_s8 + $0x50] sm:$0xff]  ;;  %v2473_v52 = vld [vmem:[%s5285_s11 + $0x38] sm:$0xff] }
  0x12   :  { %199 = vperm.xlu0 %2929, %v177_v12   ;;  %5396 = vst [vmem:[#allocation15_spill] sm:$0xff] %v3776_v39  ;;  %v176_v49 = vld [vmem:[%s5283_s8] sm:$0xff]  ;;  %v2692_v53 = vld [vmem:[%s5279_s1 + $0x10] sm:$0x3f]  ;;  %v3856_v59 = vld [vmem:[%s5282_s6 + $0x8] sm:$0xff] }
  0x13   :  { %5397 = vst [vmem:[#allocation16_spill] sm:$0xff] %v3781_v40  ;;  %2709 = vmatpush.msk.msrb.mxu3 %vm436_vm1, %v2692_v53  ;;  %v190_v54 = vld [vmem:[%s5283_s8 + $0x70] sm:$0xff]  ;;  %v3841_v55 = vld [vmem:[%s5282_s6] sm:$0xff]  ;;  %v2467_v63 = vld [vmem:[%s5285_s11 + $0x8] sm:$0xff] }
  0x14   :  { %5398 = vst [vmem:[#allocation17_spill] sm:$0xff] %v3796_v43  ;;  %224 = vperm.xlu2 %2931, %v182_v46   ;;  %2642 = vmatmul.msk.f32.vlgmr.msrb.gmra.mxu0 %vm387_vm4, %v3841_v55  ;;  %v2470_v57 = vld [vmem:[%s5285_s11 + $0x20] sm:$0xff]  ;;  %v3871_v4 = vld [vmem:[%s5282_s6 + $0x10] sm:$0xff]  ;;  %v2573_v12 = vld [vmem:[%s5286_s13 + $0x8] sm:$0xff] }
  0x15   :  { %2632 = vmatmul.msk.f32.gmra.mxu2 %vm273_vm3, %v3642_v13  ;;  %2649 = vmatmul.msk.f32.gmra.mxu3 %vm387_vm4, %v3647_v14  ;;  %5399 = vst [vmem:[#allocation18_spill] sm:$0xff] %v3801_v44  ;;  %v188_v58 = vld [vmem:[%s5283_s8 + $0x60] sm:$0xff]  ;;  %v2469_v28 = vld [vmem:[%s5285_s11 + $0x18] sm:$0xff]  ;;  %v3940_v33 = vld [vmem:[%s5281_s7 + $0x10] sm:$0xff] }
  0x16   :  { %v2478_v3 = vld [vmem:[%s5285_s11 + $0x60] sm:$0xff] }
  0x17   :  { %v98_v9 = vld [vmem:[%s5287_s4] sm:$0xff] }
  0x18   :  { %v3907_v24 = vld [vmem:[%s5282_s6 + $0x20] sm:$0xff] }
  0x19   :  { %219 = vperm.xlu1 %2930, %v181_v32   ;;  %v2466_v32 = vld [vmem:[%s5285_s11] sm:$0xff] }
  0x1a   :  { %214 = vperm.xlu0 %2929, %v180_v15   ;;  %v2475_v15 = vld [vmem:[%s5285_s11 + $0x48] sm:$0xff] }
  0x1c   :  { %194 = vperm.xlu2 %2931, %v176_v49   ;;  %2643 = vmatmul.msk.f32.gmra.mxu0 %vm387_vm4, %v3856_v59 }
  0x1d   :  { %2633 = vmatmul.msk.f32.gmra.mxu2 %vm273_vm3, %v3659_v16  ;;  %2650 = vmatmul.msk.f32.gmra.mxu3 %vm387_vm4, %v3664_v17 }
  0x21   :  { %249 = vperm.xlu1 %2930, %v187_v37   ;;  %v3958_v37 = vld [vmem:[%s5281_s7 + $0x20] sm:$0xff] }
  0x22   :  { %269 = vperm.xlu0 %2929, %v191_v18   ;;  %v3891_v18 = vld [vmem:[%s5282_s6 + $0x18] sm:$0xff] }
  0x24   :  { %244 = vperm.xlu2 %2931, %v186_v51   ;;  %2644 = vmatmul.msk.f32.gmra.mxu0 %vm387_vm4, %v3871_v4 }
  0x25   :  { %2634 = vmatmul.msk.f32.gmra.mxu2 %vm273_vm3, %v3676_v19  ;;  %2651 = vmatmul.msk.f32.gmra.mxu3 %vm387_vm4, %v3681_v20 }
  0x29   :  { %239 = vperm.xlu1 %2930, %v185_v41  }
  0x2a   :  { %234 = vperm.xlu0 %2929, %v184_v21   ;;  %v2472_v21 = vld [vmem:[%s5285_s11 + $0x30] sm:$0xff] }
  0x2c   :  { %264 = vperm.xlu2 %2931, %v190_v54   ;;  %2645 = vmatmul.msk.f32.gmra.mxu0 %vm387_vm4, %v3891_v18 }
  0x2d   :  { %2635 = vmatmul.msk.f32.gmra.mxu2 %vm273_vm3, %v3693_v22  ;;  %2652 = vmatmul.msk.f32.gmra.mxu3 %vm387_vm4, %v3698_v23 }
  0x31   :  { %259 = vperm.xlu1 %2930, %v189_v45  }
  0x32   :  { %109 = vperm.xlu0 %2929, %v101_v25   ;;  %v3916_v25 = vld [vmem:[%s5281_s7] sm:$0xff] }
  0x34   :  { %254 = vperm.xlu2 %2931, %v188_v58   ;;  %2646 = vmatmul.msk.f32.gmra.mxu0 %vm387_vm4, %v3907_v24 }
  0x35   :  { %2636 = vmatmul.msk.f32.gmra.mxu2 %vm273_vm3, %v3713_v26  ;;  %2653 = vmatmul.msk.f32.gmra.mxu3 %vm387_vm4, %v3718_v27 }
  0x39   :  { %104 = vperm.xlu1 %2930, %v100_v48  }
  0x3a   :  { %2536 = vperm.xlu0 %2929, %v2477_v29   ;;  %v3928_v29 = vld [vmem:[%s5281_s7 + $0x8] sm:$0xff] }
  0x3c   :  { %2541 = vperm.xlu2 %2931, %v2478_v3  }
  0x3d   :  { %2637 = vmatmul.msk.f32.gmra.mxu2 %vm273_vm3, %v3733_v30  ;;  %2654 = vmatmul.msk.f32.gmra.mxu3 %vm387_vm4, %v3738_v31 }
  0x41   :  { %2531 = vperm.xlu1 %2930, %v2476_v50  }
  0x42   :  { %2521 = vperm.xlu0 %2929, %v2474_v34   ;;  %v3949_v34 = vld [vmem:[%s5281_s7 + $0x18] sm:$0xff] }
  0x44   :  { %2526 = vperm.xlu2 %2931, %v2475_v15  }
  0x45   :  { %2638 = vmatmul.msk.f32.gmra.mxu2 %vm273_vm3, %v3756_v35  ;;  %2655 = vmatmul.msk.f32.gmra.mxu3 %vm387_vm4, %v3761_v36 }
  0x49   :  { %2516 = vperm.xlu1 %2930, %v2473_v52  }
  0x4a   :  { %2506 = vperm.xlu0 %2929, %v2471_v38  }
  0x4c   :  { %2511 = vperm.xlu2 %2931, %v2472_v21  }
  0x4d   :  { %2639 = vmatmul.msk.f32.gmra.mxu2 %vm273_vm3, %v3776_v39  ;;  %2656 = vmatmul.msk.f32.gmra.mxu3 %vm387_vm4, %v3781_v40 }
  0x51   :  { %2501 = vperm.xlu1 %2930, %v2470_v57  }
  0x52   :  { %2491 = vperm.xlu0 %2929, %v2468_v42  }
  0x54   :  { %2496 = vperm.xlu2 %2931, %v2469_v28  }
  0x55   :  { %2640 = vmatmul.msk.f32.gmra.mxu2 %vm273_vm3, %v3796_v43  ;;  %2657 = vmatmul.msk.f32.gmra.mxu3 %vm387_vm4, %v3801_v44 }
  0x59   :  { %2486 = vperm.xlu1 %2930, %v2467_v63  }
  0x5a   :  { %2576 = vperm.xlu0 %2929, %v2572_v47  }
  0x5c   :  { %2481 = vperm.xlu2 %2931, %v2466_v32  }
  0x5d   :  { %2710 = vmatmul.msk.f32.vlgmr.msrb.gmra.mxu3 %vm387_vm4, %v3841_v55 }
  0x61   :  { %2581 = vperm.xlu1 %2930, %v2573_v12  }
  0x65   :  { %2711 = vmatmul.msk.f32.gmra.mxu3 %vm387_vm4, %v3856_v59 }
  0x66   :  { %v4022_v12 = vpop.permute.xlu2 %204 }
  0x6d   :  { %2712 = vmatmul.msk.f32.gmra.mxu3 %vm387_vm4, %v3871_v4 }
  0x6e   :  { %v4030_v35 = vpop.permute.xlu2 %224 }
  0x6f   :  { %5404 = vst [vmem:[#allocation23_spill] sm:$0xff] %v4030_v35 }
  0x74   :  { %v60_v56 = vpop.permute.xlu0 %59 }
  0x75   :  { %2713 = vmatmul.msk.f32.gmra.mxu3 %vm387_vm4, %v3891_v18 }
  0x7b   :  { %v3968_v46 = vpop.permute.xlu1 %209 }
  0x7c   :  { %v55_v60 = vpop.permute.xlu0 %54 }
  0x7d   :  { %2714 = vmatmul.msk.f32.gmra.mxu3 %vm387_vm4, %v3907_v24 }
  0x81   :  { %v90_v61 = vpop.f32.mrf.mxu0  ;;  %v93_v62 = vpop.f32.mrf.mxu1 }
  0x82   :  { %v91_v0 = vadd.f32 %v90_v61, %v55_v60  ;;  %v94_v2 = vadd.f32 %v93_v62, %v60_v56  ;;  %v2760_v60 = vld [vmem:[%s5279_s1 + $0x20] sm:$0x3f]  ;;  %v2828_v61 = vld [vmem:[%s5279_s1 + $0x30] sm:$0x3f] }
  0x83   :  { %v3972_v49 = vpop.permute.xlu1 %229  ;;  %2777 = vmatpush.msk.msra.mxu3 %vm436_vm1, %v2760_v60 }
  0x84   :  { %v97_v5 = vmax.f32 %v94_v2, 0.0  ;;  %v96_v6 = vmax.f32 %v91_v0, 0.0  ;;  %5400 = vst [vmem:[#allocation19_spill] sm:$0xff] %v3972_v49  ;;  %v3982_v52 = vpop.permute.xlu0 %199 }
  0x85   :  { %2715 = vmatmul.msk.f32.gmra.mxu3 %vm387_vm4, %v3612_v8  ;;  %5401 = vst [vmem:[#allocation20_spill] sm:$0xff] %v3982_v52 }
  0x86   :  { %133 = vmatpush.msrb.mxu1 %v97_v5  ;;  %2845 = vmatpush.msk.msrb.mxu3 %vm436_vm1, %v2828_v61 }
  0x88   :  { %134 = vmatpush.msrb.mxu1 %v96_v6  ;;  %v354_v38 = vpop.f32.mrf.mxu2  ;;  %v472_v41 = vpop.f32.mrf.mxu3 }
  0x89   :  { %2623 = vmatmul.msk.f32.vlgmr.msrb.gmra.mxu1 %vm112_vm5, %v98_v9  ;;  %v473_v19 = vadd.f32 %v472_v41, %v354_v38 }
  0x8a   :  { %337 = vmatpush.msra.mxu1 %v3509_v1  ;;  %v99_v1 = vld [vmem:[%s5287_s4 + $0x8] sm:$0xff] }
  0x8b   :  { %v3984_v53 = vpop.permute.xlu1 %219 }
  0x8c   :  { %5402 = vst [vmem:[#allocation21_spill] sm:$0xff] %v3984_v53  ;;  %v3992_v57 = vpop.permute.xlu0 %214  ;;  %v510_v16 = vadd.f32 %v473_v19, %v3984_v53 }
  0x8d   :  { %2716 = vmatmul.msk.f32.gmra.mxu3 %vm387_vm4, %v3630_v11  ;;  %5403 = vst [vmem:[#allocation22_spill] sm:$0xff] %v3992_v57 }
  0x90   :  { %v357_v42 = vpop.f32.mrf.mxu2  ;;  %v475_v45 = vpop.f32.mrf.mxu3 }
  0x91   :  { %2624 = vmatmul.msk.f32.gmra.mxu1 %vm112_vm5, %v99_v1  ;;  %v457_v28 = vpop.f32.mrf.mxu0 }
  0x93   :  { %v3994_v58 = vpop.permute.xlu1 %249 }
  0x94   :  { %v4010_v0 = vpop.permute.xlu0 %269 }
  0x95   :  { %2717 = vmatmul.msk.f32.gmra.mxu3 %vm387_vm4, %v3647_v14 }
  0x98   :  { %v360_v47 = vpop.f32.mrf.mxu2  ;;  %v478_v48 = vpop.f32.mrf.mxu3 }
  0x99   :  { %2625 = vmatmul.msk.f32.vlgmr.msra.gmra.mxu1 %vm273_vm3, %v3916_v25 }
  0x9b   :  { %v4012_v2 = vpop.permute.xlu1 %239 }
  0x9c   :  { %v4016_v6 = vpop.permute.xlu0 %234 }
  0x9d   :  { %2718 = vmatmul.msk.f32.gmra.mxu3 %vm387_vm4, %v3664_v17 }
  0xa0   :  { %v3976_v50 = vpop.f32.mrf.mxu2  ;;  %v3978_v51 = vpop.f32.mrf.mxu3 }
  0xa1   :  { %2626 = vmatmul.msk.f32.gmra.mxu1 %vm273_vm3, %v3928_v29 }
  0xa3   :  { %v4018_v9 = vpop.permute.xlu1 %259 }
  0xa4   :  { %v110_v32 = vpop.permute.xlu0 %109 }
  0xa5   :  { %2719 = vmatmul.msk.f32.gmra.mxu3 %vm387_vm4, %v3681_v20 }
  0xa8   :  { %v3988_v54 = vpop.f32.mrf.mxu2  ;;  %v3990_v56 = vpop.f32.mrf.mxu3 }
  0xa9   :  { %2627 = vmatmul.msk.f32.gmra.mxu1 %vm273_vm3, %v3940_v33 }
  0xab   :  { %v105_v60 = vpop.permute.xlu1 %104 }
  0xad   :  { %2720 = vmatmul.msk.f32.gmra.mxu3 %vm387_vm4, %v3698_v23 }
  0xb0   :  { %v4006_v62 = vpop.f32.mrf.mxu2  ;;  %v4008_v63 = vpop.f32.mrf.mxu3 }
  0xb1   :  { %2628 = vmatmul.msk.f32.gmra.mxu1 %vm273_vm3, %v3949_v34 }
  0xb5   :  { %2721 = vmatmul.msk.f32.gmra.mxu3 %vm387_vm4, %v3718_v27  ;;  %v526_v27 = vsub.f32 0.0, %v510_v16 }
  0xb7   :  { %v543_v19 = vmul.f32 1.442695, %v526_v27 }
  0xb8   :  { %v372_v3 = vpop.f32.mrf.mxu2  ;;  %v490_v5 = vpop.f32.mrf.mxu3 }
  0xb9   :  { %2629 = vmatmul.msk.f32.gmra.mxu1 %vm273_vm3, %v3958_v37  ;;  %2932 = vpow2.f32 %v543_v19 }
  0xbd   :  { %2722 = vmatmul.msk.f32.gmra.mxu3 %vm387_vm4, %v3738_v31  ;;  %v4034_v31 = vpop.permute.xlu2 %194 }
  0xbe   :  { %5405 = vst [vmem:[#allocation24_spill] sm:$0xff] %v4034_v31 }
  0xc0   :  { %v4024_v1 = vpop.f32.mrf.mxu2  ;;  %v4026_v21 = vpop.f32.mrf.mxu3 }
  0xc5   :  { %2723 = vmatmul.msk.f32.gmra.mxu3 %vm387_vm4, %v3761_v36  ;;  %v460_v36 = vpop.f32.mrf.mxu0  ;;  %v4042_v41 = vpop.permute.xlu2 %244 }
  0xc8   :  { %v378_v26 = vpop.f32.mrf.mxu2 }
  0xcd   :  { %2724 = vmatmul.msk.f32.gmra.mxu3 %vm387_vm4, %v3781_v40  ;;  %v496_v40 = vpop.f32.mrf.mxu3 }
  0xd5   :  { %2725 = vmatmul.msk.f32.gmra.mxu3 %vm387_vm4, %v3801_v44 }
  0xdd   :  { %2778 = vmatmul.msk.f32.vlgmr.msra.gmra.mxu3 %vm387_vm4, %v3841_v55 }
  0xe5   :  { %2779 = vmatmul.msk.f32.gmra.mxu3 %vm387_vm4, %v3856_v59 }
  0xed   :  { %2780 = vmatmul.msk.f32.gmra.mxu3 %vm387_vm4, %v3871_v4 }
  0xf5   :  { %2781 = vmatmul.msk.f32.gmra.mxu3 %vm387_vm4, %v3891_v18 }
  0xfd   :  { %2782 = vmatmul.msk.f32.gmra.mxu3 %vm387_vm4, %v3907_v24 }
 0x105   :  { %2783 = vmatmul.msk.f32.gmra.mxu3 %vm387_vm4, %v3612_v8 }
 0x106   :  { %v136_v15 = vpop.f32.mrf.mxu1 }
 0x107   :  { %v137_v43 = vadd.f32 %v136_v15, %v105_v60  ;;  %v476_v15 = vadd.f32 %v475_v45, %v357_v42  ;;  %v479_v60 = vadd.f32 %v478_v48, %v360_v47 }
 0x109   :  { %v142_v44 = vmax.f32 %v137_v43, 0.0  ;;  %v381_v43 = vpop.f32.mrf.mxu2  ;;  %v512_v38 = vadd.f32 %v479_v60, %v3972_v49 }
 0x10e   :  { %v139_v61 = vpop.f32.mrf.mxu1 }
 0x10f   :  { %v140_v39 = vadd.f32 %v139_v61, %v110_v32  ;;  %v463_v61 = vpop.f32.mrf.mxu0 }
 0x111   :  { %v143_v30 = vmax.f32 %v140_v39, 0.0  ;;  %v384_v16 = vpop.f32.mrf.mxu2 }
 0x113   :  { %2424 = vmatpush.msra.mxu3 %v143_v30  ;;  %v499_v30 = vpop.f32.mrf.mxu3 }
 0x114   :  { %2784 = vmatmul.msk.f32.gmra.mxu3 %vm387_vm4, %v3630_v11  ;;  %v500_v27 = vadd.f32 %v499_v30, %v381_v43 }
 0x115   :  { %2425 = vmatpush.msra.mxu3 %v142_v44  ;;  %v511_v44 = vadd.f32 %v476_v15, %v4030_v35  ;;  %v491_v35 = vadd.f32 %v490_v5, %v372_v3 }
 0x116   :  { %v339_v22 = vpop.f32.mrf.mxu1 }
 0x117   :  { %v527_v42 = vsub.f32 0.0, %v511_v44  ;;  %v458_v47 = vadd.f32 %v457_v28, %v339_v22  ;;  %v466_v49 = vpop.f32.mrf.mxu0  ;;  %v516_v43 = vadd.f32 %v491_v35, %v3994_v58 }
 0x11b   :  { %v502_v48 = vpop.f32.mrf.mxu3 }
 0x11c   :  { %v503_v20 = vadd.f32 %v502_v48, %v384_v16  ;;  %2785 = vmatmul.msk.f32.gmra.mxu3 %vm387_vm4, %v3647_v14 }
 0x11e   :  { %v342_v39 = vpop.f32.mrf.mxu1 }
 0x11f   :  { %v461_v32 = vadd.f32 %v460_v36, %v342_v39  ;;  %v528_v36 = vsub.f32 0.0, %v512_v38  ;;  %v545_v39 = vmul.f32 1.442695, %v527_v42  ;;  %v532_v42 = vsub.f32 0.0, %v516_v43 }
 0x121   :  { %v506_v13 = vadd.f32 %v461_v32, %v3982_v52  ;;  %v497_v32 = vadd.f32 %v496_v40, %v378_v26  ;;  %v547_v10 = vmul.f32 1.442695, %v528_v36  ;;  %2934 = vpow2.f32 %v545_v39  ;;  %v4053_v40 = vpop.permute.xlu2 %264 }
 0x122   :  { %v519_v5 = vadd.f32 %v500_v27, %v4053_v40 }
 0x123   :  { %v522_v45 = vsub.f32 0.0, %v506_v13  ;;  %v505_v13 = vadd.f32 %v458_v47, %v4034_v31  ;;  %v518_v26 = vadd.f32 %v497_v32, %v4018_v9  ;;  %v555_v32 = vmul.f32 1.442695, %v532_v42 }
 0x125   :  { %v535_v60 = vmul.f32 1.442695, %v522_v45  ;;  %v521_v30 = vsub.f32 0.0, %v505_v13 }
 0x126   :  { %v345_v53 = vpop.f32.mrf.mxu1 }
 0x127   :  { %v464_v23 = vadd.f32 %v463_v61, %v345_v53  ;;  %v2933_v53 = vpop.eup %2932  ;;  %2936 = vpow2.f32 %v535_v60  ;;  %v533_v35 = vmul.f32 1.442695, %v521_v30 }
 0x128   :  { %v562_v44 = vadd.f32 1.0, %v2933_v53  ;;  %v2935_v38 = vpop.eup %2934 }
 0x129   :  { %v507_v15 = vadd.f32 %v464_v23, %v4022_v12  ;;  %v488_v23 = vadd.f32 %v4008_v63, %v4006_v62  ;;  %v485_v62 = vadd.f32 %v3990_v56, %v3988_v54  ;;  %v563_v48 = vadd.f32 1.0, %v2935_v38 }
 0x12a   :  { %v494_v38 = vadd.f32 %v4026_v21, %v4024_v1 }
 0x12b   :  { %v523_v52 = vsub.f32 0.0, %v507_v15  ;;  %v515_v63 = vadd.f32 %v488_v23, %v4042_v41  ;;  %v514_v15 = vadd.f32 %v485_v62, %v4012_v2 }
 0x12d   :  { %v537_v22 = vmul.f32 1.442695, %v523_v52  ;;  %v520_v52 = vadd.f32 %v503_v20, %v4010_v0  ;;  %v482_v20 = vadd.f32 %v3978_v51, %v3976_v50  ;;  %v531_v56 = vsub.f32 0.0, %v515_v63 }
 0x12e   :  { %v348_v3 = vpop.f32.mrf.mxu1 }
 0x12f   :  { %2938 = vpow2.f32 %v537_v22  ;;  %v467_v28 = vadd.f32 %v466_v49, %v348_v3  ;;  %v2937_v49 = vpop.eup %2936  ;;  %v513_v22 = vadd.f32 %v482_v20, %v4016_v6  ;;  %v553_v23 = vmul.f32 1.442695, %v531_v56 }
 0x130   :  { %2940 = vpow2.f32 %v547_v10  ;;  %v469_v10 = vpop.f32.mrf.mxu0  ;;  %v558_v27 = vadd.f32 1.0, %v2937_v49 }
 0x131   :  { %v508_v61 = vadd.f32 %v467_v28, %v3968_v46  ;;  %2942 = vtanh.f32 %v518_v26  ;;  %v530_v26 = vsub.f32 0.0, %v514_v15  ;;  %v2658_v28 = vld [vmem:[%s5279_s1 + $0x8] sm:$0x3f] }
 0x132   :  { %2944 = vtanh.f32 %v519_v5  ;;  %2675 = vmatpush.msk.msrb.mxu1 %vm436_vm1, %v2658_v28 }
 0x133   :  { %v524_v19 = vsub.f32 0.0, %v508_v61  ;;  %2946 = vtanh.f32 %v520_v52  ;;  %v529_v52 = vsub.f32 0.0, %v513_v22  ;;  %v551_v62 = vmul.f32 1.442695, %v530_v26  ;;  %2676 = vmatmul.msk.f32.vlgmr.msrb.gmra.mxu1 %vm387_vm4, %v3841_v55 }
 0x134   :  { %2948 = vrcp.f32 %v562_v44 }
 0x135   :  { %v2939_v45 = vpop.eup %2938  ;;  %v539_v36 = vmul.f32 1.442695, %v524_v19  ;;  %v549_v49 = vmul.f32 1.442695, %v529_v52 }
 0x136   :  { %v2941_v47 = vpop.eup %2940  ;;  %v559_v16 = vadd.f32 1.0, %v2939_v45  ;;  %v351_v54 = vpop.f32.mrf.mxu1 }
 0x137   :  { %2950 = vpow2.f32 %v539_v36  ;;  %v470_v39 = vadd.f32 %v469_v10, %v351_v54  ;;  %v2943_v60 = vpop.eup %2942  ;;  %v564_v51 = vadd.f32 1.0, %v2941_v47  ;;  %v4075_v10 = vpop.permute.xlu2 %254 }
 0x138   :  { %2952 = vpow2.f32 %v533_v35  ;;  %v2945_v13 = vpop.eup %2944  ;;  %v517_v47 = vadd.f32 %v494_v38, %v4075_v10 }
 0x139   :  { %2954 = vrcp.f32 %v559_v16  ;;  %v509_v50 = vadd.f32 %v470_v39, %v3992_v57  ;;  %v2947_v53 = vpop.eup %2946 }
 0x13a   :  { %2956 = vrcp.f32 %v563_v48  ;;  %v2949_v3 = vpop.eup %2948 }
 0x13b   :  { %v525_v5 = vsub.f32 0.0, %v509_v50  ;;  %2958 = vpow2.f32 %v555_v32  ;;  %2677 = vmatmul.msk.f32.gmra.mxu1 %vm387_vm4, %v3856_v59 }
 0x13c   :  { %2960 = vrcp.f32 %v558_v27  ;;  %v586_v27 = vmul.f32 0.0, %v2949_v3 }
 0x13d   :  { %v2951_v43 = vpop.eup %2950  ;;  %v541_v30 = vmul.f32 1.442695, %v525_v5  ;;  %2962 = vrcp.f32 %v564_v51 }
 0x13e   :  { %v2953_v61 = vpop.eup %2952  ;;  %v560_v44 = vadd.f32 1.0, %v2951_v43  ;;  %2964 = vpow2.f32 %v553_v23 }
 0x13f   :  { %v2955_v63 = vpop.eup %2954  ;;  %2966 = vpow2.f32 %v541_v30  ;;  %v557_v45 = vadd.f32 1.0, %v2953_v61 }
 0x140   :  { %v2957_v19 = vpop.eup %2956  ;;  %2968 = vrcp.f32 %v560_v44  ;;  %v591_v20 = vmul.f32 %v2955_v63, %v2945_v13 }
 0x141   :  { %v2959_v42 = vpop.eup %2958  ;;  %2970 = vpow2.f32 %v551_v62  ;;  %v587_v55 = vmul.f32 0.0, %v2957_v19 }
 0x142   :  { %v2961_v35 = vpop.eup %2960  ;;  %2972 = vpow2.f32 %v549_v49  ;;  %v568_v1 = vadd.f32 1.0, %v2959_v42 }
 0x143   :  { %v2963_v36 = vpop.eup %2962  ;;  %v590_v56 = vmul.f32 %v2961_v35, %v2943_v60  ;;  %2974 = vrcp.f32 %v557_v45  ;;  %v4078_v15 = vadd.f32 %v591_v20, %v587_v55  ;;  %2678 = vmatmul.msk.f32.gmra.mxu1 %vm387_vm4, %v3871_v4  ;;  %v5411_v45 = vld [vmem:[#allocation4_spill] sm:$0xff]  ;;  %v5414_v20 = vld [vmem:[#allocation14_spill] sm:$0xff] }
 0x144   :  { %v2965_v16 = vpop.eup %2964  ;;  %2976 = vtanh.f32 %v517_v47  ;;  %v588_v32 = vmul.f32 0.0, %v2963_v36  ;;  %v5415_v36 = vld [vmem:[#allocation7_spill] sm:$0xff]  ;;  %v5416_v47 = vld [vmem:[#allocation16_spill] sm:$0xff]  ;;  %v5418_v55 = vld [vmem:[#allocation18_spill] sm:$0xff] }
 0x145   :  { %v2967_v54 = vpop.eup %2966  ;;  %v567_v22 = vadd.f32 1.0, %v2965_v16  ;;  %v4084_v60 = vadd.f32 %v590_v56, %v586_v27  ;;  %v5417_v16 = vld [vmem:[#allocation9_spill] sm:$0xff]  ;;  %v5419_v56 = vld [vmem:[#allocation11_spill] sm:$0xff] }
 0x146   :  { %v2969_v21 = vpop.eup %2968  ;;  %v561_v48 = vadd.f32 1.0, %v2967_v54 }
 0x147   :  { %v592_v39 = vmul.f32 %v2969_v21, %v2947_v53  ;;  %v2971_v13 = vpop.eup %2970  ;;  %v5420_v21 = vld [vmem:[#allocation13_spill] sm:$0xff] }
 0x148   :  { %2978 = vrcp.f32 %v561_v48  ;;  %v2973_v51 = vpop.eup %2972  ;;  %v566_v23 = vadd.f32 1.0, %v2971_v13  ;;  %v5421_v48 = vld [vmem:[#allocation15_spill] sm:$0xff] }
 0x149   :  { %2980 = vrcp.f32 %v568_v1  ;;  %v4082_v50 = vadd.f32 %v592_v39, %v588_v32  ;;  %v2975_v26 = vpop.eup %2974  ;;  %v565_v3 = vadd.f32 1.0, %v2973_v51  ;;  %v5422_v32 = vld [vmem:[#allocation17_spill] sm:$0xff] }
 0x14a   :  { %2982 = vtanh.f32 %v4078_v15  ;;  %v2977_v59 = vpop.eup %2976 }
 0x14b   :  { %2984 = vtanh.f32 %v4082_v50  ;;  %v589_v43 = vmul.f32 %v2977_v59, %v2975_v26  ;;  %2679 = vmatmul.msk.f32.gmra.mxu1 %vm387_vm4, %v3891_v18  ;;  %v5407_v18 = vld [vmem:[#allocation2_spill] sm:$0xff] }
 0x14c   :  { %2986 = vrcp.f32 %v567_v22 }
 0x14d   :  { %2988 = vtanh.f32 %v4084_v60 }
 0x14e   :  { %v2979_v53 = vpop.eup %2978  ;;  %2990 = vrcp.f32 %v566_v23 }
 0x14f   :  { %v2981_v5 = vpop.eup %2980  ;;  %v585_v28 = vmul.f32 0.0, %v2979_v53  ;;  %2992 = vrcp.f32 %v565_v3 }
 0x150   :  { %v2983_v52 = vpop.eup %2982 }
 0x151   :  { %v2985_v30 = vpop.eup %2984  ;;  %v4091_v61 = vadd.f32 %v589_v43, %v585_v28 }
 0x152   :  { %v2987_v44 = vpop.eup %2986  ;;  %v604_v62 = vmul.f32 %v2985_v30, %v2981_v5 }
 0x153   :  { %v2989_v63 = vpop.eup %2988  ;;  %2994 = vtanh.f32 %v4091_v61  ;;  %v603_v38 = vmul.f32 %v2987_v44, %v2983_v52  ;;  %2680 = vmatmul.msk.f32.gmra.mxu1 %vm387_vm4, %v3907_v24  ;;  %v5409_v24 = vld [vmem:[#allocation3_spill] sm:$0xff] }
 0x154   :  { %619 = vmatpush.msra.mxu0 %v604_v62  ;;  %v2991_v19 = vpop.eup %2990 }
 0x155   :  { %v602_v42 = vmul.f32 %v2991_v19, %v2989_v63  ;;  %v2993_v4 = vpop.eup %2992 }
 0x156   :  { %620 = vmatpush.msra.mxu0 %v603_v38 }
 0x158   :  { %621 = vmatpush.msra.mxu0 %v602_v42 }
 0x159   :  { %v2995_v49 = vpop.eup %2994 }
 0x15a   :  { %v601_v35 = vmul.f32 %v2995_v49, %v2993_v4 }
 0x15b   :  { %2681 = vmatmul.msk.f32.gmra.mxu1 %vm387_vm4, %v3612_v8  ;;  %v5406_v8 = vld [vmem:[#allocation6_spill] sm:$0xff] }
 0x15c   :  { %622 = vmatpush.msra.mxu0 %v601_v35 }
 0x15d   :  { %2659 = vmatmul.msk.f32.vlgmr.msra.gmra.mxu0 %vm273_vm3, %v3916_v25 }
 0x163   :  { %2682 = vmatmul.msk.f32.gmra.mxu1 %vm387_vm4, %v3630_v11  ;;  %v5408_v11 = vld [vmem:[#allocation8_spill] sm:$0xff] }
 0x165   :  { %2660 = vmatmul.msk.f32.gmra.mxu0 %vm273_vm3, %v3928_v29 }
 0x16b   :  { %2683 = vmatmul.msk.f32.gmra.mxu1 %vm387_vm4, %v3647_v14  ;;  %v5410_v14 = vld [vmem:[#allocation10_spill] sm:$0xff] }
 0x16d   :  { %2661 = vmatmul.msk.f32.gmra.mxu0 %vm273_vm3, %v3940_v33 }
 0x173   :  { %2684 = vmatmul.msk.f32.gmra.mxu1 %vm387_vm4, %v3664_v17  ;;  %v5412_v17 = vld [vmem:[#allocation12_spill] sm:$0xff] }
 0x175   :  { %2662 = vmatmul.msk.f32.gmra.mxu0 %vm273_vm3, %v3949_v34 }
 0x17b   :  { %2685 = vmatmul.msk.f32.gmra.mxu1 %vm387_vm4, %v5406_v8 }
 0x17d   :  { %2663 = vmatmul.msk.f32.gmra.mxu0 %vm273_vm3, %v3958_v37 }
 0x183   :  { %2686 = vmatmul.msk.f32.gmra.mxu1 %vm387_vm4, %v5408_v11  ;;  %v5423_v11 = vld [vmem:[#allocation20_spill] sm:$0xff] }
 0x185   :  { %2664 = vmatmul.msk.f32.gmra.mxu0 %vm273_vm3, %v3605_v7  ;;  %v5413_v7 = vld [vmem:[#allocation5_spill] sm:$0xff] }
 0x18b   :  { %2687 = vmatmul.msk.f32.gmra.mxu1 %vm387_vm4, %v5410_v14 }
 0x18d   :  { %2665 = vmatmul.msk.f32.gmra.mxu0 %vm273_vm3, %v5407_v18 }
 0x193   :  { %2688 = vmatmul.msk.f32.gmra.mxu1 %vm387_vm4, %v5412_v17 }
 0x195   :  { %2666 = vmatmul.msk.f32.gmra.mxu0 %vm273_vm3, %v5409_v24 }
 0x19b   :  { %2689 = vmatmul.msk.f32.gmra.mxu1 %vm387_vm4, %v5414_v20 }
 0x19d   :  { %2667 = vmatmul.msk.f32.gmra.mxu0 %vm273_vm3, %v5411_v45 }
 0x1a3   :  { %2690 = vmatmul.msk.f32.gmra.mxu1 %vm387_vm4, %v5416_v47 }
 0x1a5   :  { %2668 = vmatmul.msk.f32.gmra.mxu0 %vm273_vm3, %v5413_v7 }
 0x1ab   :  { %2691 = vmatmul.msk.f32.gmra.mxu1 %vm387_vm4, %v5418_v55 }
 0x1ad   :  { %2669 = vmatmul.msk.f32.gmra.mxu0 %vm273_vm3, %v5415_v36 }
 0x1b0   :  { %v692_v54 = vpop.f32.mrf.mxu1 }
 0x1b5   :  { %2670 = vmatmul.msk.f32.gmra.mxu0 %vm273_vm3, %v5417_v16 }
 0x1b8   :  { %v695_v1 = vpop.f32.mrf.mxu1 }
 0x1bd   :  { %2671 = vmatmul.msk.f32.gmra.mxu0 %vm273_vm3, %v5419_v56  ;;  %v5424_v56 = vld [vmem:[#allocation21_spill] sm:$0xff] }
 0x1c0   :  { %v698_v39 = vpop.f32.mrf.mxu1 }
 0x1c5   :  { %2672 = vmatmul.msk.f32.gmra.mxu0 %vm273_vm3, %v5420_v21 }
 0x1c8   :  { %v701_v27 = vpop.f32.mrf.mxu1 }
 0x1cd   :  { %2673 = vmatmul.msk.f32.gmra.mxu0 %vm273_vm3, %v5421_v48 }
 0x1d0   :  { %v704_v51 = vpop.f32.mrf.mxu1 }
 0x1d5   :  { %2674 = vmatmul.msk.f32.gmra.mxu0 %vm273_vm3, %v5422_v32 }
 0x1d8   :  { %v707_v26 = vpop.f32.mrf.mxu1 }
 0x1da   :  { %v624_v13 = vpop.f32.mrf.mxu0 }
 0x1db   :  { %v693_v4 = vadd.f32 %v692_v54, %v624_v13 }
 0x1dd   :  { %v740_v8 = vadd.f32 %v693_v4, %v4034_v31 }
 0x1df   :  { %v756_v36 = vsub.f32 0.0, %v740_v8 }
 0x1e0   :  { %v710_v53 = vpop.f32.mrf.mxu1 }
 0x1e2   :  { %v627_v22 = vpop.f32.mrf.mxu0 }
 0x1e3   :  { %v696_v49 = vadd.f32 %v695_v1, %v627_v22 }
 0x1e5   :  { %v741_v24 = vadd.f32 %v696_v49, %v5423_v11 }
 0x1e7   :  { %v757_v55 = vsub.f32 0.0, %v741_v24 }
 0x1e8   :  { %v713_v5 = vpop.f32.mrf.mxu1 }
 0x1e9   :  { %v770_v22 = vmul.f32 1.442695, %v757_v55 }
 0x1ea   :  { %v630_v23 = vpop.f32.mrf.mxu0 }
 0x1eb   :  { %v699_v35 = vadd.f32 %v698_v39, %v630_v23  ;;  %v768_v39 = vmul.f32 1.442695, %v756_v36 }
 0x1ed   :  { %v742_v20 = vadd.f32 %v699_v35, %v4022_v12  ;;  %2996 = vpow2.f32 %v768_v39 }
 0x1ee   :  { %2998 = vpow2.f32 %v770_v22 }
 0x1ef   :  { %v758_v21 = vsub.f32 0.0, %v742_v20 }
 0x1f0   :  { %v4152_v52 = vpop.f32.mrf.mxu1 }
 0x1f2   :  { %v633_v59 = vpop.f32.mrf.mxu0 }
 0x1f3   :  { %v702_v18 = vadd.f32 %v701_v27, %v633_v59  ;;  %v5425_v27 = vld [vmem:[#allocation23_spill] sm:$0xff]  ;;  %v772_v59 = vmul.f32 1.442695, %v758_v21  ;;  %v2997_v8 = vpop.eup %2996 }
 0x1f4   :  { %v792_v36 = vadd.f32 1.0, %v2997_v8 }
 0x1f5   :  { %v743_v47 = vadd.f32 %v702_v18, %v3968_v46  ;;  %3000 = vpow2.f32 %v772_v59 }
 0x1f7   :  { %v759_v32 = vsub.f32 0.0, %v743_v47 }
 0x1f8   :  { %v4154_v44 = vpop.f32.mrf.mxu1 }
 0x1fa   :  { %v636_v3 = vpop.f32.mrf.mxu0 }
 0x1fb   :  { %v705_v14 = vadd.f32 %v704_v51, %v636_v3  ;;  %v5426_v3 = vld [vmem:[#allocation19_spill] sm:$0xff] }
 0x1fd   :  { %v744_v54 = vadd.f32 %v705_v14, %v3992_v57  ;;  %v2999_v14 = vpop.eup %2998 }
 0x1fe   :  { %v3001_v20 = vpop.eup %3000 }
 0x1ff   :  { %v760_v51 = vsub.f32 0.0, %v744_v54  ;;  %v794_v39 = vadd.f32 1.0, %v3001_v20 }
 0x200   :  { %v722_v63 = vpop.f32.mrf.mxu1 }
 0x201   :  { %v776_v49 = vmul.f32 1.442695, %v760_v51 }
 0x202   :  { %v639_v28 = vpop.f32.mrf.mxu0 }
 0x203   :  { %v708_v45 = vadd.f32 %v707_v26, %v639_v28 }
 0x205   :  { %v745_v1 = vadd.f32 %v708_v45, %v5424_v56 }
 0x207   :  { %v761_v23 = vsub.f32 0.0, %v745_v1 }
 0x208   :  { %v725_v19 = vpop.f32.mrf.mxu1 }
 0x209   :  { %v778_v35 = vmul.f32 1.442695, %v761_v23 }
 0x20a   :  { %v642_v43 = vpop.f32.mrf.mxu0 }
 0x20b   :  { %v711_v16 = vadd.f32 %v710_v53, %v642_v43  ;;  %v774_v53 = vmul.f32 1.442695, %v759_v32 }
 0x20d   :  { %v746_v13 = vadd.f32 %v711_v16, %v5425_v27  ;;  %3002 = vpow2.f32 %v774_v53  ;;  %v793_v16 = vadd.f32 1.0, %v2999_v14 }
 0x20e   :  { %3004 = vpow2.f32 %v776_v49 }
 0x20f   :  { %v762_v43 = vsub.f32 0.0, %v746_v13  ;;  %3006 = vpow2.f32 %v778_v35 }
 0x210   :  { %v4160_v7 = vpop.f32.mrf.mxu1 }
 0x212   :  { %v645_v30 = vpop.f32.mrf.mxu0 }
 0x213   :  { %v714_v48 = vadd.f32 %v713_v5, %v645_v30  ;;  %v780_v30 = vmul.f32 1.442695, %v762_v43  ;;  %v3003_v47 = vpop.eup %3002 }
 0x214   :  { %v3005_v21 = vpop.eup %3004 }
 0x215   :  { %v747_v28 = vadd.f32 %v714_v48, %v5426_v3  ;;  %3008 = vpow2.f32 %v780_v30  ;;  %v3007_v48 = vpop.eup %3006  ;;  %v796_v13 = vadd.f32 1.0, %v3005_v21 }
 0x216   :  { %v797_v59 = vadd.f32 1.0, %v3007_v48 }
 0x217   :  { %v763_v5 = vsub.f32 0.0, %v747_v28 }
 0x218   :  { %v731_v4 = vpop.f32.mrf.mxu1 }
 0x219   :  { %v782_v45 = vmul.f32 1.442695, %v763_v5 }
 0x21a   :  { %v4156_v62 = vpop.f32.mrf.mxu0 }
 0x21b   :  { %3010 = vpow2.f32 %v782_v45 }
 0x21c   :  { %3012 = vrcp.f32 %v792_v36 }
 0x21d   :  { %3014 = vrcp.f32 %v793_v16 }
 0x21e   :  { %3016 = vrcp.f32 %v794_v39 }
 0x220   :  { %v734_v1 = vpop.f32.mrf.mxu1 }
 0x222   :  { %v651_v38 = vpop.f32.mrf.mxu0 }
 0x223   :  { %v720_v32 = vadd.f32 %v4154_v44, %v651_v38 }
 0x225   :  { %v749_v53 = vadd.f32 %v720_v32, %v4012_v2 }
 0x22a   :  { %v654_v42 = vpop.f32.mrf.mxu0 }
 0x22b   :  { %v723_v55 = vadd.f32 %v722_v63, %v654_v42  ;;  %v717_v63 = vadd.f32 %v4152_v52, %v4156_v62 }
 0x22d   :  { %v750_v22 = vadd.f32 %v723_v55, %v4042_v41  ;;  %v748_v8 = vadd.f32 %v717_v63, %v4016_v6 }
 0x22f   :  { %v766_v35 = vsub.f32 0.0, %v750_v22  ;;  %v764_v36 = vsub.f32 0.0, %v748_v8 }
 0x231   :  { %v784_v39 = vmul.f32 1.442695, %v764_v36 }
 0x232   :  { %v657_v17 = vpop.f32.mrf.mxu0 }
 0x233   :  { %v726_v18 = vadd.f32 %v725_v19, %v657_v17  ;;  %v795_v19 = vadd.f32 1.0, %v3003_v47  ;;  %v3009_v17 = vpop.eup %3008 }
 0x234   :  { %v3011_v43 = vpop.eup %3010  ;;  %v798_v44 = vadd.f32 1.0, %v3009_v17 }
 0x235   :  { %v751_v54 = vadd.f32 %v726_v18, %v3994_v58  ;;  %3018 = vrcp.f32 %v795_v19  ;;  %v3013_v30 = vpop.eup %3012  ;;  %v765_v18 = vsub.f32 0.0, %v749_v53 }
 0x236   :  { %3020 = vrcp.f32 %v796_v13  ;;  %v3015_v62 = vpop.eup %3014 }
 0x237   :  { %v767_v51 = vsub.f32 0.0, %v751_v54  ;;  %3022 = vrcp.f32 %v797_v59  ;;  %v786_v55 = vmul.f32 1.442695, %v765_v18 }
 0x239   :  { %v790_v5 = vmul.f32 1.442695, %v767_v51 }
 0x23a   :  { %v660_v26 = vpop.f32.mrf.mxu0 }
 0x23b   :  { %v729_v38 = vadd.f32 %v4160_v7, %v660_v26  ;;  %v3017_v7 = vpop.eup %3016  ;;  %v788_v26 = vmul.f32 1.442695, %v766_v35 }
 0x23c   :  { %v3019_v20 = vpop.eup %3018 }
 0x23d   :  { %v752_v14 = vadd.f32 %v729_v38, %v4075_v10  ;;  %v3021_v16 = vpop.eup %3020 }
 0x23e   :  { %v3023_v54 = vpop.eup %3022 }
 0x242   :  { %v663_v24 = vpop.f32.mrf.mxu0 }
 0x243   :  { %v732_v42 = vadd.f32 %v731_v4, %v663_v24  ;;  %v799_v4 = vadd.f32 1.0, %v3011_v43  ;;  %v737_v24 = vpop.f32.mrf.mxu1 }
 0x245   :  { %v753_v52 = vadd.f32 %v732_v42, %v4018_v9 }
 0x24a   :  { %v666_v23 = vpop.f32.mrf.mxu0 }
 0x24b   :  { %v735_v28 = vadd.f32 %v734_v1, %v666_v23 }
 0x24d   :  { %v754_v49 = vadd.f32 %v735_v28, %v4053_v40 }
 0x24f   :  { %3024 = vtanh.f32 %v754_v49  ;;  %v821_v49 = vmul.f32 %v3023_v54, %v4084_v60  ;;  %v4258_v54 = vld [vmem:[%s5281_s7 + $0x60] sm:$0xff] }
 0x250   :  { %3026 = vrcp.f32 %v798_v44  ;;  %5432 = vst [vmem:[#allocation4_spill] sm:$0xff] %v4258_v54 }
 0x251   :  { %3028 = vpow2.f32 %v790_v5 }
 0x252   :  { %v669_v45 = vpop.f32.mrf.mxu0  ;;  %3030 = vtanh.f32 %v753_v52 }
 0x253   :  { %v738_v47 = vadd.f32 %v737_v24, %v669_v45  ;;  %3032 = vrcp.f32 %v799_v4 }
 0x254   :  { %3034 = vtanh.f32 %v752_v14 }
 0x255   :  { %v755_v1 = vadd.f32 %v738_v47, %v4010_v0  ;;  %v3025_v21 = vpop.eup %3024  ;;  %3036 = vpow2.f32 %v788_v26 }
 0x256   :  { %v3027_v48 = vpop.eup %3026  ;;  %v826_v17 = vmul.f32 %v3025_v21, %v3017_v7  ;;  %v4265_v21 = vld [vmem:[%s5282_s6 + $0x40] sm:$0xff] }
 0x257   :  { %3038 = vtanh.f32 %v755_v1  ;;  %v3029_v32 = vpop.eup %3028  ;;  %v822_v51 = vmul.f32 %v3027_v48, %v4078_v15  ;;  %v820_v15 = vmul.f32 %v3021_v16, %v4091_v61  ;;  %v4209_v16 = vld [vmem:[%s5281_s7 + $0x28] sm:$0xff]  ;;  %v927_v1 = vpop.f32.mrf.mxu3  ;;  %5433 = vst [vmem:[#allocation12_spill] sm:$0xff] %v4265_v21  ;;  %2786 = vmatmul.msk.f32.gmra.mxu3 %vm387_vm4, %v4265_v21 }
 0x258   :  { %3040 = vpow2.f32 %v786_v55  ;;  %v3031_v19 = vpop.eup %3030  ;;  %v803_v59 = vadd.f32 1.0, %v3029_v32  ;;  %v4251_v55 = vld [vmem:[%s5281_s7 + $0x58] sm:$0xff]  ;;  %v4272_v48 = vld [vmem:[%s5281_s7 + $0x68] sm:$0xff] }
 0x259   :  { %v3033_v13 = vpop.eup %3032  ;;  %3042 = vpow2.f32 %v784_v39  ;;  %v825_v63 = vmul.f32 %v3031_v19, %v3015_v62  ;;  %v4181_v28 = vadd.f32 %v826_v17, %v822_v51  ;;  %5431 = vst [vmem:[#allocation10_spill] sm:$0xff] %v4251_v55  ;;  %v4279_v32 = vld [vmem:[%s5282_s6 + $0x48] sm:$0xff]  ;;  %v4286_v19 = vld [vmem:[%s5281_s7 + $0x70] sm:$0xff] }
 0x25a   :  { %v3035_v22 = vpop.eup %3034  ;;  %v823_v38 = vmul.f32 %v3033_v13, %v4082_v50  ;;  %3044 = vrcp.f32 %v803_v59  ;;  %5434 = vst [vmem:[#allocation5_spill] sm:$0xff] %v4272_v48  ;;  %v4295_v13 = vld [vmem:[%s5282_s6 + $0x50] sm:$0xff] }
 0x25b   :  { %v3037_v23 = vpop.eup %3036  ;;  %v824_v43 = vmul.f32 %v3035_v22, %v3013_v30  ;;  %v4187_v8 = vadd.f32 %v825_v63, %v821_v49  ;;  %3046 = vtanh.f32 %v4181_v28  ;;  %5435 = vst [vmem:[#allocation14_spill] sm:$0xff] %v4279_v32  ;;  %v4302_v22 = vld [vmem:[%s5281_s7 + $0x78] sm:$0xff] }
 0x25c   :  { %v802_v35 = vadd.f32 1.0, %v3037_v23  ;;  %5436 = vst [vmem:[#allocation7_spill] sm:$0xff] %v4286_v19  ;;  %v4311_v23 = vld [vmem:[%s5282_s6 + $0x58] sm:$0xff] }
 0x25d   :  { %v3039_v42 = vpop.eup %3038  ;;  %v4192_v30 = vadd.f32 %v824_v43, %v820_v15  ;;  %5437 = vst [vmem:[#allocation16_spill] sm:$0xff] %v4295_v13 }
 0x25e   :  { %v3041_v53 = vpop.eup %3040  ;;  %v827_v44 = vmul.f32 %v3039_v42, %v3019_v20  ;;  %5438 = vst [vmem:[#allocation9_spill] sm:$0xff] %v4302_v22  ;;  %v4318_v42 = vld [vmem:[%s5282_s6 + $0x60] sm:$0xff] }
 0x25f   :  { %v3043_v52 = vpop.eup %3042  ;;  %v801_v62 = vadd.f32 1.0, %v3041_v53  ;;  %v930_v39 = vpop.f32.mrf.mxu3  ;;  %2787 = vmatmul.msk.f32.gmra.mxu3 %vm387_vm4, %v4279_v32  ;;  %5439 = vst [vmem:[#allocation18_spill] sm:$0xff] %v4311_v23 }
 0x260   :  { %v4185_v5 = vadd.f32 %v827_v44, %v823_v38  ;;  %v800_v50 = vadd.f32 1.0, %v3043_v52  ;;  %v3045_v60 = vpop.eup %3044  ;;  %5440 = vst [vmem:[#allocation11_spill] sm:$0xff] %v4318_v42  ;;  %v4325_v44 = vld [vmem:[%s5282_s6 + $0x68] sm:$0xff] }
 0x261   :  { %v3047_v4 = vpop.eup %3046  ;;  %5441 = vst [vmem:[#allocation13_spill] sm:$0xff] %v4325_v44 }
 0x262   :  { %3048 = vtanh.f32 %v4185_v5 }
 0x263   :  { %3050 = vrcp.f32 %v802_v35  ;;  %v4332_v35 = vld [vmem:[%s5282_s6 + $0x70] sm:$0xff] }
 0x264   :  { %3052 = vtanh.f32 %v4187_v8  ;;  %5442 = vst [vmem:[#allocation15_spill] sm:$0xff] %v4332_v35 }
 0x265   :  { %3054 = vrcp.f32 %v801_v62  ;;  %v4341_v62 = vld [vmem:[%s5282_s6 + $0x78] sm:$0xff] }
 0x266   :  { %3056 = vtanh.f32 %v4192_v30  ;;  %5443 = vst [vmem:[#allocation17_spill] sm:$0xff] %v4341_v62 }
 0x267   :  { %3058 = vrcp.f32 %v800_v50  ;;  %v4290_v17 = vpop.f32.mrf.mxu3  ;;  %2788 = vmatmul.msk.f32.gmra.mxu3 %vm387_vm4, %v4295_v13 }
 0x268   :  { %v3049_v18 = vpop.eup %3048 }
 0x269   :  { %v3051_v61 = vpop.eup %3050  ;;  %v839_v24 = vmul.f32 %v3049_v18, %v3045_v60 }
 0x26a   :  { %v3053_v14 = vpop.eup %3052  ;;  %v838_v26 = vmul.f32 %v3051_v61, %v3047_v4  ;;  %v4350_v4 = vld [vmem:[%s5282_s6] sm:$0xff] }
 0x26b   :  { %v3055_v7 = vpop.eup %3054  ;;  %854 = vmatpush.msrb.mxu2 %v839_v24  ;;  %v4359_v24 = vld [vmem:[%s5282_s6 + $0x8] sm:$0xff] }
 0x26c   :  { %v3057_v45 = vpop.eup %3056  ;;  %v837_v20 = vmul.f32 %v3055_v7, %v3053_v14 }
 0x26d   :  { %855 = vmatpush.msrb.mxu2 %v838_v26  ;;  %v3059_v36 = vpop.eup %3058  ;;  %v4368_v26 = vld [vmem:[%s5282_s6 + $0x10] sm:$0xff] }
 0x26e   :  { %v836_v47 = vmul.f32 %v3059_v36, %v3057_v45  ;;  %v4377_v36 = vld [vmem:[%s5282_s6 + $0x18] sm:$0xff] }
 0x26f   :  { %856 = vmatpush.msrb.mxu2 %v837_v20  ;;  %v4306_v51 = vpop.f32.mrf.mxu3  ;;  %2789 = vmatmul.msk.f32.gmra.mxu3 %vm387_vm4, %v4311_v23 }
 0x271   :  { %857 = vmatpush.msrb.mxu2 %v836_v47 }
 0x272   :  { %2693 = vmatmul.msk.f32.vlgmr.msrb.gmra.mxu2 %vm273_vm3, %v3916_v25  ;;  %v4216_v25 = vld [vmem:[%s5281_s7 + $0x30] sm:$0xff] }
 0x277   :  { %v939_v63 = vpop.f32.mrf.mxu3  ;;  %2790 = vmatmul.msk.f32.gmra.mxu3 %vm387_vm4, %v4318_v42 }
 0x27a   :  { %2694 = vmatmul.msk.f32.gmra.mxu2 %vm273_vm3, %v3928_v29  ;;  %v4223_v29 = vld [vmem:[%s5281_s7 + $0x38] sm:$0xff] }
 0x27b   :  { %5427 = vst [vmem:[#allocation6_spill] sm:$0xff] %v4223_v29 }
 0x27f   :  { %v942_v43 = vpop.f32.mrf.mxu3  ;;  %2791 = vmatmul.msk.f32.gmra.mxu3 %vm387_vm4, %v4325_v44 }
 0x282   :  { %2695 = vmatmul.msk.f32.gmra.mxu2 %vm273_vm3, %v3940_v33  ;;  %v4230_v33 = vld [vmem:[%s5281_s7 + $0x40] sm:$0xff] }
 0x283   :  { %5428 = vst [vmem:[#allocation2_spill] sm:$0xff] %v4230_v33 }
 0x287   :  { %v945_v49 = vpop.f32.mrf.mxu3  ;;  %2792 = vmatmul.msk.f32.gmra.mxu3 %vm387_vm4, %v4332_v35 }
 0x28a   :  { %2696 = vmatmul.msk.f32.gmra.mxu2 %vm273_vm3, %v3949_v34  ;;  %v4237_v34 = vld [vmem:[%s5281_s7 + $0x48] sm:$0xff] }
 0x28b   :  { %5429 = vst [vmem:[#allocation8_spill] sm:$0xff] %v4237_v34 }
 0x28f   :  { %v4336_v52 = vpop.f32.mrf.mxu3  ;;  %2793 = vmatmul.msk.f32.gmra.mxu3 %vm387_vm4, %v4341_v62 }
 0x292   :  { %2697 = vmatmul.msk.f32.gmra.mxu2 %vm273_vm3, %v3958_v37  ;;  %v4244_v37 = vld [vmem:[%s5281_s7 + $0x50] sm:$0xff] }
 0x293   :  { %5430 = vst [vmem:[#allocation3_spill] sm:$0xff] %v4244_v37 }
 0x297   :  { %v4345_v60 = vpop.f32.mrf.mxu3  ;;  %2846 = vmatmul.msk.f32.vlgmr.msrb.gmra.mxu3 %vm387_vm4, %v4350_v4 }
 0x29a   :  { %2698 = vmatmul.msk.f32.gmra.mxu2 %vm273_vm3, %v4209_v16 }
 0x29f   :  { %v4354_v61 = vpop.f32.mrf.mxu3  ;;  %2847 = vmatmul.msk.f32.gmra.mxu3 %vm387_vm4, %v4359_v24 }
 0x2a2   :  { %2699 = vmatmul.msk.f32.gmra.mxu2 %vm273_vm3, %v4216_v25 }
 0x2a7   :  { %v4363_v7 = vpop.f32.mrf.mxu3  ;;  %2848 = vmatmul.msk.f32.gmra.mxu3 %vm387_vm4, %v4368_v26 }
 0x2aa   :  { %2700 = vmatmul.msk.f32.gmra.mxu2 %vm273_vm3, %v4223_v29  ;;  %v4411_v29 = vld [vmem:[%s5282_s6 + $0x30] sm:$0xff] }
 0x2af   :  { %v4372_v20 = vpop.f32.mrf.mxu3  ;;  %2849 = vmatmul.msk.f32.gmra.mxu3 %vm387_vm4, %v4377_v36 }
 0x2b2   :  { %2701 = vmatmul.msk.f32.gmra.mxu2 %vm273_vm3, %v4230_v33 }
 0x2ba   :  { %2702 = vmatmul.msk.f32.gmra.mxu2 %vm273_vm3, %v4237_v34 }
 0x2c2   :  { %2703 = vmatmul.msk.f32.gmra.mxu2 %vm273_vm3, %v4244_v37  ;;  %v4397_v37 = vld [vmem:[%s5282_s6 + $0x28] sm:$0xff] }
 0x2ca   :  { %2704 = vmatmul.msk.f32.gmra.mxu2 %vm273_vm3, %v4251_v55 }
 0x2d2   :  { %2705 = vmatmul.msk.f32.gmra.mxu2 %vm273_vm3, %v4258_v54 }
 0x2da   :  { %2706 = vmatmul.msk.f32.gmra.mxu2 %vm273_vm3, %v4272_v48 }
 0x2e2   :  { %2707 = vmatmul.msk.f32.gmra.mxu2 %vm273_vm3, %v4286_v19  ;;  %v4386_v19 = vld [vmem:[%s5282_s6 + $0x20] sm:$0xff] }
 0x2ea   :  { %2708 = vmatmul.msk.f32.gmra.mxu2 %vm273_vm3, %v4302_v22  ;;  %v963_v22 = vpop.f32.mrf.mxu3  ;;  %2850 = vmatmul.msk.f32.gmra.mxu3 %vm387_vm4, %v4386_v19 }
 0x2f2   :  { %v4392_v62 = vpop.f32.mrf.mxu3  ;;  %2851 = vmatmul.msk.f32.gmra.mxu3 %vm387_vm4, %v4397_v37 }
 0x2f5   :  { %v859_v59 = vpop.f32.mrf.mxu2 }
 0x2f6   :  { %v928_v54 = vadd.f32 %v927_v1, %v859_v59 }
 0x2f8   :  { %v975_v34 = vadd.f32 %v928_v54, %v4034_v31 }
 0x2fa   :  { %v991_v1 = vsub.f32 0.0, %v975_v34  ;;  %v4406_v42 = vpop.f32.mrf.mxu3  ;;  %2852 = vmatmul.msk.f32.gmra.mxu3 %vm387_vm4, %v4411_v29 }
 0x2fd   :  { %v862_v53 = vpop.f32.mrf.mxu2 }
 0x2fe   :  { %v931_v44 = vadd.f32 %v930_v39, %v862_v53  ;;  %v1003_v39 = vmul.f32 1.442695, %v991_v1 }
 0x305   :  { %v865_v38 = vpop.f32.mrf.mxu2 }
 0x30d   :  { %v868_v15 = vpop.f32.mrf.mxu2 }
 0x315   :  { %v871_v50 = vpop.f32.mrf.mxu2 }
 0x316   :  { %v940_v48 = vadd.f32 %v939_v63, %v871_v50  ;;  %v976_v50 = vadd.f32 %v931_v44, %v5423_v11  ;;  %v934_v44 = vadd.f32 %v4290_v17, %v865_v38  ;;  %v4422_v11 = vld [vmem:[%s5282_s6 + $0x38] sm:$0xff]  ;;  %v937_v17 = vadd.f32 %v4306_v51, %v868_v15 }
 0x318   :  { %v979_v35 = vadd.f32 %v940_v48, %v3992_v57  ;;  %v992_v53 = vsub.f32 0.0, %v976_v50  ;;  %v4417_v57 = vpop.f32.mrf.mxu3  ;;  %2853 = vmatmul.msk.f32.gmra.mxu3 %vm387_vm4, %v4422_v11 }
 0x31a   :  { %v995_v33 = vsub.f32 0.0, %v979_v35 }
 0x31c   :  { %v1011_v48 = vmul.f32 1.442695, %v995_v33 }
 0x31d   :  { %v874_v18 = vpop.f32.mrf.mxu2 }
 0x31e   :  { %v943_v63 = vadd.f32 %v942_v43, %v874_v18  ;;  %3060 = vpow2.f32 %v1011_v48  ;;  %v1005_v18 = vmul.f32 1.442695, %v992_v53  ;;  %v978_v53 = vadd.f32 %v937_v17, %v3968_v46 }
 0x31f   :  { %3062 = vpow2.f32 %v1003_v39 }
 0x320   :  { %v980_v54 = vadd.f32 %v943_v63, %v5424_v56  ;;  %3064 = vpow2.f32 %v1005_v18  ;;  %v994_v18 = vsub.f32 0.0, %v978_v53 }
 0x322   :  { %v996_v34 = vsub.f32 0.0, %v980_v54 }
 0x324   :  { %v1013_v33 = vmul.f32 1.442695, %v996_v34 }
 0x325   :  { %v877_v14 = vpop.f32.mrf.mxu2 }
 0x326   :  { %v946_v43 = vadd.f32 %v945_v49, %v877_v14  ;;  %v977_v49 = vadd.f32 %v934_v44, %v4022_v12  ;;  %v3061_v14 = vpop.eup %3060  ;;  %3066 = vpow2.f32 %v1013_v33 }
 0x327   :  { %v3063_v38 = vpop.eup %3062  ;;  %v1031_v54 = vadd.f32 1.0, %v3061_v14 }
 0x328   :  { %v981_v63 = vadd.f32 %v946_v43, %v5425_v27  ;;  %v993_v48 = vsub.f32 0.0, %v977_v49  ;;  %v1027_v39 = vadd.f32 1.0, %v3063_v38  ;;  %v3065_v44 = vpop.eup %3064 }
 0x329   :  { %3068 = vrcp.f32 %v1031_v54 }
 0x32a   :  { %v997_v1 = vsub.f32 0.0, %v981_v63  ;;  %v1007_v27 = vmul.f32 1.442695, %v993_v48  ;;  %3070 = vrcp.f32 %v1027_v39  ;;  %v1009_v63 = vmul.f32 1.442695, %v994_v18 }
 0x32b   :  { %v2726_v18 = vld [vmem:[%s5279_s1 + $0x18] sm:$0x3f] }
 0x32c   :  { %v1015_v31 = vmul.f32 1.442695, %v997_v1  ;;  %v3067_v15 = vpop.eup %3066  ;;  %2743 = vmatpush.msk.msra.mxu1 %vm436_vm1, %v2726_v18 }
 0x32d   :  { %v880_v45 = vpop.f32.mrf.mxu2  ;;  %v1032_v33 = vadd.f32 1.0, %v3067_v15  ;;  %2744 = vmatmul.msk.f32.vlgmr.msra.gmra.mxu1 %vm387_vm4, %v4350_v4 }
 0x32e   :  { %v949_v50 = vadd.f32 %v4336_v52, %v880_v45  ;;  %v1028_v52 = vadd.f32 1.0, %v3065_v44 }
 0x330   :  { %v982_v43 = vadd.f32 %v949_v50, %v5426_v3 }
 0x332   :  { %v998_v45 = vsub.f32 0.0, %v982_v43 }
 0x334   :  { %v1017_v38 = vmul.f32 1.442695, %v998_v45 }
 0x335   :  { %v4381_v47 = vpop.f32.mrf.mxu2  ;;  %2745 = vmatmul.msk.f32.gmra.mxu1 %vm387_vm4, %v4359_v24 }
 0x33d   :  { %v4390_v55 = vpop.f32.mrf.mxu2  ;;  %2746 = vmatmul.msk.f32.gmra.mxu1 %vm387_vm4, %v4368_v26 }
 0x345   :  { %v4403_v59 = vpop.f32.mrf.mxu2  ;;  %2747 = vmatmul.msk.f32.gmra.mxu1 %vm387_vm4, %v4377_v36 }
 0x34d   :  { %v892_v35 = vpop.f32.mrf.mxu2  ;;  %2748 = vmatmul.msk.f32.gmra.mxu1 %vm387_vm4, %v4386_v19  ;;  %v4501_v19 = vld [vmem:[%s5281_s7 + $0x10] sm:$0xff] }
 0x355   :  { %v895_v56 = vpop.f32.mrf.mxu2  ;;  %2749 = vmatmul.msk.f32.gmra.mxu1 %vm387_vm4, %v4397_v37  ;;  %v4510_v37 = vld [vmem:[%s5281_s7 + $0x18] sm:$0xff] }
 0x356   :  { %v964_v34 = vadd.f32 %v963_v22, %v895_v56  ;;  %v3069_v56 = vpop.eup %3068  ;;  %v961_v22 = vadd.f32 %v4372_v20, %v892_v35 }
 0x357   :  { %v3071_v17 = vpop.eup %3070 }
 0x358   :  { %v987_v51 = vadd.f32 %v964_v34, %v4075_v10  ;;  %v986_v20 = vadd.f32 %v961_v22, %v3994_v58 }
 0x35a   :  { %3072 = vtanh.f32 %v987_v51 }
 0x35b   :  { %3074 = vpow2.f32 %v1015_v31  ;;  %v1055_v31 = vmul.f32 %v3069_v56, %v4192_v30 }
 0x35c   :  { %3076 = vpow2.f32 %v1007_v27  ;;  %v958_v27 = vadd.f32 %v4363_v7, %v4403_v59  ;;  %v952_v7 = vadd.f32 %v4345_v60, %v4381_v47  ;;  %v1002_v59 = vsub.f32 0.0, %v986_v20 }
 0x35d   :  { %v898_v49 = vpop.f32.mrf.mxu2  ;;  %3078 = vrcp.f32 %v1028_v52  ;;  %2750 = vmatmul.msk.f32.gmra.mxu1 %vm387_vm4, %v4411_v29  ;;  %v4519_v29 = vld [vmem:[%s5281_s7 + $0x20] sm:$0xff] }
 0x35e   :  { %v967_v14 = vadd.f32 %v4392_v62, %v898_v49  ;;  %3080 = vrcp.f32 %v1032_v33  ;;  %v955_v62 = vadd.f32 %v4354_v61, %v4390_v55  ;;  %v985_v44 = vadd.f32 %v958_v27, %v4042_v41 }
 0x35f   :  { %3082 = vpow2.f32 %v1009_v63  ;;  %v983_v63 = vadd.f32 %v952_v7, %v4016_v6  ;;  %v1025_v49 = vmul.f32 1.442695, %v1002_v59 }
 0x360   :  { %v3073_v1 = vpop.eup %3072  ;;  %v988_v50 = vadd.f32 %v967_v14, %v4018_v9  ;;  %v984_v61 = vadd.f32 %v955_v62, %v4012_v2  ;;  %v1001_v47 = vsub.f32 0.0, %v985_v44 }
 0x361   :  { %v3075_v48 = vpop.eup %3074  ;;  %v1059_v54 = vmul.f32 %v3073_v1, %v3071_v17 }
 0x362   :  { %v3077_v39 = vpop.eup %3076  ;;  %3084 = vtanh.f32 %v988_v50  ;;  %v1033_v53 = vadd.f32 1.0, %v3075_v48  ;;  %v1000_v22 = vsub.f32 0.0, %v984_v61  ;;  %v999_v48 = vsub.f32 0.0, %v983_v63 }
 0x363   :  { %3086 = vpow2.f32 %v1017_v38  ;;  %v4442_v35 = vadd.f32 %v1059_v54, %v1055_v31  ;;  %v3079_v34 = vpop.eup %3078  ;;  %v1029_v43 = vadd.f32 1.0, %v3077_v39  ;;  %v1023_v38 = vmul.f32 1.442695, %v1001_v47 }
 0x364   :  { %v3081_v51 = vpop.eup %3080  ;;  %3088 = vrcp.f32 %v1033_v53  ;;  %v1019_v62 = vmul.f32 1.442695, %v999_v48  ;;  %v5448_v48 = vld [vmem:[#allocation8_spill] sm:$0xff] }
 0x365   :  { %v901_v30 = vpop.f32.mrf.mxu2  ;;  %v3083_v55 = vpop.eup %3082  ;;  %3090 = vrcp.f32 %v1029_v43  ;;  %2751 = vmatmul.msk.f32.gmra.mxu1 %vm387_vm4, %v4422_v11  ;;  %v5444_v11 = vld [vmem:[#allocation6_spill] sm:$0xff] }
 0x366   :  { %v970_v15 = vadd.f32 %v4406_v42, %v901_v30  ;;  %v1056_v42 = vmul.f32 %v3081_v51, %v4187_v8  ;;  %v1030_v56 = vadd.f32 1.0, %v3083_v55  ;;  %v1021_v8 = vmul.f32 1.442695, %v1000_v22  ;;  %v4483_v22 = vld [vmem:[%s5281_s7] sm:$0xff] }
 0x368   :  { %v3085_v52 = vpop.eup %3084  ;;  %v989_v45 = vadd.f32 %v970_v15, %v4053_v40 }
 0x369   :  { %v3087_v60 = vpop.eup %3086  ;;  %v1060_v33 = vmul.f32 %v3085_v52, %v3079_v34 }
 0x36a   :  { %3092 = vtanh.f32 %v989_v45  ;;  %v1034_v17 = vadd.f32 1.0, %v3087_v60  ;;  %v3089_v50 = vpop.eup %3088 }
 0x36b   :  { %v4458_v14 = vadd.f32 %v1060_v33, %v1056_v42  ;;  %3094 = vpow2.f32 %v1025_v49  ;;  %v3091_v31 = vpop.eup %3090  ;;  %v1057_v39 = vmul.f32 %v3089_v50, %v4181_v28  ;;  %v5447_v50 = vld [vmem:[#allocation13_spill] sm:$0xff] }
 0x36c   :  { %3096 = vrcp.f32 %v1030_v56 }
 0x36d   :  { %v904_v1 = vpop.f32.mrf.mxu2  ;;  %3098 = vrcp.f32 %v1034_v17  ;;  %v4492_v17 = vld [vmem:[%s5281_s7 + $0x8] sm:$0xff]  ;;  %2752 = vmatmul.msk.f32.gmra.mxu1 %vm387_vm4, %v4265_v21 }
 0x36e   :  { %v973_v4 = vadd.f32 %v4417_v57, %v904_v1  ;;  %3100 = vpow2.f32 %v1023_v38  ;;  %v5445_v38 = vld [vmem:[#allocation11_spill] sm:$0xff]  ;;  %v5446_v1 = vld [vmem:[#allocation2_spill] sm:$0xff] }
 0x370   :  { %v3093_v27 = vpop.eup %3092  ;;  %v990_v54 = vadd.f32 %v973_v4, %v4010_v0  ;;  %v5449_v4 = vld [vmem:[#allocation15_spill] sm:$0xff] }
 0x371   :  { %v1061_v20 = vmul.f32 %v3093_v27, %v3091_v31  ;;  %v3095_v57 = vpop.eup %3094  ;;  %v5450_v31 = vld [vmem:[#allocation3_spill] sm:$0xff]  ;;  %v5452_v27 = vld [vmem:[#allocation10_spill] sm:$0xff] }
 0x372   :  { %3102 = vtanh.f32 %v990_v54  ;;  %v3097_v34 = vpop.eup %3096  ;;  %v1038_v30 = vadd.f32 1.0, %v3095_v57  ;;  %v5455_v57 = vld [vmem:[#allocation7_spill] sm:$0xff] }
 0x373   :  { %3104 = vpow2.f32 %v1021_v8  ;;  %v4465_v53 = vadd.f32 %v1061_v20, %v1057_v39  ;;  %v3099_v43 = vpop.eup %3098  ;;  %v5451_v8 = vld [vmem:[#allocation17_spill] sm:$0xff]  ;;  %v5453_v39 = vld [vmem:[#allocation4_spill] sm:$0xff] }
 0x374   :  { %3106 = vpow2.f32 %v1019_v62  ;;  %v3101_v44 = vpop.eup %3100  ;;  %v1058_v28 = vmul.f32 %v3099_v43, %v4185_v5  ;;  %v5454_v62 = vld [vmem:[#allocation5_spill] sm:$0xff] }
 0x375   :  { %v1037_v59 = vadd.f32 1.0, %v3101_v44  ;;  %3108 = vrcp.f32 %v1038_v30  ;;  %2753 = vmatmul.msk.f32.gmra.mxu1 %vm387_vm4, %v4279_v32  ;;  %v5456_v43 = vld [vmem:[#allocation9_spill] sm:$0xff] }
 0x376   :  { %3110 = vtanh.f32 %v4465_v53 }
 0x378   :  { %v3103_v51 = vpop.eup %3102 }
 0x379   :  { %v3105_v24 = vpop.eup %3104  ;;  %v1062_v7 = vmul.f32 %v3103_v51, %v3097_v34 }
 0x37a   :  { %v3107_v18 = vpop.eup %3106  ;;  %v1036_v55 = vadd.f32 1.0, %v3105_v24 }
 0x37b   :  { %v4470_v15 = vadd.f32 %v1062_v7, %v1058_v28  ;;  %v1035_v61 = vadd.f32 1.0, %v3107_v18  ;;  %v3109_v5 = vpop.eup %3108 }
 0x37c   :  { %v3111_v26 = vpop.eup %3110 }
 0x37d   :  { %3112 = vtanh.f32 %v4470_v15  ;;  %2754 = vmatmul.msk.f32.gmra.mxu1 %vm387_vm4, %v4295_v13 }
 0x37e   :  { %3114 = vrcp.f32 %v1037_v59 }
 0x37f   :  { %3116 = vtanh.f32 %v4458_v14 }
 0x380   :  { %3118 = vrcp.f32 %v1036_v55 }
 0x381   :  { %3120 = vtanh.f32 %v4442_v35 }
 0x382   :  { %3122 = vrcp.f32 %v1035_v61 }
 0x383   :  { %v3113_v52 = vpop.eup %3112 }
 0x384   :  { %v3115_v45 = vpop.eup %3114  ;;  %v1074_v60 = vmul.f32 %v3113_v52, %v3109_v5 }
 0x385   :  { %v3117_v42 = vpop.eup %3116  ;;  %v1073_v33 = vmul.f32 %v3115_v45, %v3111_v26  ;;  %2755 = vmatmul.msk.f32.gmra.mxu1 %vm387_vm4, %v4311_v23  ;;  %v5458_v23 = vld [vmem:[#allocation20_spill] sm:$0xff] }
 0x386   :  { %v3119_v47 = vpop.eup %3118  ;;  %1089 = vmatpush.msrb.mxu0 %v1074_v60 }
 0x387   :  { %v3121_v63 = vpop.eup %3120  ;;  %v1072_v49 = vmul.f32 %v3119_v47, %v3117_v42 }
 0x388   :  { %1090 = vmatpush.msrb.mxu0 %v1073_v33  ;;  %v3123_v56 = vpop.eup %3122 }
 0x389   :  { %v1071_v36 = vmul.f32 %v3123_v56, %v3121_v63 }
 0x38a   :  { %1091 = vmatpush.msrb.mxu0 %v1072_v49 }
 0x38c   :  { %1092 = vmatpush.msrb.mxu0 %v1071_v36 }
 0x38d   :  { %2727 = vmatmul.msk.f32.vlgmr.msrb.gmra.mxu0 %vm273_vm3, %v4483_v22  ;;  %2756 = vmatmul.msk.f32.gmra.mxu1 %vm387_vm4, %v5445_v38 }
 0x395   :  { %2728 = vmatmul.msk.f32.gmra.mxu0 %vm273_vm3, %v4492_v17  ;;  %2757 = vmatmul.msk.f32.gmra.mxu1 %vm387_vm4, %v5447_v50 }
 0x39d   :  { %2729 = vmatmul.msk.f32.gmra.mxu0 %vm273_vm3, %v4501_v19  ;;  %2758 = vmatmul.msk.f32.gmra.mxu1 %vm387_vm4, %v5449_v4  ;;  %v5457_v4 = vld [vmem:[#allocation24_spill] sm:$0xff] }
 0x3a5   :  { %2730 = vmatmul.msk.f32.gmra.mxu0 %vm273_vm3, %v4510_v37  ;;  %2759 = vmatmul.msk.f32.gmra.mxu1 %vm387_vm4, %v5451_v8 }
 0x3aa   :  { %v1162_v54 = vpop.f32.mrf.mxu1 }
 0x3ad   :  { %2731 = vmatmul.msk.f32.gmra.mxu0 %vm273_vm3, %v4519_v29 }
 0x3b2   :  { %v1165_v20 = vpop.f32.mrf.mxu1 }
 0x3b5   :  { %2732 = vmatmul.msk.f32.gmra.mxu0 %vm273_vm3, %v4209_v16 }
 0x3ba   :  { %v1168_v34 = vpop.f32.mrf.mxu1 }
 0x3bd   :  { %2733 = vmatmul.msk.f32.gmra.mxu0 %vm273_vm3, %v4216_v25 }
 0x3c2   :  { %v1171_v44 = vpop.f32.mrf.mxu1 }
 0x3c5   :  { %2734 = vmatmul.msk.f32.gmra.mxu0 %vm273_vm3, %v5444_v11 }
 0x3ca   :  { %v1174_v24 = vpop.f32.mrf.mxu1 }
 0x3cd   :  { %2735 = vmatmul.msk.f32.gmra.mxu0 %vm273_vm3, %v5446_v1 }
 0x3d2   :  { %v1177_v7 = vpop.f32.mrf.mxu1 }
 0x3d5   :  { %2736 = vmatmul.msk.f32.gmra.mxu0 %vm273_vm3, %v5448_v48 }
 0x3da   :  { %v1180_v18 = vpop.f32.mrf.mxu1 }
 0x3dd   :  { %2737 = vmatmul.msk.f32.gmra.mxu0 %vm273_vm3, %v5450_v31 }
 0x3e2   :  { %v1183_v61 = vpop.f32.mrf.mxu1 }
 0x3e5   :  { %2738 = vmatmul.msk.f32.gmra.mxu0 %vm273_vm3, %v5452_v27 }
 0x3ea   :  { %v4559_v52 = vpop.f32.mrf.mxu1 }
 0x3ed   :  { %2739 = vmatmul.msk.f32.gmra.mxu0 %vm273_vm3, %v5453_v39 }
 0x3f2   :  { %v4561_v60 = vpop.f32.mrf.mxu1 }
 0x3f5   :  { %2740 = vmatmul.msk.f32.gmra.mxu0 %vm273_vm3, %v5454_v62 }
 0x3fa   :  { %v1192_v47 = vpop.f32.mrf.mxu1 }
 0x3fd   :  { %2741 = vmatmul.msk.f32.gmra.mxu0 %vm273_vm3, %v5455_v57 }
 0x402   :  { %v1195_v63 = vpop.f32.mrf.mxu1 }
 0x405   :  { %2742 = vmatmul.msk.f32.gmra.mxu0 %vm273_vm3, %v5456_v43 }
 0x40a   :  { %v1094_v30 = vpop.f32.mrf.mxu0  ;;  %v4567_v62 = vpop.f32.mrf.mxu1 }
 0x40b   :  { %v1163_v56 = vadd.f32 %v1162_v54, %v1094_v30  ;;  %v5459_v54 = vld [vmem:[#allocation22_spill] sm:$0xff] }
 0x40d   :  { %v1210_v50 = vadd.f32 %v1163_v56, %v5457_v4 }
 0x40f   :  { %v1226_v39 = vsub.f32 0.0, %v1210_v50 }
 0x412   :  { %v1097_v51 = vpop.f32.mrf.mxu0 }
 0x413   :  { %v1166_v36 = vadd.f32 %v1165_v20, %v1097_v51 }
 0x415   :  { %v1211_v43 = vadd.f32 %v1166_v36, %v5458_v23 }
 0x417   :  { %v1227_v48 = vsub.f32 0.0, %v1211_v43 }
 0x41a   :  { %v1100_v28 = vpop.f32.mrf.mxu0 }
 0x41b   :  { %v1169_v8 = vadd.f32 %v1168_v34, %v1100_v28  ;;  %v5460_v34 = vld [vmem:[#allocation21_spill] sm:$0xff]  ;;  %v1238_v28 = vmul.f32 1.442695, %v1226_v39 }
 0x41d   :  { %v1212_v21 = vadd.f32 %v1169_v8, %v4022_v12  ;;  %3124 = vpow2.f32 %v1238_v28 }
 0x41f   :  { %v1228_v51 = vsub.f32 0.0, %v1212_v21 }
 0x421   :  { %v1242_v8 = vmul.f32 1.442695, %v1228_v51 }
 0x422   :  { %v1103_v59 = vpop.f32.mrf.mxu0 }
 0x423   :  { %v1172_v38 = vadd.f32 %v1171_v44, %v1103_v59 }
 0x425   :  { %v1213_v27 = vadd.f32 %v1172_v38, %v3968_v46 }
 0x427   :  { %v1229_v59 = vsub.f32 0.0, %v1213_v27 }
 0x429   :  { %v1244_v38 = vmul.f32 1.442695, %v1229_v59 }
 0x42a   :  { %v1106_v55 = vpop.f32.mrf.mxu0 }
 0x42b   :  { %v1175_v13 = vadd.f32 %v1174_v24, %v1106_v55  ;;  %v5461_v24 = vld [vmem:[#allocation23_spill] sm:$0xff]  ;;  %v1240_v55 = vmul.f32 1.442695, %v1227_v48 }
 0x42d   :  { %v1214_v20 = vadd.f32 %v1175_v13, %v5459_v54  ;;  %3126 = vpow2.f32 %v1240_v55 }
 0x42e   :  { %3128 = vpow2.f32 %v1242_v8 }
 0x42f   :  { %3130 = vpow2.f32 %v1244_v38 }
 0x432   :  { %v1109_v5 = vpop.f32.mrf.mxu0 }
 0x433   :  { %v1178_v57 = vadd.f32 %v1177_v7, %v1109_v5  ;;  %v1230_v5 = vsub.f32 0.0, %v1214_v20 }
 0x435   :  { %v1215_v30 = vadd.f32 %v1178_v57, %v5460_v34  ;;  %v1246_v13 = vmul.f32 1.442695, %v1230_v5 }
 0x437   :  { %v1231_v56 = vsub.f32 0.0, %v1215_v30  ;;  %3132 = vpow2.f32 %v1246_v13 }
 0x439   :  { %v1248_v57 = vmul.f32 1.442695, %v1231_v56 }
 0x43a   :  { %v1112_v26 = vpop.f32.mrf.mxu0 }
 0x43b   :  { %v1181_v31 = vadd.f32 %v1180_v18, %v1112_v26  ;;  %v1201_v18 = vpop.f32.mrf.mxu1  ;;  %3134 = vpow2.f32 %v1248_v57 }
 0x43d   :  { %v1216_v7 = vadd.f32 %v1181_v31, %v5461_v24  ;;  %v3125_v31 = vpop.eup %3124 }
 0x43e   :  { %v1262_v20 = vadd.f32 1.0, %v3125_v31 }
 0x43f   :  { %v1232_v43 = vsub.f32 0.0, %v1216_v7 }
 0x441   :  { %v1250_v27 = vmul.f32 1.442695, %v1232_v43 }
 0x442   :  { %v1115_v45 = vpop.f32.mrf.mxu0 }
 0x443   :  { %v1184_v44 = vadd.f32 %v1183_v61, %v1115_v45  ;;  %v3127_v61 = vpop.eup %3126  ;;  %3136 = vpow2.f32 %v1250_v27  ;;  %v1204_v59 = vpop.f32.mrf.mxu1 }
 0x444   :  { %v3129_v45 = vpop.eup %3128  ;;  %v1263_v51 = vadd.f32 1.0, %v3127_v61 }
 0x445   :  { %v1217_v50 = vadd.f32 %v1184_v44, %v5426_v3  ;;  %v3131_v30 = vpop.eup %3130  ;;  %v1264_v5 = vadd.f32 1.0, %v3129_v45 }
 0x446   :  { %v3133_v7 = vpop.eup %3132 }
 0x447   :  { %v1233_v21 = vsub.f32 0.0, %v1217_v50  ;;  %v3135_v55 = vpop.eup %3134  ;;  %v1266_v8 = vadd.f32 1.0, %v3133_v7 }
 0x448   :  { %v1267_v13 = vadd.f32 1.0, %v3135_v55 }
 0x449   :  { %v1252_v26 = vmul.f32 1.442695, %v1233_v21 }
 0x44a   :  { %v4563_v42 = vpop.f32.mrf.mxu0 }
 0x44b   :  { %3138 = vpow2.f32 %v1252_v26 }
 0x44c   :  { %3140 = vrcp.f32 %v1262_v20  ;;  %v1207_v20 = vpop.f32.mrf.mxu1 }
 0x44d   :  { %3142 = vrcp.f32 %v1263_v51 }
 0x44e   :  { %3144 = vrcp.f32 %v1264_v5 }
 0x452   :  { %v1121_v33 = vpop.f32.mrf.mxu0 }
 0x453   :  { %v1190_v56 = vadd.f32 %v4561_v60, %v1121_v33 }
 0x455   :  { %v1219_v21 = vadd.f32 %v1190_v56, %v4012_v2 }
 0x45a   :  { %v1124_v49 = vpop.f32.mrf.mxu0 }
 0x45b   :  { %v1193_v44 = vadd.f32 %v1192_v47, %v1124_v49  ;;  %v1187_v47 = vadd.f32 %v4559_v52, %v4563_v42 }
 0x45d   :  { %v1220_v50 = vadd.f32 %v1193_v44, %v4042_v41  ;;  %v1218_v45 = vadd.f32 %v1187_v47, %v4016_v6 }
 0x462   :  { %v1127_v32 = vpop.f32.mrf.mxu0 }
 0x463   :  { %v1196_v48 = vadd.f32 %v1195_v63, %v1127_v32  ;;  %v1265_v32 = vadd.f32 1.0, %v3131_v30  ;;  %v3137_v63 = vpop.eup %3136 }
 0x464   :  { %v3139_v27 = vpop.eup %3138  ;;  %v1268_v60 = vadd.f32 1.0, %v3137_v63 }
 0x465   :  { %v1221_v28 = vadd.f32 %v1196_v48, %v3994_v58  ;;  %3146 = vrcp.f32 %v1265_v32  ;;  %v1236_v48 = vsub.f32 0.0, %v1220_v50  ;;  %v3141_v26 = vpop.eup %3140 }
 0x466   :  { %3148 = vrcp.f32 %v1266_v8  ;;  %v3143_v42 = vpop.eup %3142 }
 0x467   :  { %v1237_v38 = vsub.f32 0.0, %v1221_v28  ;;  %3150 = vrcp.f32 %v1267_v13  ;;  %v1234_v28 = vsub.f32 0.0, %v1218_v45 }
 0x469   :  { %v1260_v61 = vmul.f32 1.442695, %v1237_v38  ;;  %v1254_v8 = vmul.f32 1.442695, %v1234_v28 }
 0x46a   :  { %v1130_v36 = vpop.f32.mrf.mxu0 }
 0x46b   :  { %v1199_v33 = vadd.f32 %v4567_v62, %v1130_v36  ;;  %v3145_v62 = vpop.eup %3144  ;;  %v1258_v36 = vmul.f32 1.442695, %v1236_v48 }
 0x46c   :  { %v3147_v44 = vpop.eup %3146 }
 0x46d   :  { %v1222_v30 = vadd.f32 %v1199_v33, %v4075_v10  ;;  %v3149_v7 = vpop.eup %3148 }
 0x46e   :  { %v3151_v5 = vpop.eup %3150 }
 0x46f   :  { %v1291_v48 = vmul.f32 %v3151_v5, %v4458_v14 }
 0x472   :  { %v1133_v39 = vpop.f32.mrf.mxu0 }
 0x473   :  { %v1202_v49 = vadd.f32 %v1201_v18, %v1133_v39  ;;  %v1269_v18 = vadd.f32 1.0, %v3139_v27  ;;  %v1235_v39 = vsub.f32 0.0, %v1219_v21 }
 0x475   :  { %v1223_v52 = vadd.f32 %v1202_v49, %v4018_v9  ;;  %v1256_v55 = vmul.f32 1.442695, %v1235_v39  ;;  %v1290_v39 = vmul.f32 %v3149_v7, %v4442_v35 }
 0x47a   :  { %v1136_v43 = vpop.f32.mrf.mxu0 }
 0x47b   :  { %v1205_v57 = vadd.f32 %v1204_v59, %v1136_v43 }
 0x47d   :  { %v1224_v31 = vadd.f32 %v1205_v57, %v4053_v40 }
 0x47f   :  { %3152 = vtanh.f32 %v1224_v31 }
 0x480   :  { %3154 = vrcp.f32 %v1268_v60 }
 0x481   :  { %3156 = vpow2.f32 %v1260_v61 }
 0x482   :  { %v1139_v51 = vpop.f32.mrf.mxu0  ;;  %3158 = vtanh.f32 %v1223_v52 }
 0x483   :  { %v1208_v59 = vadd.f32 %v1207_v20, %v1139_v51  ;;  %3160 = vrcp.f32 %v1269_v18 }
 0x484   :  { %3162 = vtanh.f32 %v1222_v30 }
 0x485   :  { %v1225_v56 = vadd.f32 %v1208_v59, %v4010_v0  ;;  %v3153_v32 = vpop.eup %3152  ;;  %3164 = vpow2.f32 %v1258_v36 }
 0x486   :  { %v3155_v63 = vpop.eup %3154  ;;  %v1296_v43 = vmul.f32 %v3153_v32, %v3145_v62  ;;  %v5462_v32 = vld [vmem:[#allocation8_spill] sm:$0xff] }
 0x487   :  { %3166 = vtanh.f32 %v1225_v56  ;;  %v3157_v50 = vpop.eup %3156  ;;  %v1292_v49 = vmul.f32 %v3155_v63, %v4465_v53  ;;  %v5463_v63 = vld [vmem:[#allocation3_spill] sm:$0xff] }
 0x488   :  { %3168 = vpow2.f32 %v1256_v55  ;;  %v3159_v38 = vpop.eup %3158  ;;  %v1273_v21 = vadd.f32 1.0, %v3157_v50  ;;  %v5465_v50 = vld [vmem:[#allocation4_spill] sm:$0xff] }
 0x489   :  { %v3161_v13 = vpop.eup %3160  ;;  %3170 = vpow2.f32 %v1254_v8  ;;  %v1295_v27 = vmul.f32 %v3159_v38, %v3143_v42  ;;  %v4588_v33 = vadd.f32 %v1296_v43, %v1292_v49  ;;  %v5464_v8 = vld [vmem:[#allocation10_spill] sm:$0xff]  ;;  %v5469_v43 = vld [vmem:[#allocation7_spill] sm:$0xff]  ;;  %v5471_v49 = vld [vmem:[#allocation9_spill] sm:$0xff] }
 0x48a   :  { %v3163_v47 = vpop.eup %3162  ;;  %v1293_v61 = vmul.f32 %v3161_v13, %v4470_v15  ;;  %3172 = vrcp.f32 %v1273_v21  ;;  %v5468_v38 = vld [vmem:[#allocation14_spill] sm:$0xff] }
 0x48b   :  { %v3165_v57 = vpop.eup %3164  ;;  %v1294_v45 = vmul.f32 %v3163_v47, %v3141_v26  ;;  %v4595_v53 = vadd.f32 %v1295_v27, %v1291_v48  ;;  %3174 = vtanh.f32 %v4588_v33  ;;  %v5470_v47 = vld [vmem:[#allocation16_spill] sm:$0xff]  ;;  %v5472_v21 = vld [vmem:[#allocation18_spill] sm:$0xff] }
 0x48c   :  { %v1272_v18 = vadd.f32 1.0, %v3165_v57 }
 0x48d   :  { %v3167_v60 = vpop.eup %3166  ;;  %v4599_v62 = vadd.f32 %v1294_v45, %v1290_v39  ;;  %v5474_v45 = vld [vmem:[#allocation13_spill] sm:$0xff]  ;;  %v5475_v39 = vld [vmem:[#allocation15_spill] sm:$0xff] }
 0x48e   :  { %v3169_v31 = vpop.eup %3168  ;;  %v1297_v52 = vmul.f32 %v3167_v60, %v3147_v44 }
 0x48f   :  { %v3171_v30 = vpop.eup %3170  ;;  %v1271_v42 = vadd.f32 1.0, %v3169_v31  ;;  %v5473_v31 = vld [vmem:[#allocation11_spill] sm:$0xff] }
 0x490   :  { %v4593_v20 = vadd.f32 %v1297_v52, %v1293_v61  ;;  %v1270_v14 = vadd.f32 1.0, %v3171_v30  ;;  %v3173_v15 = vpop.eup %3172 }
 0x491   :  { %v3175_v35 = vpop.eup %3174 }
 0x492   :  { %3176 = vtanh.f32 %v4593_v20 }
 0x493   :  { %3178 = vrcp.f32 %v1272_v18 }
 0x494   :  { %3180 = vtanh.f32 %v4595_v53 }
 0x495   :  { %3182 = vrcp.f32 %v1271_v42 }
 0x496   :  { %3184 = vtanh.f32 %v4599_v62 }
 0x497   :  { %3186 = vrcp.f32 %v1270_v14  ;;  %v5476_v14 = vld [vmem:[#allocation17_spill] sm:$0xff] }
 0x498   :  { %v3177_v26 = vpop.eup %3176 }
 0x499   :  { %v3179_v36 = vpop.eup %3178  ;;  %v1309_v51 = vmul.f32 %v3177_v26, %v3173_v15 }
 0x49a   :  { %v3181_v44 = vpop.eup %3180  ;;  %v1308_v59 = vmul.f32 %v3179_v36, %v3175_v35 }
 0x49b   :  { %v3183_v28 = vpop.eup %3182  ;;  %1324 = vmatpush.msra.mxu2 %v1309_v51 }
 0x49c   :  { %v3185_v7 = vpop.eup %3184  ;;  %v1307_v55 = vmul.f32 %v3183_v28, %v3181_v44 }
 0x49d   :  { %1325 = vmatpush.msra.mxu2 %v1308_v59  ;;  %v3187_v5 = vpop.eup %3186 }
 0x49e   :  { %v1306_v56 = vmul.f32 %v3187_v5, %v3185_v7 }
 0x49f   :  { %1326 = vmatpush.msra.mxu2 %v1307_v55 }
 0x4a1   :  { %1327 = vmatpush.msra.mxu2 %v1306_v56 }
 0x4a2   :  { %2761 = vmatmul.msk.f32.vlgmr.msra.gmra.mxu2 %vm273_vm3, %v4483_v22 }
 0x4aa   :  { %2762 = vmatmul.msk.f32.gmra.mxu2 %vm273_vm3, %v4492_v17 }
 0x4b2   :  { %2763 = vmatmul.msk.f32.gmra.mxu2 %vm273_vm3, %v4501_v19 }
 0x4ba   :  { %2764 = vmatmul.msk.f32.gmra.mxu2 %vm273_vm3, %v4510_v37 }
 0x4c2   :  { %2765 = vmatmul.msk.f32.gmra.mxu2 %vm273_vm3, %v4519_v29 }
 0x4ca   :  { %2766 = vmatmul.msk.f32.gmra.mxu2 %vm273_vm3, %v4209_v16  ;;  %v1397_v16 = vpop.f32.mrf.mxu3 }
 0x4d2   :  { %2767 = vmatmul.msk.f32.gmra.mxu2 %vm273_vm3, %v4216_v25  ;;  %v5466_v25 = vld [vmem:[#allocation12_spill] sm:$0xff] }
 0x4d3   :  { %2854 = vmatmul.msk.f32.gmra.mxu3 %vm387_vm4, %v5466_v25 }
 0x4da   :  { %2768 = vmatmul.msk.f32.gmra.mxu2 %vm273_vm3, %v5444_v11  ;;  %v5467_v11 = vld [vmem:[#allocation5_spill] sm:$0xff] }
 0x4e2   :  { %2769 = vmatmul.msk.f32.gmra.mxu2 %vm273_vm3, %v5446_v1  ;;  %v1400_v1 = vpop.f32.mrf.mxu3  ;;  %2855 = vmatmul.msk.f32.gmra.mxu3 %vm387_vm4, %v5468_v38 }
 0x4ea   :  { %2770 = vmatmul.msk.f32.gmra.mxu2 %vm273_vm3, %v5462_v32  ;;  %v1403_v13 = vpop.f32.mrf.mxu3  ;;  %2856 = vmatmul.msk.f32.gmra.mxu3 %vm387_vm4, %v5470_v47 }
 0x4f2   :  { %2771 = vmatmul.msk.f32.gmra.mxu2 %vm273_vm3, %v5463_v63  ;;  %v1406_v57 = vpop.f32.mrf.mxu3  ;;  %2857 = vmatmul.msk.f32.gmra.mxu3 %vm387_vm4, %v5472_v21 }
 0x4fa   :  { %2772 = vmatmul.msk.f32.gmra.mxu2 %vm273_vm3, %v5464_v8  ;;  %v1409_v60 = vpop.f32.mrf.mxu3  ;;  %2858 = vmatmul.msk.f32.gmra.mxu3 %vm387_vm4, %v5473_v31 }
 0x502   :  { %2773 = vmatmul.msk.f32.gmra.mxu2 %vm273_vm3, %v5465_v50  ;;  %v1412_v61 = vpop.f32.mrf.mxu3  ;;  %2859 = vmatmul.msk.f32.gmra.mxu3 %vm387_vm4, %v5474_v45 }
 0x50a   :  { %2774 = vmatmul.msk.f32.gmra.mxu2 %vm273_vm3, %v5467_v11  ;;  %v1415_v18 = vpop.f32.mrf.mxu3  ;;  %2860 = vmatmul.msk.f32.gmra.mxu3 %vm387_vm4, %v5475_v39 }
 0x512   :  { %2775 = vmatmul.msk.f32.gmra.mxu2 %vm273_vm3, %v5469_v43  ;;  %v1418_v42 = vpop.f32.mrf.mxu3  ;;  %2861 = vmatmul.msk.f32.gmra.mxu3 %vm387_vm4, %v5476_v14 }
 0x51a   :  { %2776 = vmatmul.msk.f32.gmra.mxu2 %vm273_vm3, %v5471_v49  ;;  %v4651_v36 = vpop.f32.mrf.mxu3 }
 0x522   :  { %v4653_v44 = vpop.f32.mrf.mxu3 }
 0x525   :  { %v1329_v27 = vpop.f32.mrf.mxu2 }
 0x526   :  { %v1398_v55 = vadd.f32 %v1397_v16, %v1329_v27 }
 0x528   :  { %v1445_v32 = vadd.f32 %v1398_v55, %v5457_v4 }
 0x52a   :  { %v4657_v59 = vpop.f32.mrf.mxu3  ;;  %v1461_v11 = vsub.f32 0.0, %v1445_v32 }
 0x52c   :  { %v1473_v21 = vmul.f32 1.442695, %v1461_v11 }
 0x52d   :  { %v1332_v48 = vpop.f32.mrf.mxu2 }
 0x52e   :  { %v1401_v63 = vadd.f32 %v1400_v1, %v1332_v48 }
 0x530   :  { %v1446_v43 = vadd.f32 %v1401_v63, %v5458_v23 }
 0x532   :  { %v1430_v25 = vpop.f32.mrf.mxu3 }
 0x535   :  { %v1335_v52 = vpop.f32.mrf.mxu2 }
 0x536   :  { %v1404_v31 = vadd.f32 %v1403_v13, %v1335_v52 }
 0x538   :  { %v1447_v14 = vadd.f32 %v1404_v31, %v4022_v12 }
 0x53a   :  { %v1433_v39 = vpop.f32.mrf.mxu3  ;;  %v1463_v32 = vsub.f32 0.0, %v1447_v14 }
 0x53d   :  { %v1338_v30 = vpop.f32.mrf.mxu2 }
 0x542   :  { %v1436_v11 = vpop.f32.mrf.mxu3 }
 0x545   :  { %v1341_v15 = vpop.f32.mrf.mxu2 }
 0x546   :  { %v1410_v7 = vadd.f32 %v1409_v60, %v1341_v15  ;;  %v1462_v60 = vsub.f32 0.0, %v1446_v43 }
 0x548   :  { %v1449_v56 = vadd.f32 %v1410_v7, %v5459_v54  ;;  %v1475_v1 = vmul.f32 1.442695, %v1462_v60 }
 0x54a   :  { %v1465_v8 = vsub.f32 0.0, %v1449_v56 }
 0x54c   :  { %v1481_v47 = vmul.f32 1.442695, %v1465_v8 }
 0x54d   :  { %v1344_v35 = vpop.f32.mrf.mxu2 }
 0x54e   :  { %v1413_v50 = vadd.f32 %v1412_v61, %v1344_v35  ;;  %3188 = vpow2.f32 %v1481_v47  ;;  %v1407_v35 = vadd.f32 %v1406_v57, %v1338_v30  ;;  %v1477_v47 = vmul.f32 1.442695, %v1463_v32 }
 0x54f   :  { %3190 = vpow2.f32 %v1473_v21 }
 0x550   :  { %v1450_v49 = vadd.f32 %v1413_v50, %v5460_v34  ;;  %3192 = vpow2.f32 %v1475_v1  ;;  %v1448_v13 = vadd.f32 %v1407_v35, %v3968_v46 }
 0x552   :  { %v1466_v16 = vsub.f32 0.0, %v1450_v49  ;;  %v1464_v49 = vsub.f32 0.0, %v1448_v13 }
 0x554   :  { %v1483_v48 = vmul.f32 1.442695, %v1466_v16  ;;  %v3189_v15 = vpop.eup %3188  ;;  %v1479_v60 = vmul.f32 1.442695, %v1464_v49 }
 0x555   :  { %v1347_v26 = vpop.f32.mrf.mxu2  ;;  %v3191_v7 = vpop.eup %3190  ;;  %v1501_v63 = vadd.f32 1.0, %v3189_v15 }
 0x556   :  { %v1416_v27 = vadd.f32 %v1415_v18, %v1347_v26  ;;  %3194 = vpow2.f32 %v1483_v48  ;;  %v1497_v18 = vadd.f32 1.0, %v3191_v7  ;;  %v3193_v43 = vpop.eup %3192 }
 0x557   :  { %3196 = vrcp.f32 %v1501_v63 }
 0x558   :  { %v1451_v61 = vadd.f32 %v1416_v27, %v5461_v24  ;;  %3198 = vrcp.f32 %v1497_v18 }
 0x55a   :  { %v1467_v55 = vsub.f32 0.0, %v1451_v61 }
 0x55c   :  { %v1485_v8 = vmul.f32 1.442695, %v1467_v55  ;;  %v3195_v30 = vpop.eup %3194 }
 0x55d   :  { %v1350_v51 = vpop.f32.mrf.mxu2  ;;  %v1502_v21 = vadd.f32 1.0, %v3195_v30  ;;  %v3197_v27 = vpop.eup %3196 }
 0x55e   :  { %v1419_v56 = vadd.f32 %v1418_v42, %v1350_v51  ;;  %v1498_v42 = vadd.f32 1.0, %v3193_v43  ;;  %v3199_v1 = vpop.eup %3198  ;;  %v1525_v35 = vmul.f32 %v3197_v27, %v4599_v62 }
 0x560   :  { %v1452_v50 = vadd.f32 %v1419_v56, %v5426_v3  ;;  %v1439_v56 = vpop.f32.mrf.mxu3 }
 0x562   :  { %v1468_v51 = vsub.f32 0.0, %v1452_v50 }
 0x564   :  { %v1487_v48 = vmul.f32 1.442695, %v1468_v51 }
 0x565   :  { %v4655_v28 = vpop.f32.mrf.mxu2 }
 0x56d   :  { %v4659_v5 = vpop.f32.mrf.mxu2 }
 0x575   :  { %v1359_v38 = vpop.f32.mrf.mxu2 }
 0x576   :  { %v1428_v7 = vadd.f32 %v4657_v59, %v1359_v38  ;;  %v1422_v59 = vadd.f32 %v4651_v36, %v4655_v28 }
 0x57d   :  { %v1362_v45 = vpop.f32.mrf.mxu2 }
 0x57e   :  { %v1431_v31 = vadd.f32 %v1430_v25, %v1362_v45  ;;  %v1425_v25 = vadd.f32 %v4653_v44, %v4659_v5 }
 0x580   :  { %v1456_v63 = vadd.f32 %v1431_v31, %v3994_v58  ;;  %v1454_v44 = vadd.f32 %v1425_v25, %v4012_v2 }
 0x582   :  { %v1472_v38 = vsub.f32 0.0, %v1456_v63 }
 0x584   :  { %v1495_v51 = vmul.f32 1.442695, %v1472_v38 }
 0x585   :  { %v1365_v52 = vpop.f32.mrf.mxu2 }
 0x586   :  { %v1434_v26 = vadd.f32 %v1433_v39, %v1365_v52 }
 0x588   :  { %v1457_v57 = vadd.f32 %v1434_v26, %v4075_v10  ;;  %v1455_v26 = vadd.f32 %v1428_v7, %v4042_v41 }
 0x58a   :  { %3200 = vtanh.f32 %v1457_v57  ;;  %v4690_v57 = vld [vmem:[%s5282_s6] sm:$0xff]  ;;  %v1471_v30 = vsub.f32 0.0, %v1455_v26 }
 0x58b   :  { %3202 = vpow2.f32 %v1485_v8  ;;  %5477 = vst [vmem:[#allocation19_spill] sm:$0xff] %v4690_v57 }
 0x58c   :  { %3204 = vpow2.f32 %v1477_v47 }
 0x58d   :  { %v1368_v16 = vpop.f32.mrf.mxu2  ;;  %3206 = vrcp.f32 %v1498_v42  ;;  %v1453_v42 = vadd.f32 %v1422_v59, %v4016_v6  ;;  %v4712_v59 = vld [vmem:[%s5282_s6 + $0x10] sm:$0xff] }
 0x58e   :  { %v1437_v39 = vadd.f32 %v1436_v11, %v1368_v16  ;;  %3208 = vrcp.f32 %v1502_v21  ;;  %v2794_v11 = vld [vmem:[%s5279_s1 + $0x28] sm:$0x3f]  ;;  %v1442_v16 = vpop.f32.mrf.mxu3  ;;  %5479 = vst [vmem:[#allocation2_spill] sm:$0xff] %v4712_v59 }
 0x58f   :  { %3210 = vpow2.f32 %v1479_v60  ;;  %2811 = vmatpush.msk.msrb.mxu1 %vm436_vm1, %v2794_v11  ;;  %v1470_v60 = vsub.f32 0.0, %v1454_v44 }
 0x590   :  { %v3201_v61 = vpop.eup %3200  ;;  %v1458_v14 = vadd.f32 %v1437_v39, %v4018_v9  ;;  %2812 = vmatmul.msk.f32.vlgmr.msrb.gmra.mxu1 %vm387_vm4, %v4690_v57  ;;  %v1493_v39 = vmul.f32 1.442695, %v1471_v30 }
 0x591   :  { %v3203_v15 = vpop.eup %3202  ;;  %v1529_v55 = vmul.f32 %v3201_v61, %v3199_v1  ;;  %v1469_v61 = vsub.f32 0.0, %v1453_v42 }
 0x592   :  { %v3205_v32 = vpop.eup %3204  ;;  %3212 = vtanh.f32 %v1458_v14  ;;  %v1503_v18 = vadd.f32 1.0, %v3203_v15 }
 0x593   :  { %3214 = vpow2.f32 %v1487_v48  ;;  %v4676_v45 = vadd.f32 %v1529_v55, %v1525_v35  ;;  %v3207_v13 = vpop.eup %3206  ;;  %v1499_v52 = vadd.f32 1.0, %v3205_v32  ;;  %v4702_v55 = vld [vmem:[%s5282_s6 + $0x8] sm:$0xff]  ;;  %v1489_v63 = vmul.f32 1.442695, %v1469_v61 }
 0x594   :  { %v3209_v8 = vpop.eup %3208  ;;  %3216 = vrcp.f32 %v1503_v18  ;;  %5478 = vst [vmem:[#allocation6_spill] sm:$0xff] %v4702_v55  ;;  %v4742_v61 = vld [vmem:[%s5282_s6 + $0x28] sm:$0xff] }
 0x595   :  { %v1371_v62 = vpop.f32.mrf.mxu2  ;;  %v3211_v43 = vpop.eup %3210  ;;  %3218 = vrcp.f32 %v1499_v52  ;;  %v1526_v28 = vmul.f32 %v3209_v8, %v4595_v53  ;;  %v1491_v53 = vmul.f32 1.442695, %v1470_v60  ;;  %5482 = vst [vmem:[#allocation22_spill] sm:$0xff] %v4742_v61 }
 0x596   :  { %v1440_v50 = vadd.f32 %v1439_v56, %v1371_v62  ;;  %v1500_v21 = vadd.f32 1.0, %v3211_v43 }
 0x598   :  { %v3213_v5 = vpop.eup %3212  ;;  %v1459_v47 = vadd.f32 %v1440_v50, %v4053_v40  ;;  %2813 = vmatmul.msk.f32.gmra.mxu1 %vm387_vm4, %v4702_v55 }
 0x599   :  { %v3215_v36 = vpop.eup %3214  ;;  %v1530_v49 = vmul.f32 %v3213_v5, %v3207_v13 }
 0x59a   :  { %3220 = vtanh.f32 %v1459_v47  ;;  %v1504_v31 = vadd.f32 1.0, %v3215_v36  ;;  %v3217_v48 = vpop.eup %3216 }
 0x59b   :  { %v4696_v27 = vadd.f32 %v1530_v49, %v1526_v28  ;;  %3222 = vpow2.f32 %v1495_v51  ;;  %v3219_v15 = vpop.eup %3218  ;;  %v1527_v56 = vmul.f32 %v3217_v48, %v4588_v33 }
 0x59c   :  { %3224 = vrcp.f32 %v1500_v21 }
 0x59d   :  { %v1374_v1 = vpop.f32.mrf.mxu2  ;;  %3226 = vrcp.f32 %v1504_v31 }
 0x59e   :  { %v1443_v14 = vadd.f32 %v1442_v16, %v1374_v1  ;;  %3228 = vpow2.f32 %v1493_v39  ;;  %v4733_v39 = vld [vmem:[%s5282_s6 + $0x20] sm:$0xff] }
 0x59f   :  { %5481 = vst [vmem:[#allocation20_spill] sm:$0xff] %v4733_v39 }
 0x5a0   :  { %v3221_v35 = vpop.eup %3220  ;;  %v1460_v7 = vadd.f32 %v1443_v14, %v4010_v0  ;;  %2814 = vmatmul.msk.f32.gmra.mxu1 %vm387_vm4, %v4712_v59  ;;  %v4751_v14 = vld [vmem:[%s5282_s6 + $0x30] sm:$0xff] }
 0x5a1   :  { %v1531_v32 = vmul.f32 %v3221_v35, %v3219_v15  ;;  %v3223_v18 = vpop.eup %3222  ;;  %5483 = vst [vmem:[#allocation21_spill] sm:$0xff] %v4751_v14  ;;  %v4799_v15 = vld [vmem:[%s5281_s7 + $0x30] sm:$0xff]  ;;  %v4813_v35 = vld [vmem:[%s5281_s7 + $0x38] sm:$0xff] }
 0x5a2   :  { %3230 = vtanh.f32 %v1460_v7  ;;  %v3225_v13 = vpop.eup %3224  ;;  %v1508_v62 = vadd.f32 1.0, %v3223_v18  ;;  %v4820_v7 = vld [vmem:[%s5282_s6 + $0x60] sm:$0xff]  ;;  %v4848_v18 = vld [vmem:[%s5282_s6 + $0x70] sm:$0xff] }
 0x5a3   :  { %3232 = vpow2.f32 %v1491_v53  ;;  %v4707_v25 = vadd.f32 %v1531_v32, %v1527_v56  ;;  %v3227_v52 = vpop.eup %3226  ;;  %v4806_v53 = vld [vmem:[%s5282_s6 + $0x58] sm:$0xff]  ;;  %5489 = vst [vmem:[#allocation12_spill] sm:$0xff] %v4820_v7  ;;  %v4827_v56 = vld [vmem:[%s5281_s7 + $0x40] sm:$0xff]  ;;  %v4834_v32 = vld [vmem:[%s5282_s6 + $0x68] sm:$0xff] }
 0x5a4   :  { %3234 = vpow2.f32 %v1489_v63  ;;  %v3229_v26 = vpop.eup %3228  ;;  %v1528_v38 = vmul.f32 %v3227_v52, %v4593_v20  ;;  %v4725_v20 = vld [vmem:[%s5282_s6 + $0x18] sm:$0xff]  ;;  %5488 = vst [vmem:[#allocation4_spill] sm:$0xff] %v4806_v53  ;;  %v4841_v63 = vld [vmem:[%s5281_s7 + $0x48] sm:$0xff] }
 0x5a5   :  { %v1507_v11 = vadd.f32 1.0, %v3229_v26  ;;  %3236 = vrcp.f32 %v1508_v62  ;;  %5480 = vst [vmem:[#allocation24_spill] sm:$0xff] %v4725_v20  ;;  %v4862_v52 = vld [vmem:[%s5282_s6 + $0x78] sm:$0xff] }
 0x5a6   :  { %3238 = vtanh.f32 %v4707_v25  ;;  %5490 = vst [vmem:[#allocation5_spill] sm:$0xff] %v4827_v56  ;;  %v4869_v26 = vld [vmem:[%s5281_s7 + $0x58] sm:$0xff] }
 0x5a7   :  { %5491 = vst [vmem:[#allocation14_spill] sm:$0xff] %v4834_v32 }
 0x5a8   :  { %v3231_v8 = vpop.eup %3230  ;;  %2815 = vmatmul.msk.f32.gmra.mxu1 %vm387_vm4, %v4725_v20  ;;  %5492 = vst [vmem:[#allocation7_spill] sm:$0xff] %v4841_v63 }
 0x5a9   :  { %v3233_v33 = vpop.eup %3232  ;;  %v1532_v50 = vmul.f32 %v3231_v8, %v3225_v13  ;;  %5493 = vst [vmem:[#allocation16_spill] sm:$0xff] %v4848_v18  ;;  %v4855_v13 = vld [vmem:[%s5281_s7 + $0x50] sm:$0xff]  ;;  %v4876_v8 = vld [vmem:[%s5281_s7 + $0x60] sm:$0xff] }
 0x5aa   :  { %v3235_v44 = vpop.eup %3234  ;;  %v1506_v5 = vadd.f32 1.0, %v3233_v33  ;;  %5494 = vst [vmem:[#allocation9_spill] sm:$0xff] %v4855_v13 }
 0x5ab   :  { %v4717_v43 = vadd.f32 %v1532_v50, %v1528_v38  ;;  %v1505_v47 = vadd.f32 1.0, %v3235_v44  ;;  %v3237_v36 = vpop.eup %3236  ;;  %5495 = vst [vmem:[#allocation18_spill] sm:$0xff] %v4862_v52  ;;  %v4883_v38 = vld [vmem:[%s5281_s7 + $0x68] sm:$0xff]  ;;  %v4890_v50 = vld [vmem:[%s5281_s7 + $0x70] sm:$0xff]  ;;  %v4897_v44 = vld [vmem:[%s5281_s7 + $0x78] sm:$0xff] }
 0x5ac   :  { %v3239_v28 = vpop.eup %3238  ;;  %5496 = vst [vmem:[#allocation11_spill] sm:$0xff] %v4869_v26 }
 0x5ad   :  { %3240 = vtanh.f32 %v4717_v43  ;;  %5497 = vst [vmem:[#allocation13_spill] sm:$0xff] %v4876_v8 }
 0x5ae   :  { %3242 = vrcp.f32 %v1507_v11  ;;  %5498 = vst [vmem:[#allocation15_spill] sm:$0xff] %v4883_v38 }
 0x5af   :  { %3244 = vtanh.f32 %v4696_v27  ;;  %5499 = vst [vmem:[#allocation17_spill] sm:$0xff] %v4890_v50 }
 0x5b0   :  { %3246 = vrcp.f32 %v1506_v5  ;;  %2816 = vmatmul.msk.f32.gmra.mxu1 %vm387_vm4, %v4733_v39  ;;  %5500 = vst [vmem:[#allocation25_spill] sm:$0xff] %v4897_v44 }
 0x5b1   :  { %3248 = vtanh.f32 %v4676_v45 }
 0x5b2   :  { %3250 = vrcp.f32 %v1505_v47 }
 0x5b3   :  { %v3241_v30 = vpop.eup %3240 }
 0x5b4   :  { %v3243_v49 = vpop.eup %3242  ;;  %v1544_v42 = vmul.f32 %v3241_v30, %v3237_v36 }
 0x5b5   :  { %v3245_v51 = vpop.eup %3244  ;;  %v1543_v60 = vmul.f32 %v3243_v49, %v3239_v28 }
 0x5b6   :  { %v3247_v21 = vpop.eup %3246  ;;  %1559 = vmatpush.msra.mxu0 %v1544_v42 }
 0x5b7   :  { %v3249_v16 = vpop.eup %3248  ;;  %v1542_v31 = vmul.f32 %v3247_v21, %v3245_v51 }
 0x5b8   :  { %1560 = vmatpush.msra.mxu0 %v1543_v60  ;;  %v3251_v1 = vpop.eup %3250  ;;  %2817 = vmatmul.msk.f32.gmra.mxu1 %vm387_vm4, %v4742_v61 }
 0x5b9   :  { %v1541_v48 = vmul.f32 %v3251_v1, %v3249_v16 }
 0x5ba   :  { %1561 = vmatpush.msra.mxu0 %v1542_v31 }
 0x5bc   :  { %1562 = vmatpush.msra.mxu0 %v1541_v48 }
 0x5bd   :  { %2795 = vmatmul.msk.f32.vlgmr.msra.gmra.mxu0 %vm273_vm3, %v4483_v22  ;;  %v4760_v22 = vld [vmem:[%s5282_s6 + $0x38] sm:$0xff] }
 0x5be   :  { %5484 = vst [vmem:[#allocation23_spill] sm:$0xff] %v4760_v22 }
 0x5c0   :  { %2818 = vmatmul.msk.f32.gmra.mxu1 %vm387_vm4, %v4751_v14 }
 0x5c5   :  { %2796 = vmatmul.msk.f32.gmra.mxu0 %vm273_vm3, %v4492_v17  ;;  %v4769_v17 = vld [vmem:[%s5282_s6 + $0x40] sm:$0xff] }
 0x5c6   :  { %5485 = vst [vmem:[#allocation8_spill] sm:$0xff] %v4769_v17 }
 0x5c8   :  { %2819 = vmatmul.msk.f32.gmra.mxu1 %vm387_vm4, %v4760_v22 }
 0x5cd   :  { %2797 = vmatmul.msk.f32.gmra.mxu0 %vm273_vm3, %v4501_v19  ;;  %v4778_v19 = vld [vmem:[%s5282_s6 + $0x48] sm:$0xff] }
 0x5ce   :  { %5486 = vst [vmem:[#allocation3_spill] sm:$0xff] %v4778_v19 }
 0x5d0   :  { %2820 = vmatmul.msk.f32.gmra.mxu1 %vm387_vm4, %v4769_v17 }
 0x5d5   :  { %2798 = vmatmul.msk.f32.gmra.mxu0 %vm273_vm3, %v4510_v37  ;;  %v4785_v37 = vld [vmem:[%s5281_s7 + $0x28] sm:$0xff] }
 0x5d8   :  { %2821 = vmatmul.msk.f32.gmra.mxu1 %vm387_vm4, %v4778_v19 }
 0x5dd   :  { %2799 = vmatmul.msk.f32.gmra.mxu0 %vm273_vm3, %v4519_v29  ;;  %v4792_v29 = vld [vmem:[%s5282_s6 + $0x50] sm:$0xff] }
 0x5de   :  { %5487 = vst [vmem:[#allocation10_spill] sm:$0xff] %v4792_v29 }
 0x5e0   :  { %2822 = vmatmul.msk.f32.gmra.mxu1 %vm387_vm4, %v4792_v29 }
 0x5e5   :  { %2800 = vmatmul.msk.f32.gmra.mxu0 %vm273_vm3, %v4785_v37 }
 0x5e8   :  { %2823 = vmatmul.msk.f32.gmra.mxu1 %vm387_vm4, %v4806_v53 }
 0x5ed   :  { %2801 = vmatmul.msk.f32.gmra.mxu0 %vm273_vm3, %v4799_v15 }
 0x5f0   :  { %2824 = vmatmul.msk.f32.gmra.mxu1 %vm387_vm4, %v4820_v7 }
 0x5f5   :  { %2802 = vmatmul.msk.f32.gmra.mxu0 %vm273_vm3, %v4813_v35 }
 0x5f8   :  { %2825 = vmatmul.msk.f32.gmra.mxu1 %vm387_vm4, %v4834_v32 }
 0x5fd   :  { %2803 = vmatmul.msk.f32.gmra.mxu0 %vm273_vm3, %v4827_v56 }
 0x600   :  { %2826 = vmatmul.msk.f32.gmra.mxu1 %vm387_vm4, %v4848_v18 }
 0x605   :  { %2804 = vmatmul.msk.f32.gmra.mxu0 %vm273_vm3, %v4841_v63 }
 0x608   :  { %2827 = vmatmul.msk.f32.gmra.mxu1 %vm387_vm4, %v4862_v52 }
 0x60d   :  { %2805 = vmatmul.msk.f32.gmra.mxu0 %vm273_vm3, %v4855_v13  ;;  %v1632_v62 = vpop.f32.mrf.mxu1 }
 0x615   :  { %2806 = vmatmul.msk.f32.gmra.mxu0 %vm273_vm3, %v4869_v26  ;;  %v1635_v33 = vpop.f32.mrf.mxu1 }
 0x61d   :  { %2807 = vmatmul.msk.f32.gmra.mxu0 %vm273_vm3, %v4876_v8  ;;  %v1638_v11 = vpop.f32.mrf.mxu1 }
 0x625   :  { %2808 = vmatmul.msk.f32.gmra.mxu0 %vm273_vm3, %v4883_v38  ;;  %v1641_v5 = vpop.f32.mrf.mxu1 }
 0x62d   :  { %2809 = vmatmul.msk.f32.gmra.mxu0 %vm273_vm3, %v4890_v50  ;;  %v1644_v28 = vpop.f32.mrf.mxu1 }
 0x635   :  { %2810 = vmatmul.msk.f32.gmra.mxu0 %vm273_vm3, %v4897_v44  ;;  %v1647_v49 = vpop.f32.mrf.mxu1 }
 0x63a   :  { %v1564_v47 = vpop.f32.mrf.mxu0 }
 0x63b   :  { %v1633_v19 = vadd.f32 %v1632_v62, %v1564_v47 }
 0x63d   :  { %v1650_v51 = vpop.f32.mrf.mxu1  ;;  %v1680_v14 = vadd.f32 %v1633_v19, %v5457_v4 }
 0x63f   :  { %v1696_v50 = vsub.f32 0.0, %v1680_v14 }
 0x642   :  { %v1567_v36 = vpop.f32.mrf.mxu0 }
 0x643   :  { %v1636_v17 = vadd.f32 %v1635_v33, %v1567_v36 }
 0x645   :  { %v1653_v60 = vpop.f32.mrf.mxu1  ;;  %v1681_v39 = vadd.f32 %v1636_v17, %v5458_v23 }
 0x647   :  { %v1697_v26 = vsub.f32 0.0, %v1681_v39 }
 0x649   :  { %v1710_v36 = vmul.f32 1.442695, %v1697_v26 }
 0x64a   :  { %v1570_v30 = vpop.f32.mrf.mxu0 }
 0x64b   :  { %v1639_v22 = vadd.f32 %v1638_v11, %v1570_v30 }
 0x64d   :  { %v4901_v1 = vpop.f32.mrf.mxu1  ;;  %v1682_v44 = vadd.f32 %v1639_v22, %v4022_v12 }
 0x64f   :  { %v1698_v19 = vsub.f32 0.0, %v1682_v44 }
 0x651   :  { %v1712_v22 = vmul.f32 1.442695, %v1698_v19 }
 0x652   :  { %v1573_v42 = vpop.f32.mrf.mxu0 }
 0x653   :  { %v1642_v61 = vadd.f32 %v1641_v5, %v1573_v42  ;;  %v1708_v5 = vmul.f32 1.442695, %v1696_v50 }
 0x655   :  { %v4903_v52 = vpop.f32.mrf.mxu1  ;;  %v1683_v38 = vadd.f32 %v1642_v61, %v3968_v46  ;;  %3252 = vpow2.f32 %v1708_v5 }
 0x656   :  { %3254 = vpow2.f32 %v1710_v36 }
 0x657   :  { %v1699_v17 = vsub.f32 0.0, %v1683_v38  ;;  %3256 = vpow2.f32 %v1712_v22 }
 0x659   :  { %v1714_v61 = vmul.f32 1.442695, %v1699_v17 }
 0x65a   :  { %v1576_v21 = vpop.f32.mrf.mxu0 }
 0x65b   :  { %v1645_v20 = vadd.f32 %v1644_v28, %v1576_v21  ;;  %3258 = vpow2.f32 %v1714_v61 }
 0x65d   :  { %v1662_v32 = vpop.f32.mrf.mxu1  ;;  %v1684_v62 = vadd.f32 %v1645_v20, %v5459_v54 }
 0x65f   :  { %v1700_v28 = vsub.f32 0.0, %v1684_v62 }
 0x661   :  { %v1716_v20 = vmul.f32 1.442695, %v1700_v28 }
 0x662   :  { %v1579_v16 = vpop.f32.mrf.mxu0 }
 0x663   :  { %v1648_v59 = vadd.f32 %v1647_v49, %v1579_v16  ;;  %3260 = vpow2.f32 %v1716_v20 }
 0x665   :  { %v1665_v53 = vpop.f32.mrf.mxu1  ;;  %v1685_v33 = vadd.f32 %v1648_v59, %v5460_v34 }
 0x667   :  { %v1701_v30 = vsub.f32 0.0, %v1685_v33 }
 0x669   :  { %v1718_v59 = vmul.f32 1.442695, %v1701_v30 }
 0x66a   :  { %v1582_v31 = vpop.f32.mrf.mxu0 }
 0x66b   :  { %v1651_v8 = vadd.f32 %v1650_v51, %v1582_v31  ;;  %3262 = vpow2.f32 %v1718_v59 }
 0x66d   :  { %v4909_v57 = vpop.f32.mrf.mxu1  ;;  %v1686_v47 = vadd.f32 %v1651_v8, %v5461_v24  ;;  %v3253_v8 = vpop.eup %3252 }
 0x66e   :  { %v3255_v51 = vpop.eup %3254  ;;  %v1732_v16 = vadd.f32 1.0, %v3253_v8 }
 0x66f   :  { %v1702_v39 = vsub.f32 0.0, %v1686_v47 }
 0x671   :  { %v1720_v38 = vmul.f32 1.442695, %v1702_v39 }
 0x672   :  { %v1585_v48 = vpop.f32.mrf.mxu0 }
 0x673   :  { %v1654_v11 = vadd.f32 %v1653_v60, %v1585_v48  ;;  %3264 = vpow2.f32 %v1720_v38  ;;  %v3257_v60 = vpop.eup %3256  ;;  %v1733_v48 = vadd.f32 1.0, %v3255_v51 }
 0x674   :  { %v3259_v31 = vpop.eup %3258  ;;  %v1734_v17 = vadd.f32 1.0, %v3257_v60 }
 0x675   :  { %v1687_v14 = vadd.f32 %v1654_v11, %v5426_v3  ;;  %v1671_v42 = vpop.f32.mrf.mxu1  ;;  %v3261_v11 = vpop.eup %3260 }
 0x676   :  { %v3263_v5 = vpop.eup %3262  ;;  %v1736_v36 = vadd.f32 1.0, %v3261_v11 }
 0x677   :  { %v1703_v44 = vsub.f32 0.0, %v1687_v14  ;;  %v1737_v14 = vadd.f32 1.0, %v3263_v5 }
 0x679   :  { %v1722_v21 = vmul.f32 1.442695, %v1703_v44 }
 0x67a   :  { %v4905_v18 = vpop.f32.mrf.mxu0 }
 0x67b   :  { %3266 = vpow2.f32 %v1722_v21 }
 0x67c   :  { %3268 = vrcp.f32 %v1732_v16 }
 0x67d   :  { %v1674_v19 = vpop.f32.mrf.mxu1  ;;  %3270 = vrcp.f32 %v1733_v48 }
 0x67e   :  { %3272 = vrcp.f32 %v1734_v17 }
 0x682   :  { %v1591_v7 = vpop.f32.mrf.mxu0 }
 0x683   :  { %v1660_v47 = vadd.f32 %v4903_v52, %v1591_v7 }
 0x685   :  { %v1689_v39 = vadd.f32 %v1660_v47, %v4012_v2  ;;  %v1677_v51 = vpop.f32.mrf.mxu1 }
 0x68a   :  { %v1594_v29 = vpop.f32.mrf.mxu0 }
 0x68b   :  { %v1663_v62 = vadd.f32 %v1662_v32, %v1594_v29  ;;  %v1657_v29 = vadd.f32 %v4901_v1, %v4905_v18 }
 0x68d   :  { %v1690_v28 = vadd.f32 %v1663_v62, %v4042_v41 }
 0x68f   :  { %v1706_v44 = vsub.f32 0.0, %v1690_v28 }
 0x692   :  { %v1597_v55 = vpop.f32.mrf.mxu0 }
 0x693   :  { %v1666_v26 = vadd.f32 %v1665_v53, %v1597_v55  ;;  %v1735_v55 = vadd.f32 1.0, %v3259_v31  ;;  %v3265_v53 = vpop.eup %3264 }
 0x694   :  { %v3267_v20 = vpop.eup %3266  ;;  %v1738_v7 = vadd.f32 1.0, %v3265_v53 }
 0x695   :  { %v1691_v33 = vadd.f32 %v1666_v26, %v3994_v58  ;;  %3274 = vrcp.f32 %v1735_v55  ;;  %v3269_v8 = vpop.eup %3268  ;;  %v1688_v26 = vadd.f32 %v1657_v29, %v4016_v6 }
 0x696   :  { %3276 = vrcp.f32 %v1736_v36  ;;  %v3271_v1 = vpop.eup %3270 }
 0x697   :  { %v1707_v30 = vsub.f32 0.0, %v1691_v33  ;;  %3278 = vrcp.f32 %v1737_v14  ;;  %v1704_v31 = vsub.f32 0.0, %v1688_v26 }
 0x699   :  { %v1730_v38 = vmul.f32 1.442695, %v1707_v30  ;;  %v1724_v47 = vmul.f32 1.442695, %v1704_v31 }
 0x69a   :  { %v1600_v49 = vpop.f32.mrf.mxu0 }
 0x69b   :  { %v1669_v52 = vadd.f32 %v4909_v57, %v1600_v49  ;;  %v3273_v57 = vpop.eup %3272  ;;  %v1728_v49 = vmul.f32 1.442695, %v1706_v44 }
 0x69c   :  { %v3275_v16 = vpop.eup %3274 }
 0x69d   :  { %v1692_v21 = vadd.f32 %v1669_v52, %v4075_v10  ;;  %v3277_v62 = vpop.eup %3276 }
 0x69e   :  { %v1760_v26 = vmul.f32 %v3277_v62, %v4676_v45 }
 0x6a2   :  { %v1603_v50 = vpop.f32.mrf.mxu0 }
 0x6a3   :  { %v1672_v32 = vadd.f32 %v1671_v42, %v1603_v50  ;;  %v1739_v42 = vadd.f32 1.0, %v3267_v20  ;;  %v1705_v50 = vsub.f32 0.0, %v1689_v39 }
 0x6a5   :  { %v1693_v18 = vadd.f32 %v1672_v32, %v4018_v9  ;;  %v1726_v33 = vmul.f32 1.442695, %v1705_v50 }
 0x6aa   :  { %v1606_v22 = vpop.f32.mrf.mxu0 }
 0x6ab   :  { %v1675_v61 = vadd.f32 %v1674_v19, %v1606_v22  ;;  %v3279_v19 = vpop.eup %3278 }
 0x6ac   :  { %v1761_v52 = vmul.f32 %v3279_v19, %v4696_v27  ;;  %v4955_v19 = vld [vmem:[%s5281_s7 + $0x8] sm:$0xff] }
 0x6ad   :  { %v1694_v59 = vadd.f32 %v1675_v61, %v4053_v40 }
 0x6af   :  { %3280 = vtanh.f32 %v1694_v59 }
 0x6b0   :  { %3282 = vrcp.f32 %v1738_v7 }
 0x6b1   :  { %3284 = vpow2.f32 %v1730_v38 }
 0x6b2   :  { %v1609_v60 = vpop.f32.mrf.mxu0  ;;  %3286 = vtanh.f32 %v1693_v18 }
 0x6b3   :  { %v1678_v48 = vadd.f32 %v1677_v51, %v1609_v60  ;;  %3288 = vrcp.f32 %v1739_v42 }
 0x6b4   :  { %3290 = vtanh.f32 %v1692_v21 }
 0x6b5   :  { %v1695_v11 = vadd.f32 %v1678_v48, %v4010_v0  ;;  %v3281_v5 = vpop.eup %3280  ;;  %3292 = vpow2.f32 %v1728_v49 }
 0x6b6   :  { %v3283_v17 = vpop.eup %3282  ;;  %v1766_v36 = vmul.f32 %v3281_v5, %v3273_v57  ;;  %v4969_v5 = vld [vmem:[%s5281_s7 + $0x18] sm:$0xff] }
 0x6b7   :  { %3294 = vtanh.f32 %v1695_v11  ;;  %v3285_v55 = vpop.eup %3284  ;;  %v1762_v22 = vmul.f32 %v3283_v17, %v4707_v25  ;;  %v4962_v11 = vld [vmem:[%s5281_s7 + $0x10] sm:$0xff]  ;;  %v4976_v17 = vld [vmem:[%s5281_s7 + $0x20] sm:$0xff] }
 0x6b8   :  { %3296 = vpow2.f32 %v1726_v33  ;;  %v3287_v53 = vpop.eup %3286  ;;  %v1743_v29 = vadd.f32 1.0, %v3285_v55  ;;  %v4948_v33 = vld [vmem:[%s5281_s7] sm:$0xff]  ;;  %v5502_v55 = vld [vmem:[#allocation13_spill] sm:$0xff] }
 0x6b9   :  { %v3289_v28 = vpop.eup %3288  ;;  %3298 = vpow2.f32 %v1724_v47  ;;  %v1765_v32 = vmul.f32 %v3287_v53, %v3271_v1  ;;  %v4930_v39 = vadd.f32 %v1766_v36, %v1762_v22  ;;  %v5501_v47 = vld [vmem:[#allocation11_spill] sm:$0xff]  ;;  %v1867_v53 = vpop.f32.mrf.mxu3 }
 0x6ba   :  { %v3291_v30 = vpop.eup %3290  ;;  %v1763_v59 = vmul.f32 %v3289_v28, %v4717_v43  ;;  %3300 = vrcp.f32 %v1743_v29  ;;  %v5503_v36 = vld [vmem:[#allocation15_spill] sm:$0xff] }
 0x6bb   :  { %v3293_v14 = vpop.eup %3292  ;;  %v1764_v7 = vmul.f32 %v3291_v30, %v3269_v8  ;;  %v4935_v18 = vadd.f32 %v1765_v32, %v1761_v52  ;;  %3302 = vtanh.f32 %v4930_v39  ;;  %v5504_v30 = vld [vmem:[#allocation17_spill] sm:$0xff] }
 0x6bc   :  { %v1742_v38 = vadd.f32 1.0, %v3293_v14  ;;  %v5505_v14 = vld [vmem:[#allocation25_spill] sm:$0xff] }
 0x6bd   :  { %v3295_v61 = vpop.eup %3294  ;;  %v4940_v50 = vadd.f32 %v1764_v7, %v1760_v26 }
 0x6be   :  { %v3297_v20 = vpop.eup %3296  ;;  %v1767_v44 = vmul.f32 %v3295_v61, %v3275_v16 }
 0x6bf   :  { %v3299_v42 = vpop.eup %3298  ;;  %v1741_v1 = vadd.f32 1.0, %v3297_v20 }
 0x6c0   :  { %v4937_v25 = vadd.f32 %v1767_v44, %v1763_v59  ;;  %v1740_v27 = vadd.f32 1.0, %v3299_v42  ;;  %v3301_v43 = vpop.eup %3300 }
 0x6c1   :  { %v3303_v45 = vpop.eup %3302  ;;  %v1870_v28 = vpop.f32.mrf.mxu3 }
 0x6c2   :  { %3304 = vtanh.f32 %v4937_v25 }
 0x6c3   :  { %3306 = vrcp.f32 %v1742_v38 }
 0x6c4   :  { %3308 = vtanh.f32 %v4935_v18 }
 0x6c5   :  { %3310 = vrcp.f32 %v1741_v1 }
 0x6c6   :  { %3312 = vtanh.f32 %v4940_v50 }
 0x6c7   :  { %3314 = vrcp.f32 %v1740_v27 }
 0x6c8   :  { %v3305_v8 = vpop.eup %3304 }
 0x6c9   :  { %v3307_v51 = vpop.eup %3306  ;;  %v1779_v21 = vmul.f32 %v3305_v8, %v3301_v43  ;;  %v1873_v22 = vpop.f32.mrf.mxu3 }
 0x6ca   :  { %v3309_v57 = vpop.eup %3308  ;;  %v1778_v60 = vmul.f32 %v3307_v51, %v3303_v45 }
 0x6cb   :  { %v3311_v49 = vpop.eup %3310  ;;  %1794 = vmatpush.msrb.mxu2 %v1779_v21 }
 0x6cc   :  { %v3313_v16 = vpop.eup %3312  ;;  %v1777_v31 = vmul.f32 %v3311_v49, %v3309_v57 }
 0x6cd   :  { %1795 = vmatpush.msrb.mxu2 %v1778_v60  ;;  %v3315_v48 = vpop.eup %3314 }
 0x6ce   :  { %v1776_v62 = vmul.f32 %v3315_v48, %v3313_v16 }
 0x6cf   :  { %1796 = vmatpush.msrb.mxu2 %v1777_v31 }
 0x6d1   :  { %1797 = vmatpush.msrb.mxu2 %v1776_v62  ;;  %v1876_v29 = vpop.f32.mrf.mxu3 }
 0x6d2   :  { %2829 = vmatmul.msk.f32.vlgmr.msrb.gmra.mxu2 %vm273_vm3, %v4948_v33 }
 0x6d9   :  { %v1879_v20 = vpop.f32.mrf.mxu3 }
 0x6da   :  { %2830 = vmatmul.msk.f32.gmra.mxu2 %vm273_vm3, %v4955_v19 }
 0x6e1   :  { %v1882_v52 = vpop.f32.mrf.mxu3 }
 0x6e2   :  { %2831 = vmatmul.msk.f32.gmra.mxu2 %vm273_vm3, %v4962_v11 }
 0x6e9   :  { %v1885_v44 = vpop.f32.mrf.mxu3 }
 0x6ea   :  { %2832 = vmatmul.msk.f32.gmra.mxu2 %vm273_vm3, %v4969_v5 }
 0x6f1   :  { %v1888_v26 = vpop.f32.mrf.mxu3 }
 0x6f2   :  { %2833 = vmatmul.msk.f32.gmra.mxu2 %vm273_vm3, %v4976_v17 }
 0x6f9   :  { %v5002_v43 = vpop.f32.mrf.mxu3 }
 0x6fa   :  { %2834 = vmatmul.msk.f32.gmra.mxu2 %vm273_vm3, %v4785_v37 }
 0x701   :  { %v5004_v8 = vpop.f32.mrf.mxu3 }
 0x702   :  { %2835 = vmatmul.msk.f32.gmra.mxu2 %vm273_vm3, %v4799_v15 }
 0x709   :  { %v1897_v21 = vpop.f32.mrf.mxu3 }
 0x70a   :  { %2836 = vmatmul.msk.f32.gmra.mxu2 %vm273_vm3, %v4813_v35 }
 0x711   :  { %v1900_v49 = vpop.f32.mrf.mxu3 }
 0x712   :  { %2837 = vmatmul.msk.f32.gmra.mxu2 %vm273_vm3, %v4827_v56 }
 0x71a   :  { %2838 = vmatmul.msk.f32.gmra.mxu2 %vm273_vm3, %v4841_v63 }
 0x722   :  { %2839 = vmatmul.msk.f32.gmra.mxu2 %vm273_vm3, %v4855_v13 }
 0x72a   :  { %2840 = vmatmul.msk.f32.gmra.mxu2 %vm273_vm3, %v5501_v47 }
 0x732   :  { %2841 = vmatmul.msk.f32.gmra.mxu2 %vm273_vm3, %v5502_v55 }
 0x73a   :  { %2842 = vmatmul.msk.f32.gmra.mxu2 %vm273_vm3, %v5503_v36  ;;  %v5010_v36 = vpop.f32.mrf.mxu3 }
 0x742   :  { %2843 = vmatmul.msk.f32.gmra.mxu2 %vm273_vm3, %v5504_v30 }
 0x74a   :  { %2844 = vmatmul.msk.f32.gmra.mxu2 %vm273_vm3, %v5505_v14 }
 0x755   :  { %v1799_v32 = vpop.f32.mrf.mxu2 }
 0x756   :  { %v1868_v16 = vadd.f32 %v1867_v53, %v1799_v32 }
 0x758   :  { %v1915_v62 = vadd.f32 %v1868_v16, %v5457_v4 }
 0x75a   :  { %v1931_v47 = vsub.f32 0.0, %v1915_v62 }
 0x75d   :  { %v1802_v61 = vpop.f32.mrf.mxu2 }
 0x75e   :  { %v1871_v31 = vadd.f32 %v1870_v28, %v1802_v61 }
 0x765   :  { %v1805_v7 = vpop.f32.mrf.mxu2 }
 0x766   :  { %v1874_v48 = vadd.f32 %v1873_v22, %v1805_v7 }
 0x768   :  { %v1917_v55 = vadd.f32 %v1874_v48, %v4022_v12 }
 0x76a   :  { %v1933_v22 = vsub.f32 0.0, %v1917_v55 }
 0x76d   :  { %v1808_v59 = vpop.f32.mrf.mxu2 }
 0x76e   :  { %v1877_v14 = vadd.f32 %v1876_v29, %v1808_v59  ;;  %v1943_v29 = vmul.f32 1.442695, %v1931_v47 }
 0x770   :  { %v1918_v13 = vadd.f32 %v1877_v14, %v3968_v46  ;;  %3316 = vpow2.f32 %v1943_v29 }
 0x772   :  { %v1934_v61 = vsub.f32 0.0, %v1918_v13 }
 0x774   :  { %v1949_v14 = vmul.f32 1.442695, %v1934_v61 }
 0x775   :  { %v1811_v38 = vpop.f32.mrf.mxu2 }
 0x77d   :  { %v1814_v42 = vpop.f32.mrf.mxu2 }
 0x77e   :  { %v1883_v1 = vadd.f32 %v1882_v52, %v1814_v42  ;;  %v1916_v52 = vadd.f32 %v1871_v31, %v5458_v23  ;;  %v1880_v42 = vadd.f32 %v1879_v20, %v1811_v38  ;;  %v1947_v31 = vmul.f32 1.442695, %v1933_v22 }
 0x780   :  { %v1932_v56 = vsub.f32 0.0, %v1916_v52  ;;  %v1919_v53 = vadd.f32 %v1880_v42, %v5459_v54  ;;  %v1920_v28 = vadd.f32 %v1883_v1, %v5460_v34 }
 0x782   :  { %v1945_v7 = vmul.f32 1.442695, %v1932_v56  ;;  %v1935_v59 = vsub.f32 0.0, %v1919_v53  ;;  %v1936_v38 = vsub.f32 0.0, %v1920_v28 }
 0x784   :  { %3318 = vpow2.f32 %v1945_v7  ;;  %v1951_v62 = vmul.f32 1.442695, %v1935_v59  ;;  %v1953_v1 = vmul.f32 1.442695, %v1936_v38 }
 0x785   :  { %v1817_v27 = vpop.f32.mrf.mxu2  ;;  %3320 = vpow2.f32 %v1947_v31 }
 0x786   :  { %v1886_v63 = vadd.f32 %v1885_v44, %v1817_v27  ;;  %v1906_v27 = vpop.f32.mrf.mxu3  ;;  %3322 = vpow2.f32 %v1949_v14 }
 0x787   :  { %3324 = vpow2.f32 %v1951_v62 }
 0x788   :  { %v1921_v20 = vadd.f32 %v1886_v63, %v5461_v24  ;;  %v3317_v63 = vpop.eup %3316  ;;  %3326 = vpow2.f32 %v1953_v1  ;;  %v2862_v1 = vld [vmem:[%s5279_s1 + $0x38] sm:$0x3f] }
 0x789   :  { %v1967_v42 = vadd.f32 1.0, %v3317_v63  ;;  %2879 = vmatpush.msk.msra.mxu1 %vm436_vm1, %v2862_v1 }
 0x78a   :  { %v1937_v44 = vsub.f32 0.0, %v1921_v20 }
 0x78c   :  { %v1955_v13 = vmul.f32 1.442695, %v1937_v44 }
 0x78d   :  { %v1820_v45 = vpop.f32.mrf.mxu2 }
 0x78e   :  { %v1889_v32 = vadd.f32 %v1888_v26, %v1820_v45  ;;  %v3319_v26 = vpop.eup %3318  ;;  %3328 = vpow2.f32 %v1955_v13  ;;  %v1909_v29 = vpop.f32.mrf.mxu3 }
 0x78f   :  { %v3321_v52 = vpop.eup %3320  ;;  %v1968_v28 = vadd.f32 1.0, %v3319_v26 }
 0x790   :  { %v1922_v48 = vadd.f32 %v1889_v32, %v5426_v3  ;;  %v3323_v53 = vpop.eup %3322  ;;  %v1969_v7 = vadd.f32 1.0, %v3321_v52 }
 0x791   :  { %v3325_v61 = vpop.eup %3324 }
 0x792   :  { %v1938_v55 = vsub.f32 0.0, %v1922_v48  ;;  %v3327_v20 = vpop.eup %3326  ;;  %v1971_v38 = vadd.f32 1.0, %v3325_v61 }
 0x793   :  { %v1972_v44 = vadd.f32 1.0, %v3327_v20 }
 0x794   :  { %v1957_v45 = vmul.f32 1.442695, %v1938_v55 }
 0x795   :  { %v5006_v51 = vpop.f32.mrf.mxu2 }
 0x796   :  { %3330 = vpow2.f32 %v1957_v45 }
 0x797   :  { %3332 = vrcp.f32 %v1967_v42 }
 0x798   :  { %3334 = vrcp.f32 %v1968_v28 }
 0x799   :  { %3336 = vrcp.f32 %v1969_v7 }
 0x79d   :  { %v1826_v57 = vpop.f32.mrf.mxu2 }
 0x79e   :  { %v1895_v59 = vadd.f32 %v5004_v8, %v1826_v57 }
 0x7a0   :  { %v1924_v8 = vadd.f32 %v1895_v59, %v4012_v2 }
 0x7a2   :  { %v1940_v42 = vsub.f32 0.0, %v1924_v8 }
 0x7a4   :  { %v1961_v7 = vmul.f32 1.442695, %v1940_v42 }
 0x7a5   :  { %v1829_v60 = vpop.f32.mrf.mxu2 }
 0x7a6   :  { %v1898_v22 = vadd.f32 %v1897_v21, %v1829_v60  ;;  %v1892_v21 = vadd.f32 %v5002_v43, %v5006_v51 }
 0x7a8   :  { %v1925_v31 = vadd.f32 %v1898_v22, %v4042_v41 }
 0x7aa   :  { %v1941_v43 = vsub.f32 0.0, %v1925_v31 }
 0x7ac   :  { %v1963_v28 = vmul.f32 1.442695, %v1941_v43 }
 0x7ad   :  { %v1832_v30 = vpop.f32.mrf.mxu2 }
 0x7ae   :  { %v1901_v56 = vadd.f32 %v1900_v49, %v1832_v30  ;;  %v1970_v30 = vadd.f32 1.0, %v3323_v53  ;;  %v3329_v49 = vpop.eup %3328  ;;  %v1912_v53 = vpop.f32.mrf.mxu3 }
 0x7af   :  { %v3331_v57 = vpop.eup %3330  ;;  %v1973_v55 = vadd.f32 1.0, %v3329_v49  ;;  %v5507_v49 = vld [vmem:[#allocation6_spill] sm:$0xff] }
 0x7b0   :  { %v1926_v32 = vadd.f32 %v1901_v56, %v3994_v58  ;;  %3338 = vrcp.f32 %v1970_v30  ;;  %v5506_v56 = vld [vmem:[#allocation19_spill] sm:$0xff]  ;;  %v1974_v52 = vadd.f32 1.0, %v3331_v57 }
 0x7b1   :  { %2880 = vmatmul.msk.f32.vlgmr.msra.gmra.mxu1 %vm387_vm4, %v5506_v56  ;;  %3340 = vrcp.f32 %v1971_v38  ;;  %v5508_v56 = vld [vmem:[#allocation2_spill] sm:$0xff] }
 0x7b2   :  { %v1942_v48 = vsub.f32 0.0, %v1926_v32  ;;  %3342 = vrcp.f32 %v1972_v44 }
 0x7b4   :  { %v1965_v51 = vmul.f32 1.442695, %v1942_v48 }
 0x7b5   :  { %v1835_v16 = vpop.f32.mrf.mxu2 }
 0x7b6   :  { %v1904_v13 = vadd.f32 %v5010_v36, %v1835_v16 }
 0x7b8   :  { %v1927_v36 = vadd.f32 %v1904_v13, %v4075_v10 }
 0x7b9   :  { %2881 = vmatmul.msk.f32.gmra.mxu1 %vm387_vm4, %v5507_v49  ;;  %v5510_v49 = vld [vmem:[#allocation20_spill] sm:$0xff] }
 0x7bd   :  { %v1838_v47 = vpop.f32.mrf.mxu2 }
 0x7be   :  { %v1907_v60 = vadd.f32 %v1906_v27, %v1838_v47  ;;  %v3333_v27 = vpop.eup %3332  ;;  %v1923_v47 = vadd.f32 %v1892_v21, %v4016_v6 }
 0x7bf   :  { %v3335_v45 = vpop.eup %3334 }
 0x7c0   :  { %v1928_v26 = vadd.f32 %v1907_v60, %v4018_v9  ;;  %v3337_v16 = vpop.eup %3336 }
 0x7c1   :  { %v3339_v32 = vpop.eup %3338  ;;  %2882 = vmatmul.msk.f32.gmra.mxu1 %vm387_vm4, %v5508_v56  ;;  %v5528_v56 = vld [vmem:[#allocation17_spill] sm:$0xff] }
 0x7c2   :  { %v3341_v20 = vpop.eup %3340 }
 0x7c3   :  { %v3343_v59 = vpop.eup %3342 }
 0x7c5   :  { %v1841_v14 = vpop.f32.mrf.mxu2 }
 0x7c6   :  { %v1910_v62 = vadd.f32 %v1909_v29, %v1841_v14  ;;  %v1939_v29 = vsub.f32 0.0, %v1923_v47 }
 0x7c8   :  { %v1929_v63 = vadd.f32 %v1910_v62, %v4053_v40  ;;  %v1959_v48 = vmul.f32 1.442695, %v1939_v29 }
 0x7ca   :  { %3344 = vtanh.f32 %v1929_v63 }
 0x7cb   :  { %3346 = vrcp.f32 %v1973_v55 }
 0x7cc   :  { %3348 = vpow2.f32 %v1965_v51  ;;  %v1996_v51 = vmul.f32 %v3343_v59, %v4935_v18 }
 0x7cd   :  { %v1844_v22 = vpop.f32.mrf.mxu2  ;;  %3350 = vtanh.f32 %v1928_v26 }
 0x7ce   :  { %v1913_v61 = vadd.f32 %v1912_v53, %v1844_v22  ;;  %3352 = vrcp.f32 %v1974_v52 }
 0x7cf   :  { %3354 = vtanh.f32 %v1927_v36 }
 0x7d0   :  { %v1930_v30 = vadd.f32 %v1913_v61, %v4010_v0  ;;  %v3345_v38 = vpop.eup %3344  ;;  %3356 = vpow2.f32 %v1963_v28 }
 0x7d1   :  { %v3347_v31 = vpop.eup %3346  ;;  %v2001_v21 = vmul.f32 %v3345_v38, %v3337_v16 }
 0x7d2   :  { %3358 = vtanh.f32 %v1930_v30  ;;  %v3349_v14 = vpop.eup %3348  ;;  %v1997_v1 = vmul.f32 %v3347_v31, %v4930_v39  ;;  %v1995_v39 = vmul.f32 %v3341_v20, %v4940_v50 }
 0x7d3   :  { %3360 = vpow2.f32 %v1961_v7  ;;  %v3351_v44 = vpop.eup %3350  ;;  %v1978_v57 = vadd.f32 1.0, %v3349_v14  ;;  %v5512_v14 = vld [vmem:[#allocation21_spill] sm:$0xff] }
 0x7d4   :  { %v3353_v60 = vpop.eup %3352  ;;  %3362 = vpow2.f32 %v1959_v48  ;;  %v2000_v55 = vmul.f32 %v3351_v44, %v3335_v45  ;;  %v5039_v63 = vadd.f32 %v2001_v21, %v1997_v1  ;;  %v5511_v48 = vld [vmem:[#allocation22_spill] sm:$0xff]  ;;  %v5513_v44 = vld [vmem:[#allocation23_spill] sm:$0xff]  ;;  %v5514_v21 = vld [vmem:[#allocation8_spill] sm:$0xff] }
 0x7d5   :  { %v3355_v62 = vpop.eup %3354  ;;  %v1998_v47 = vmul.f32 %v3353_v60, %v4937_v25  ;;  %3364 = vrcp.f32 %v1978_v57  ;;  %v5509_v25 = vld [vmem:[#allocation24_spill] sm:$0xff]  ;;  %v5520_v60 = vld [vmem:[#allocation14_spill] sm:$0xff]  ;;  %v5526_v57 = vld [vmem:[#allocation13_spill] sm:$0xff] }
 0x7d6   :  { %v3357_v8 = vpop.eup %3356  ;;  %v1999_v26 = vmul.f32 %v3355_v62, %v3333_v27  ;;  %v5046_v53 = vadd.f32 %v2000_v55, %v1996_v51  ;;  %3366 = vtanh.f32 %v5039_v63  ;;  %2883 = vmatmul.msk.f32.gmra.mxu1 %vm387_vm4, %v5509_v25  ;;  %v5522_v62 = vld [vmem:[#allocation16_spill] sm:$0xff]  ;;  %v5524_v1 = vld [vmem:[#allocation18_spill] sm:$0xff]  ;;  %v5529_v51 = vld [vmem:[#allocation25_spill] sm:$0xff] }
 0x7d7   :  { %v1977_v42 = vadd.f32 1.0, %v3357_v8 }
 0x7d8   :  { %v3359_v13 = vpop.eup %3358  ;;  %v5051_v28 = vadd.f32 %v1999_v26, %v1995_v39 }
 0x7d9   :  { %v3361_v43 = vpop.eup %3360  ;;  %v2002_v52 = vmul.f32 %v3359_v13, %v3339_v32  ;;  %v5527_v13 = vld [vmem:[#allocation15_spill] sm:$0xff] }
 0x7da   :  { %v3363_v36 = vpop.eup %3362  ;;  %v1976_v16 = vadd.f32 1.0, %v3361_v43 }
 0x7db   :  { %v5048_v45 = vadd.f32 %v2002_v52, %v1998_v47  ;;  %v1975_v18 = vadd.f32 1.0, %v3363_v36  ;;  %v3365_v50 = vpop.eup %3364 }
 0x7dc   :  { %v3367_v27 = vpop.eup %3366 }
 0x7dd   :  { %3368 = vtanh.f32 %v5048_v45 }
 0x7de   :  { %3370 = vrcp.f32 %v1977_v42  ;;  %2884 = vmatmul.msk.f32.gmra.mxu1 %vm387_vm4, %v5510_v49 }
 0x7df   :  { %3372 = vtanh.f32 %v5046_v53 }
 0x7e0   :  { %3374 = vrcp.f32 %v1976_v16 }
 0x7e1   :  { %3376 = vtanh.f32 %v5051_v28 }
 0x7e2   :  { %3378 = vrcp.f32 %v1975_v18 }
 0x7e3   :  { %v3369_v22 = vpop.eup %3368 }
 0x7e4   :  { %v3371_v32 = vpop.eup %3370  ;;  %v2014_v29 = vmul.f32 %v3369_v22, %v3365_v50 }
 0x7e5   :  { %v3373_v61 = vpop.eup %3372  ;;  %v2013_v7 = vmul.f32 %v3371_v32, %v3367_v27 }
 0x7e6   :  { %v3375_v20 = vpop.eup %3374  ;;  %2029 = vmatpush.msrb.mxu0 %v2014_v29  ;;  %2885 = vmatmul.msk.f32.gmra.mxu1 %vm387_vm4, %v5511_v48 }
 0x7e7   :  { %v3377_v59 = vpop.eup %3376  ;;  %v2012_v30 = vmul.f32 %v3375_v20, %v3373_v61 }
 0x7e8   :  { %2030 = vmatpush.msrb.mxu0 %v2013_v7  ;;  %v3379_v38 = vpop.eup %3378 }
 0x7e9   :  { %v2011_v31 = vmul.f32 %v3379_v38, %v3377_v59 }
 0x7ea   :  { %2031 = vmatpush.msrb.mxu0 %v2012_v30 }
 0x7ec   :  { %2032 = vmatpush.msrb.mxu0 %v2011_v31 }
 0x7ed   :  { %2863 = vmatmul.msk.f32.vlgmr.msrb.gmra.mxu0 %vm273_vm3, %v4948_v33  ;;  %v5515_v33 = vld [vmem:[#allocation3_spill] sm:$0xff] }
 0x7ee   :  { %2886 = vmatmul.msk.f32.gmra.mxu1 %vm387_vm4, %v5512_v14 }
 0x7f5   :  { %2864 = vmatmul.msk.f32.gmra.mxu0 %vm273_vm3, %v4955_v19  ;;  %v5516_v19 = vld [vmem:[#allocation10_spill] sm:$0xff] }
 0x7f6   :  { %2887 = vmatmul.msk.f32.gmra.mxu1 %vm387_vm4, %v5513_v44 }
 0x7fd   :  { %2865 = vmatmul.msk.f32.gmra.mxu0 %vm273_vm3, %v4962_v11  ;;  %v5517_v11 = vld [vmem:[#allocation4_spill] sm:$0xff] }
 0x7fe   :  { %2888 = vmatmul.msk.f32.gmra.mxu1 %vm387_vm4, %v5514_v21 }
 0x805   :  { %2866 = vmatmul.msk.f32.gmra.mxu0 %vm273_vm3, %v4969_v5  ;;  %v5518_v5 = vld [vmem:[#allocation12_spill] sm:$0xff] }
 0x806   :  { %2889 = vmatmul.msk.f32.gmra.mxu1 %vm387_vm4, %v5515_v33 }
 0x80d   :  { %2867 = vmatmul.msk.f32.gmra.mxu0 %vm273_vm3, %v4976_v17  ;;  %v5519_v17 = vld [vmem:[#allocation5_spill] sm:$0xff] }
 0x80e   :  { %2890 = vmatmul.msk.f32.gmra.mxu1 %vm387_vm4, %v5516_v19 }
 0x815   :  { %2868 = vmatmul.msk.f32.gmra.mxu0 %vm273_vm3, %v4785_v37  ;;  %v5521_v37 = vld [vmem:[#allocation7_spill] sm:$0xff] }
 0x816   :  { %2891 = vmatmul.msk.f32.gmra.mxu1 %vm387_vm4, %v5517_v11 }
 0x81d   :  { %2869 = vmatmul.msk.f32.gmra.mxu0 %vm273_vm3, %v4799_v15  ;;  %v5523_v15 = vld [vmem:[#allocation9_spill] sm:$0xff] }
 0x81e   :  { %2892 = vmatmul.msk.f32.gmra.mxu1 %vm387_vm4, %v5518_v5 }
 0x825   :  { %2870 = vmatmul.msk.f32.gmra.mxu0 %vm273_vm3, %v4813_v35  ;;  %v5525_v35 = vld [vmem:[#allocation11_spill] sm:$0xff] }
 0x826   :  { %2893 = vmatmul.msk.f32.gmra.mxu1 %vm387_vm4, %v5520_v60 }
 0x82d   :  { %2871 = vmatmul.msk.f32.gmra.mxu0 %vm273_vm3, %v5519_v17 }
 0x82e   :  { %2894 = vmatmul.msk.f32.gmra.mxu1 %vm387_vm4, %v5522_v62  ;;  %v2102_v8 = vpop.f32.mrf.mxu1 }
 0x835   :  { %2872 = vmatmul.msk.f32.gmra.mxu0 %vm273_vm3, %v5521_v37 }
 0x836   :  { %2895 = vmatmul.msk.f32.gmra.mxu1 %vm387_vm4, %v5524_v1  ;;  %v2105_v55 = vpop.f32.mrf.mxu1 }
 0x83d   :  { %2873 = vmatmul.msk.f32.gmra.mxu0 %vm273_vm3, %v5523_v15 }
 0x83e   :  { %v2108_v43 = vpop.f32.mrf.mxu1 }
 0x845   :  { %2874 = vmatmul.msk.f32.gmra.mxu0 %vm273_vm3, %v5525_v35 }
 0x84d   :  { %2875 = vmatmul.msk.f32.gmra.mxu0 %vm273_vm3, %v5526_v57 }
 0x853   :  { %v2111_v47 = vpop.f32.mrf.mxu1 }
 0x855   :  { %2876 = vmatmul.msk.f32.gmra.mxu0 %vm273_vm3, %v5527_v13 }
 0x85b   :  { %v2114_v39 = vpop.f32.mrf.mxu1 }
 0x85d   :  { %2877 = vmatmul.msk.f32.gmra.mxu0 %vm273_vm3, %v5528_v56 }
 0x863   :  { %v2117_v25 = vpop.f32.mrf.mxu1 }
 0x865   :  { %2878 = vmatmul.msk.f32.gmra.mxu0 %vm273_vm3, %v5529_v51 }
 0x86a   :  { %v2034_v26 = vpop.f32.mrf.mxu0 }
 0x86b   :  { %v2103_v52 = vadd.f32 %v2102_v8, %v2034_v26  ;;  %v2120_v22 = vpop.f32.mrf.mxu1 }
 0x86d   :  { %v2150_v21 = vadd.f32 %v2103_v52, %v5457_v4 }
 0x86f   :  { %v2166_v11 = vsub.f32 0.0, %v2150_v21 }
 0x871   :  { %v2178_v62 = vmul.f32 1.442695, %v2166_v11 }
 0x872   :  { %v2037_v42 = vpop.f32.mrf.mxu0 }
 0x873   :  { %v2106_v36 = vadd.f32 %v2105_v55, %v2037_v42  ;;  %v2123_v61 = vpop.f32.mrf.mxu1 }
 0x875   :  { %v2151_v5 = vadd.f32 %v2106_v36, %v5458_v23 }
 0x877   :  { %v2167_v15 = vsub.f32 0.0, %v2151_v5 }
 0x879   :  { %v2180_v35 = vmul.f32 1.442695, %v2167_v15 }
 0x87a   :  { %v2040_v16 = vpop.f32.mrf.mxu0 }
 0x87b   :  { %v2109_v18 = vadd.f32 %v2108_v43, %v2040_v16  ;;  %v5114_v30 = vpop.f32.mrf.mxu1 }
 0x87d   :  { %v2152_v13 = vadd.f32 %v2109_v18, %v4022_v12 }
 0x882   :  { %v2043_v50 = vpop.f32.mrf.mxu0 }
 0x883   :  { %v2112_v27 = vadd.f32 %v2111_v47, %v2043_v50  ;;  %v5116_v38 = vpop.f32.mrf.mxu1  ;;  %v2168_v47 = vsub.f32 0.0, %v2152_v13 }
 0x885   :  { %v2153_v26 = vadd.f32 %v2112_v27, %v3968_v46  ;;  %v2182_v50 = vmul.f32 1.442695, %v2168_v47 }
 0x88a   :  { %v2046_v32 = vpop.f32.mrf.mxu0 }
 0x88b   :  { %v2115_v29 = vadd.f32 %v2114_v39, %v2046_v32  ;;  %v5120_v48 = vpop.f32.mrf.mxu1 }
 0x88d   :  { %v2154_v44 = vadd.f32 %v2115_v29, %v5459_v54 }
 0x88f   :  { %v2170_v33 = vsub.f32 0.0, %v2154_v44 }
 0x891   :  { %v2186_v60 = vmul.f32 1.442695, %v2170_v33 }
 0x892   :  { %v2049_v20 = vpop.f32.mrf.mxu0 }
 0x893   :  { %v2118_v7 = vadd.f32 %v2117_v25, %v2049_v20  ;;  %v2135_v19 = vpop.f32.mrf.mxu1  ;;  %3380 = vpow2.f32 %v2186_v60 }
 0x894   :  { %3382 = vpow2.f32 %v2178_v62 }
 0x895   :  { %v2155_v37 = vadd.f32 %v2118_v7, %v5460_v34  ;;  %3384 = vpow2.f32 %v2180_v35 }
 0x897   :  { %v2171_v1 = vsub.f32 0.0, %v2155_v37 }
 0x899   :  { %v2188_v54 = vmul.f32 1.442695, %v2171_v1  ;;  %v3381_v4 = vpop.eup %3380 }
 0x89a   :  { %v2052_v59 = vpop.f32.mrf.mxu0  ;;  %v3383_v56 = vpop.eup %3382  ;;  %v2206_v34 = vadd.f32 1.0, %v3381_v4 }
 0x89b   :  { %v2138_v57 = vpop.f32.mrf.mxu1  ;;  %v2121_v55 = vadd.f32 %v2120_v22, %v2052_v59  ;;  %3386 = vpow2.f32 %v2188_v54  ;;  %v2202_v51 = vadd.f32 1.0, %v3383_v56  ;;  %v3385_v39 = vpop.eup %3384 }
 0x89c   :  { %3388 = vrcp.f32 %v2206_v34  ;;  %v2203_v22 = vadd.f32 1.0, %v3385_v39 }
 0x89d   :  { %v2156_v23 = vadd.f32 %v2121_v55, %v5461_v24  ;;  %3390 = vrcp.f32 %v2202_v51  ;;  %v2169_v24 = vsub.f32 0.0, %v2153_v26 }
 0x89f   :  { %v2172_v36 = vsub.f32 0.0, %v2156_v23  ;;  %v2184_v46 = vmul.f32 1.442695, %v2169_v24  ;;  %v2251_v24 = vld [vmem:[%s5288_s9 + $0x8] sm:$0xff] }
 0x8a1   :  { %v3387_v18 = vpop.eup %3386  ;;  %v2190_v32 = vmul.f32 1.442695, %v2172_v36 }
 0x8a2   :  { %v2055_v49 = vpop.f32.mrf.mxu0  ;;  %v3389_v20 = vpop.eup %3388 }
 0x8a3   :  { %v2124_v43 = vadd.f32 %v2123_v61, %v2055_v49  ;;  %v2141_v25 = vpop.f32.mrf.mxu1  ;;  %v2207_v61 = vadd.f32 1.0, %v3387_v18  ;;  %v3391_v59 = vpop.eup %3390  ;;  %v2230_v21 = vmul.f32 %v3389_v20, %v5051_v28 }
 0x8a5   :  { %v2157_v16 = vadd.f32 %v2124_v43, %v5426_v3 }
 0x8a7   :  { %v2173_v29 = vsub.f32 0.0, %v2157_v16 }
 0x8a9   :  { %v2192_v49 = vmul.f32 1.442695, %v2173_v29 }
 0x8aa   :  { %v5118_v31 = vpop.f32.mrf.mxu0 }
 0x8ab   :  { %v2144_v5 = vpop.f32.mrf.mxu1 }
 0x8b2   :  { %v5122_v14 = vpop.f32.mrf.mxu0 }
 0x8ba   :  { %v2064_v17 = vpop.f32.mrf.mxu0 }
 0x8bb   :  { %v2133_v33 = vadd.f32 %v5120_v48, %v2064_v17  ;;  %v2127_v48 = vadd.f32 %v5114_v30, %v5118_v31  ;;  %v2147_v31 = vpop.f32.mrf.mxu1 }
 0x8bd   :  { %v2158_v23 = vadd.f32 %v2127_v48, %v4016_v6  ;;  %v2254_v48 = vld [vmem:[%s5288_s9 + $0x20] sm:$0xff] }
 0x8c2   :  { %v2067_v8 = vpop.f32.mrf.mxu0 }
 0x8c3   :  { %v2136_v7 = vadd.f32 %v2135_v19, %v2067_v8  ;;  %v2130_v19 = vadd.f32 %v5116_v38, %v5122_v14 }
 0x8c5   :  { %v2161_v60 = vadd.f32 %v2136_v7, %v3994_v58 }
 0x8c7   :  { %v2177_v17 = vsub.f32 0.0, %v2161_v60 }
 0x8c9   :  { %v2200_v43 = vmul.f32 1.442695, %v2177_v17  ;;  %v2264_v17 = vld [vmem:[%s5289_s10 + $0x8] sm:$0xff] }
 0x8ca   :  { %v2070_v52 = vpop.f32.mrf.mxu0 }
 0x8cb   :  { %v2139_v42 = vadd.f32 %v2138_v57, %v2070_v52  ;;  %v2159_v57 = vadd.f32 %v2130_v19, %v4012_v2 }
 0x8cd   :  { %v2162_v12 = vadd.f32 %v2139_v42, %v4075_v10  ;;  %v2175_v30 = vsub.f32 0.0, %v2159_v57  ;;  %v2256_v57 = vld [vmem:[%s5288_s9 + $0x30] sm:$0xff] }
 0x8cf   :  { %3392 = vtanh.f32 %v2162_v12  ;;  %v2196_v6 = vmul.f32 1.442695, %v2175_v30  ;;  %v2262_v30 = vld [vmem:[%s5288_s9 + $0x60] sm:$0xff] }
 0x8d0   :  { %3394 = vpow2.f32 %v2182_v50 }
 0x8d1   :  { %3396 = vrcp.f32 %v2203_v22 }
 0x8d2   :  { %v2073_v27 = vpop.f32.mrf.mxu0  ;;  %3398 = vpow2.f32 %v2190_v32 }
 0x8d3   :  { %v2142_v3 = vadd.f32 %v2141_v25, %v2073_v27  ;;  %3400 = vrcp.f32 %v2207_v61 }
 0x8d4   :  { %3402 = vpow2.f32 %v2184_v46 }
 0x8d5   :  { %v3393_v10 = vpop.eup %3392  ;;  %v2163_v44 = vadd.f32 %v2142_v3, %v4018_v9  ;;  %v2160_v9 = vadd.f32 %v2133_v33, %v4042_v41 }
 0x8d6   :  { %v2234_v11 = vmul.f32 %v3393_v10, %v3391_v59  ;;  %v3395_v37 = vpop.eup %3394 }
 0x8d7   :  { %3404 = vtanh.f32 %v2163_v44  ;;  %v3397_v15 = vpop.eup %3396  ;;  %v2204_v55 = vadd.f32 1.0, %v3395_v37  ;;  %v2176_v56 = vsub.f32 0.0, %v2160_v9  ;;  %v2253_v37 = vld [vmem:[%s5288_s9 + $0x18] sm:$0xff] }
 0x8d8   :  { %3406 = vpow2.f32 %v2192_v49  ;;  %v5139_v62 = vadd.f32 %v2234_v11, %v2230_v21  ;;  %v3399_v1 = vpop.eup %3398 }
 0x8d9   :  { %v3401_v28 = vpop.eup %3400  ;;  %v2208_v13 = vadd.f32 1.0, %v3399_v1  ;;  %v2198_v47 = vmul.f32 1.442695, %v2176_v56  ;;  %v2269_v56 = vld [vmem:[%s5289_s10 + $0x30] sm:$0xff] }
 0x8da   :  { %v2076_v35 = vpop.f32.mrf.mxu0  ;;  %v3403_v58 = vpop.eup %3402  ;;  %v2231_v4 = vmul.f32 %v3401_v28, %v5046_v53  ;;  %v2174_v53 = vsub.f32 0.0, %v2158_v23  ;;  %v2263_v28 = vld [vmem:[%s5289_s10] sm:$0xff]  ;;  %v2270_v23 = vld [vmem:[%s5289_s10 + $0x38] sm:$0xff] }
 0x8db   :  { %v2145_v8 = vadd.f32 %v2144_v5, %v2076_v35  ;;  %v2205_v34 = vadd.f32 1.0, %v3403_v58  ;;  %v2265_v58 = vld [vmem:[%s5289_s10 + $0x10] sm:$0xff] }
 0x8dc   :  { %v2194_v16 = vmul.f32 1.442695, %v2174_v53 }
 0x8dd   :  { %v3405_v54 = vpop.eup %3404  ;;  %v2164_v38 = vadd.f32 %v2145_v8, %v4053_v40  ;;  %v2250_v40 = vld [vmem:[%s5288_s9] sm:$0xff]  ;;  %v2255_v8 = vld [vmem:[%s5288_s9 + $0x28] sm:$0xff] }
 0x8de   :  { %v3407_v14 = vpop.eup %3406  ;;  %v2235_v41 = vmul.f32 %v3405_v54, %v3397_v15  ;;  %2909 = vmatmul.msk.f32.vlgmr.msra.gmra.mxu3 %vm112_vm5, %v2250_v40  ;;  %v2266_v54 = vld [vmem:[%s5289_s10 + $0x18] sm:$0xff] }
 0x8df   :  { %3408 = vtanh.f32 %v2164_v38  ;;  %v2209_v2 = vadd.f32 1.0, %v3407_v14  ;;  %v2267_v38 = vld [vmem:[%s5289_s10 + $0x20] sm:$0xff] }
 0x8e0   :  { %v2239_v51 = vadd.f32 %v2235_v41, %v2231_v4  ;;  %3410 = vrcp.f32 %v2204_v55  ;;  %v2257_v55 = vld [vmem:[%s5288_s9 + $0x38] sm:$0xff]  ;;  %v2258_v14 = vld [vmem:[%s5288_s9 + $0x40] sm:$0xff]  ;;  %v2268_v4 = vld [vmem:[%s5289_s10 + $0x28] sm:$0xff] }
 0x8e1   :  { %3412 = vrcp.f32 %v2208_v13  ;;  %v2259_v13 = vld [vmem:[%s5288_s9 + $0x48] sm:$0xff]  ;;  %v2260_v41 = vld [vmem:[%s5288_s9 + $0x50] sm:$0xff] }
 0x8e2   :  { %v2079_v26 = vpop.f32.mrf.mxu0  ;;  %3414 = vpow2.f32 %v2200_v43  ;;  %v2261_v43 = vld [vmem:[%s5288_s9 + $0x58] sm:$0xff] }
 0x8e3   :  { %v2148_v52 = vadd.f32 %v2147_v31, %v2079_v26  ;;  %3416 = vrcp.f32 %v2205_v34  ;;  %v2271_v34 = vld [vmem:[%s5289_s10 + $0x40] sm:$0xff]  ;;  %v2272_v31 = vld [vmem:[%s5289_s10 + $0x48] sm:$0xff] }
 0x8e4   :  { %3418 = vrcp.f32 %v2209_v2  ;;  %v2274_v2 = vld [vmem:[%s5289_s10 + $0x58] sm:$0xff] }
 0x8e5   :  { %v2165_v42 = vadd.f32 %v2148_v52, %v4010_v0  ;;  %v3409_v39 = vpop.eup %3408  ;;  %3420 = vpow2.f32 %v2198_v47  ;;  %v2275_v47 = vld [vmem:[%s5289_s10 + $0x60] sm:$0xff] }
 0x8e6   :  { %v3411_v36 = vpop.eup %3410  ;;  %2910 = vmatmul.msk.f32.gmra.mxu3 %vm112_vm5, %v2251_v24 }
 0x8e7   :  { %3422 = vtanh.f32 %v2165_v42  ;;  %v3413_v25 = vpop.eup %3412  ;;  %v2236_v18 = vmul.f32 %v3411_v36, %v3409_v39 }
 0x8e8   :  { %3424 = vpow2.f32 %v2196_v6  ;;  %v3415_v12 = vpop.eup %3414  ;;  %v2232_v32 = vmul.f32 %v3413_v25, %v5039_v63  ;;  %v2252_v63 = vld [vmem:[%s5288_s9 + $0x10] sm:$0xff] }
 0x8e9   :  { %v3417_v50 = vpop.eup %3416  ;;  %3426 = vpow2.f32 %v2194_v16  ;;  %v2213_v29 = vadd.f32 1.0, %v3415_v12 }
 0x8ea   :  { %v3419_v22 = vpop.eup %3418  ;;  %v2240_v46 = vadd.f32 %v2236_v18, %v2232_v32 }
 0x8eb   :  { %v3421_v0 = vpop.eup %3420  ;;  %v2233_v20 = vmul.f32 %v3419_v22, %v5048_v45  ;;  %3428 = vrcp.f32 %v2213_v29 }
 0x8ec   :  { %v2212_v3 = vadd.f32 1.0, %v3421_v0  ;;  %3430 = vtanh.f32 %v2240_v46 }
 0x8ed   :  { %v3423_v61 = vpop.eup %3422 }
 0x8ee   :  { %v3425_v27 = vpop.eup %3424  ;;  %v2237_v7 = vmul.f32 %v3423_v61, %v3417_v50  ;;  %2911 = vmatmul.msk.f32.gmra.mxu3 %vm112_vm5, %v2252_v63  ;;  %v2542_v63 = vpop.permute.xlu2 %2541 }
 0x8ef   :  { %v3427_v49 = vpop.eup %3426  ;;  %v2211_v10 = vadd.f32 1.0, %v3425_v27 }
 0x8f0   :  { %v2241_v59 = vadd.f32 %v2237_v7, %v2233_v20  ;;  %v2210_v44 = vadd.f32 1.0, %v3427_v49 }
 0x8f1   :  { %v3429_v21 = vpop.eup %3428 }
 0x8f2   :  { %3432 = vtanh.f32 %v2241_v59  ;;  %v3431_v45 = vpop.eup %3430 }
 0x8f3   :  { %3434 = vrcp.f32 %v2212_v3 }
 0x8f4   :  { %3436 = vtanh.f32 %v2239_v51  ;;  %v2273_v51 = vld [vmem:[%s5289_s10 + $0x50] sm:$0xff] }
 0x8f5   :  { %3438 = vrcp.f32 %v2211_v10 }
 0x8f6   :  { %3440 = vtanh.f32 %v5139_v62  ;;  %2912 = vmatmul.msk.f32.gmra.mxu3 %vm112_vm5, %v2253_v37 }
 0x8f7   :  { %3442 = vrcp.f32 %v2210_v44 }
 0x8f8   :  { %v3433_v33 = vpop.eup %3432 }
 0x8f9   :  { %v3435_v11 = vpop.eup %3434  ;;  %v2249_v5 = vmul.f32 %v3433_v33, %v3429_v21  ;;  %v2532_v33 = vpop.permute.xlu1 %2531 }
 0x8fa   :  { %v3437_v60 = vpop.eup %3436  ;;  %v2248_v15 = vmul.f32 %v3435_v11, %v3431_v45  ;;  %v2537_v45 = vpop.permute.xlu0 %2536 }
 0x8fb   :  { %v3439_v19 = vpop.eup %3438  ;;  %2327 = vmatpush.msra.mxu2 %v2249_v5  ;;  %v2527_v5 = vpop.permute.xlu2 %2526 }
 0x8fc   :  { %v3441_v1 = vpop.eup %3440  ;;  %v2247_v9 = vmul.f32 %v3439_v19, %v3437_v60 }
 0x8fd   :  { %2328 = vmatpush.msra.mxu2 %v2248_v15  ;;  %v3443_v35 = vpop.eup %3442 }
 0x8fe   :  { %v2246_v62 = vmul.f32 %v3443_v35, %v3441_v1  ;;  %2913 = vmatmul.msk.f32.gmra.mxu3 %vm112_vm5, %v2254_v48 }
 0x8ff   :  { %2329 = vmatpush.msra.mxu2 %v2247_v9 }
 0x901   :  { %2330 = vmatpush.msra.mxu2 %v2246_v62  ;;  %v2517_v35 = vpop.permute.xlu1 %2516 }
 0x902   :  { %2896 = vmatmul.msk.f32.vlgmr.msra.gmra.mxu2 %vm273_vm3, %v2263_v28  ;;  %v2522_v19 = vpop.permute.xlu0 %2521 }
 0x906   :  { %2914 = vmatmul.msk.f32.gmra.mxu3 %vm112_vm5, %v2255_v8 }
 0x90a   :  { %2897 = vmatmul.msk.f32.gmra.mxu2 %vm273_vm3, %v2264_v17  ;;  %v2512_v17 = vpop.permute.xlu2 %2511 }
 0x90e   :  { %2915 = vmatmul.msk.f32.gmra.mxu3 %vm112_vm5, %v2256_v57 }
 0x912   :  { %2898 = vmatmul.msk.f32.gmra.mxu2 %vm273_vm3, %v2265_v58 }
 0x916   :  { %2916 = vmatmul.msk.f32.gmra.mxu3 %vm112_vm5, %v2257_v55 }
 0x91a   :  { %2899 = vmatmul.msk.f32.gmra.mxu2 %vm273_vm3, %v2266_v54 }
 0x91e   :  { %2917 = vmatmul.msk.f32.gmra.mxu3 %vm112_vm5, %v2258_v14 }
 0x922   :  { %2900 = vmatmul.msk.f32.gmra.mxu2 %vm273_vm3, %v2267_v38 }
 0x926   :  { %2918 = vmatmul.msk.f32.gmra.mxu3 %vm112_vm5, %v2259_v13 }
 0x92a   :  { %2901 = vmatmul.msk.f32.gmra.mxu2 %vm273_vm3, %v2268_v4 }
 0x92e   :  { %2919 = vmatmul.msk.f32.gmra.mxu3 %vm112_vm5, %v2260_v41 }
 0x932   :  { %2902 = vmatmul.msk.f32.gmra.mxu2 %vm273_vm3, %v2269_v56  ;;  %v2507_v56 = vpop.permute.xlu0 %2506 }
 0x936   :  { %2920 = vmatmul.msk.f32.gmra.mxu3 %vm112_vm5, %v2261_v43  ;;  %v2502_v43 = vpop.permute.xlu1 %2501 }
 0x93a   :  { %2903 = vmatmul.msk.f32.gmra.mxu2 %vm273_vm3, %v2270_v23 }
 0x93e   :  { %2921 = vmatmul.msk.f32.gmra.mxu3 %vm112_vm5, %v2262_v30 }
 0x942   :  { %2904 = vmatmul.msk.f32.gmra.mxu2 %vm273_vm3, %v2271_v34 }
 0x94a   :  { %2905 = vmatmul.msk.f32.gmra.mxu2 %vm273_vm3, %v2272_v31  ;;  %v2497_v31 = vpop.permute.xlu2 %2496 }
 0x952   :  { %2906 = vmatmul.msk.f32.gmra.mxu2 %vm273_vm3, %v2273_v51 }
 0x95a   :  { %2907 = vmatmul.msk.f32.gmra.mxu2 %vm273_vm3, %v2274_v2 }
 0x961   :  { %v2427_v26 = vpop.f32.mrf.mxu3 }
 0x962   :  { %2908 = vmatmul.msk.f32.gmra.mxu2 %vm273_vm3, %v2275_v47 }
 0x969   :  { %v2430_v40 = vpop.f32.mrf.mxu3 }
 0x971   :  { %v2433_v53 = vpop.f32.mrf.mxu3 }
 0x979   :  { %v2436_v42 = vpop.f32.mrf.mxu3 }
 0x981   :  { %v2439_v16 = vpop.f32.mrf.mxu3 }
 0x985   :  { %v2332_v52 = vpop.f32.mrf.mxu2 }
 0x986   :  { %v5256_v6 = vadd.f32 %v2427_v26, %v2332_v52  ;;  %v2492_v52 = vpop.permute.xlu0 %2491 }
 0x989   :  { %v2442_v50 = vpop.f32.mrf.mxu3 }
 0x98d   :  { %v2335_v39 = vpop.f32.mrf.mxu2 }
 0x98e   :  { %v5258_v36 = vadd.f32 %v2430_v40, %v2335_v39 }
 0x991   :  { %v2445_v0 = vpop.f32.mrf.mxu3 }
 0x995   :  { %v2338_v25 = vpop.f32.mrf.mxu2 }
 0x996   :  { %v5260_v12 = vadd.f32 %v2433_v53, %v2338_v25 }
 0x999   :  { %v2448_v46 = vpop.f32.mrf.mxu3 }
 0x99d   :  { %v2341_v18 = vpop.f32.mrf.mxu2 }
 0x99e   :  { %v2437_v24 = vadd.f32 %v2436_v42, %v2341_v18  ;;  %v2546_v42 = vadd.f32 %v2492_v52, %v5260_v12  ;;  %v2570_v12 = vld [vmem:[%s5290_s12] sm:$0xff] }
 0x9a0   :  { %v2547_v40 = vadd.f32 %v2497_v31, %v2437_v24 }
 0x9a1   :  { %v2451_v20 = vpop.f32.mrf.mxu3 }
 0x9a2   :  { %v2560_v18 = vmax.f32 %v2547_v40, 0.0 }
 0x9a5   :  { %v2344_v22 = vpop.f32.mrf.mxu2 }
 0x9a6   :  { %v2440_v32 = vadd.f32 %v2439_v16, %v2344_v22  ;;  %v2487_v16 = vpop.permute.xlu1 %2486 }
 0x9a7   :  { %v2545_v25 = vadd.f32 %v2487_v16, %v5258_v36  ;;  %v2571_v36 = vld [vmem:[%s5290_s12 + $0x8] sm:$0xff] }
 0x9a8   :  { %v2548_v47 = vadd.f32 %v2502_v43, %v2440_v32 }
 0x9a9   :  { %v2454_v59 = vpop.f32.mrf.mxu3  ;;  %v2558_v32 = vmax.f32 %v2545_v25, 0.0 }
 0x9aa   :  { %v2561_v39 = vmax.f32 %v2548_v47, 0.0 }
 0x9ad   :  { %v2347_v29 = vpop.f32.mrf.mxu2 }
 0x9ae   :  { %v2443_v61 = vadd.f32 %v2442_v50, %v2347_v29  ;;  %v2482_v50 = vpop.permute.xlu2 %2481  ;;  %v2577_v29 = vpop.permute.xlu0 %2576 }
 0x9af   :  { %v2544_v22 = vadd.f32 %v2482_v50, %v5256_v6 }
 0x9b0   :  { %v2549_v51 = vadd.f32 %v2507_v56, %v2443_v61 }
 0x9b1   :  { %v2457_v10 = vpop.f32.mrf.mxu3  ;;  %v2557_v24 = vmax.f32 %v2544_v22, 0.0 }
 0x9b2   :  { %v2562_v53 = vmax.f32 %v2549_v51, 0.0 }
 0x9b5   :  { %v2350_v27 = vpop.f32.mrf.mxu2 }
 0x9b6   :  { %v2446_v14 = vadd.f32 %v2445_v0, %v2350_v27  ;;  %v2559_v0 = vmax.f32 %v2546_v42, 0.0 }
 0x9b8   :  { %v2550_v34 = vadd.f32 %v2512_v17, %v2446_v14 }
 0x9b9   :  { %v2460_v21 = vpop.f32.mrf.mxu3 }
 0x9ba   :  { %v2563_v26 = vmax.f32 %v2550_v34, 0.0 }
 0x9bd   :  { %v2353_v7 = vpop.f32.mrf.mxu2 }
 0x9be   :  { %v2449_v54 = vadd.f32 %v2448_v46, %v2353_v7  ;;  %v2582_v46 = vpop.permute.xlu1 %2581 }
 0x9c0   :  { %v2551_v41 = vadd.f32 %v2517_v35, %v2449_v54 }
 0x9c1   :  { %v2463_v60 = vpop.f32.mrf.mxu3 }
 0x9c2   :  { %v2564_v2 = vmax.f32 %v2551_v41, 0.0 }
 0x9c5   :  { %v2356_v3 = vpop.f32.mrf.mxu2 }
 0x9c6   :  { %v2452_v8 = vadd.f32 %v2451_v20, %v2356_v3 }
 0x9c8   :  { %v2552_v4 = vadd.f32 %v2522_v19, %v2452_v8 }
 0x9ca   :  { %v2565_v30 = vmax.f32 %v2552_v4, 0.0 }
 0x9cd   :  { %v2359_v49 = vpop.f32.mrf.mxu2 }
 0x9ce   :  { %v2455_v62 = vadd.f32 %v2454_v59, %v2359_v49 }
 0x9d0   :  { %v2553_v55 = vadd.f32 %v2527_v5, %v2455_v62 }
 0x9d2   :  { %v2566_v23 = vmax.f32 %v2553_v55, 0.0 }
 0x9d5   :  { %v2362_v44 = vpop.f32.mrf.mxu2 }
 0x9d6   :  { %v2458_v1 = vadd.f32 %v2457_v10, %v2362_v44 }
 0x9d8   :  { %v2554_v58 = vadd.f32 %v2532_v33, %v2458_v1 }
 0x9da   :  { %v2567_v13 = vmax.f32 %v2554_v58, 0.0 }
 0x9dd   :  { %v2365_v11 = vpop.f32.mrf.mxu2 }
 0x9de   :  { %v2461_v37 = vadd.f32 %v2460_v21, %v2365_v11 }
 0x9e0   :  { %v2555_v28 = vadd.f32 %v2537_v45, %v2461_v37 }
 0x9e2   :  { %v2568_v38 = vmax.f32 %v2555_v28, 0.0 }
 0x9e5   :  { %v2368_v15 = vpop.f32.mrf.mxu2 }
 0x9e6   :  { %v2464_v9 = vadd.f32 %v2463_v60, %v2368_v15 }
 0x9e8   :  { %v2556_v48 = vadd.f32 %v2542_v63, %v2464_v9 }
 0x9ea   :  { %v2569_v57 = vmax.f32 %v2556_v48, 0.0 }
 0x9ec   :  { %2594 = vmatpush.msra.mxu0 %v2569_v57 }
 0x9ee   :  { %2595 = vmatpush.msra.mxu0 %v2568_v38 }
 0x9f0   :  { %2596 = vmatpush.msra.mxu0 %v2567_v13 }
 0x9f2   :  { %2597 = vmatpush.msra.mxu0 %v2566_v23 }
 0x9f4   :  { %2598 = vmatpush.msra.mxu0 %v2565_v30 }
 0x9f6   :  { %2599 = vmatpush.msra.mxu0 %v2564_v2 }
 0x9f8   :  { %2600 = vmatpush.msra.mxu0 %v2563_v26 }
 0x9fa   :  { %2601 = vmatpush.msra.mxu0 %v2562_v53 }
 0x9fc   :  { %2602 = vmatpush.msra.mxu0 %v2561_v39 }
 0x9fe   :  { %2603 = vmatpush.msra.mxu0 %v2560_v18 }
 0xa00   :  { %2604 = vmatpush.msra.mxu0 %v2559_v0 }
 0xa02   :  { %2605 = vmatpush.msra.mxu0 %v2558_v32 }
 0xa04   :  { %2606 = vmatpush.msra.mxu0 %v2557_v24 }
 0xa05   :  { %2922 = vmatmul.msk.f32.vlgmr.msra.gmra.mxu0 %vm2584_vm6, %v2570_v12 }
 0xa0d   :  { %2923 = vmatmul.msk.f32.gmra.mxu0 %vm2584_vm6, %v2571_v36 }
 0xa82   :  { %v2608_v6 = vpop.f32.mrf.mxu0 }
 0xa83   :  { %v2609_v61 = vadd.f32 %v2608_v6, %v2577_v29 }
 0xa85   :  { %2614 = vst [vmem:[%s5291_s14] sm:$0xff] %v2609_v61 }
 0xa8a   :  { %v2611_v27 = vpop.f32.mrf.mxu0 }
 0xa8b   :  { %v2612_v20 = vadd.f32 %v2611_v27, %v2582_v46 }
 0xa8d   :  { %2615 = vst [vmem:[%s5291_s14 + $0x8] sm:$0xff] %v2612_v20 }

</bundles_post_ra>
